<compile_context>
chip_gen: v7x
topology: tpu7x:2x2x1
jax: 0.10.0
libtpu: 0.0.40
codegen_flags: <defaults>
</compile_context>

<pallas_src>
import jax
import jax.numpy as jnp
from jax.experimental import pallas as pl
from jax.experimental.pallas import tpu as pltpu


def _const_index_map(ndim):
    return lambda i: (0,) * ndim


# ----------------------------------------------------------------------------
# Fused encoder + decoder + dense-head kernel.
# ----------------------------------------------------------------------------
def build_fused_kernel(*, B, Lx, Ld, H, L):
    def gru_layer(xp2d, T, h0, whv, bhv, seq_ref, extra_gates=None):
        # xp2d : (T*B, 3H) hoisted input-side gate pre-activations (incl. input bias),
        #        rows ordered t*B + b (time-major).
        # whv  : (H, 3H) fused recurrent weights; bhv: (1, 3H) recurrent bias.
        # Writes the per-step hidden states into seq_ref[0:T*B]; returns the final h (B, H).
        h = h0
        for t in range(T):  # statically unrolled; only h @ Wh is on the serial path
            xpt = xp2d[t * B:(t + 1) * B, :]
            if extra_gates is not None:
                xpt = xpt + extra_gates                       # time-invariant context gates
            hp = jnp.dot(h, whv, preferred_element_type=jnp.float32) + bhv
            r = jax.nn.sigmoid(xpt[:, :H] + hp[:, :H])
            z = jax.nn.sigmoid(xpt[:, H:2 * H] + hp[:, H:2 * H])
            n = jnp.tanh(xpt[:, 2 * H:] + r * hp[:, 2 * H:])
            h = (1.0 - z) * n + z * h
            seq_ref[t * B:(t + 1) * B, :] = h                 # VMEM-resident layer output
        return h

    def kernel(*refs):
        it = iter(refs)
        x_enc_ref = next(it)                                  # (Lx*B, enc_in), rows t*B+b
        x_dec_ref = next(it)                                  # (Ld*B, dec_in), rows t*B+b
        enc_p = [tuple(next(it) for _ in range(4)) for _ in range(L)]
        dec0 = tuple(next(it) for _ in range(5))              # wx, wctx, wh, bi, bh
        dec_rest = [tuple(next(it) for _ in range(4)) for _ in range(L - 1)]
        dense_w_ref = next(it)                                # (H, dec_out)
        dense_b_ref = next(it)                                # (1, dec_out)
        out_ref = next(it)                                    # (Ld*B, dec_out)
        seq_ref = next(it)                                    # VMEM (max(Lx,Ld)*B, H)

        h0_zero = jnp.zeros((B, H), jnp.float32)

        # ------------------------------ Encoder ------------------------------
        layer_in = x_enc_ref[...]
        enc_finals = []
        for l in range(L):
            wi_r, wh_r, bi_r, bh_r = enc_p[l]
            # Hoisted input projection: one fused (T*B, Din) @ (Din, 3H) matmul.
            xp2d = jnp.dot(layer_in, wi_r[...],
                           preferred_element_type=jnp.float32) + bi_r[...]
            hT = gru_layer(xp2d, Lx, h0_zero, wh_r[...], bh_r[...], seq_ref)
            enc_finals.append(hT)
            if l + 1 < L:
                layer_in = seq_ref[0:Lx * B, :]

        # ----------------------- Decoder (teacher forcing) -----------------------
        ctx = enc_finals[L - 1]                               # (B, H) encoder last-layer state
        wx_r, wctx_r, wh_r, bi_r, bh_r = dec0
        ctx_gates = jnp.dot(ctx, wctx_r[...],                 # context projected once
                            preferred_element_type=jnp.float32)
        xp2d = jnp.dot(x_dec_ref[...], wx_r[...],
                       preferred_element_type=jnp.float32) + bi_r[...]
        gru_layer(xp2d, Ld, enc_finals[0], wh_r[...], bh_r[...], seq_ref,
                  extra_gates=ctx_gates)
        for l in range(1, L):
            wi_r, wh_r, bi_r, bh_r = dec_rest[l - 1]
            layer_in = seq_ref[0:Ld * B, :]
            xp2d = jnp.dot(layer_in, wi_r[...],
                           preferred_element_type=jnp.float32) + bi_r[...]
            gru_layer(xp2d, Ld, enc_finals[l], wh_r[...], bh_r[...], seq_ref)

        # ------------------------------ Dense head ------------------------------
        y_top = seq_ref[0:Ld * B, :]
        out_ref[...] = (jnp.dot(y_top, dense_w_ref[...],
                                preferred_element_type=jnp.float32)
                        + dense_b_ref[...]).astype(out_ref.dtype)

    return kernel


# ----------------------------------------------------------------------------
# Parameter init (fused-gate layout, PyTorch-default-style uniform).
# ----------------------------------------------------------------------------
def init_gru_params(key, input_size, hidden, num_layer):
    """Wi: (Din, 3H), Wh: (H, 3H), bi/bh: (1, 3H); gate order along 3H is (r, z, n)."""
    params = []
    std = 1.0 / float(hidden) ** 0.5
    for l in range(num_layer):
        din = input_size if l == 0 else hidden
        key, k0, k1, k2, k3 = jax.random.split(key, 5)
        wi = jax.random.uniform(k0, (din, 3 * hidden), jnp.float32, -std, std)
        wh = jax.random.uniform(k1, (hidden, 3 * hidden), jnp.float32, -std, std)
        bi = jax.random.uniform(k2, (1, 3 * hidden), jnp.float32, -std, std)
        bh = jax.random.uniform(k3, (1, 3 * hidden), jnp.float32, -std, std)
        params.append((wi, wh, bi, bh))
    return params, key


# ----------------------------------------------------------------------------
# EncoderDecoder forward (training branch, GRU cell, dropout=0.0).
# ----------------------------------------------------------------------------
def encoder_decoder_forward(params, batch_x, batch_y, batch_x_time, batch_y_time):
    enc_params, dec_params, dense_w, dense_b = params
    B = batch_x.shape[0]
    H = dense_w.shape[0]
    dec_out = dense_w.shape[1]
    L = len(enc_params)

    # Tiny input concat + layout to time-major flattened rows (row index = t*B + b).
    x_enc = jnp.concatenate([batch_x, batch_x_time], axis=2)                   # (B, Lx, enc_in)
    x_dec = jnp.concatenate([batch_y[:, :-1, :], batch_y_time[:, :-1, :]], axis=2)
    Lx, enc_in = x_enc.shape[1], x_enc.shape[2]
    Ld, dec_in = x_dec.shape[1], x_dec.shape[2]
    x_enc2d = jnp.transpose(x_enc, (1, 0, 2)).reshape(Lx * B, enc_in)
    x_dec2d = jnp.transpose(x_dec, (1, 0, 2)).reshape(Ld * B, dec_in)

    # Split decoder layer-0 input weights into the x part and the context part so the
    # (Ld, B, dec_in + H) concat with the broadcast context is never materialized.
    dwi0, dwh0, dbi0, dbh0 = dec_params[0]
    wx0, wctx0 = dwi0[:dec_in, :], dwi0[dec_in:, :]

    flat_inputs = [x_enc2d, x_dec2d]
    for (wi, wh, bi, bh) in enc_params:
        flat_inputs += [wi, wh, bi, bh]
    flat_inputs += [wx0, wctx0, dwh0, dbi0, dbh0]
    for (wi, wh, bi, bh) in dec_params[1:]:
        flat_inputs += [wi, wh, bi, bh]
    flat_inputs += [dense_w, dense_b]

    kernel = build_fused_kernel(B=B, Lx=Lx, Ld=Ld, H=H, L=L)
    tmax = max(Lx, Ld)

    out2d = pl.pallas_call(
        kernel,
        out_shape=jax.ShapeDtypeStruct((Ld * B, dec_out), jnp.float32),
        grid_spec=pltpu.PrefetchScalarGridSpec(
            num_scalar_prefetch=0,
            grid=(1,),  # single invocation; the time loops live inside the kernel
            in_specs=[pl.BlockSpec(a.shape, _const_index_map(a.ndim)) for a in flat_inputs],
            out_specs=pl.BlockSpec((Ld * B, dec_out), _const_index_map(2)),
            scratch_shapes=[pltpu.VMEM((tmax * B, H), jnp.float32)],
        ),
        compiler_params=pltpu.CompilerParams(dimension_semantics=("arbitrary",)),
    )(*flat_inputs)

    # (Ld*B, dec_out) time-major rows -> (B, Ld, dec_out)
    return out2d.reshape(Ld, B, dec_out).transpose(1, 0, 2)


# ----------------------------------------------------------------------------
# Pure-JAX reference (same math, XLA-lowered) for a correctness check.
# ----------------------------------------------------------------------------
def _gru_layer_ref(x_tm, h0, wi, wh, bi, bh):
    H = h0.shape[-1]

    def step(h, x_t):
        gi = x_t @ wi + bi
        gh = h @ wh + bh
        r = jax.nn.sigmoid(gi[:, :H] + gh[:, :H])
        z = jax.nn.sigmoid(gi[:, H:2 * H] + gh[:, H:2 * H])
        n = jnp.tanh(gi[:, 2 * H:] + r * gh[:, 2 * H:])
        h_new = (1.0 - z) * n + z * h
        return h_new, h_new

    hT, ys = jax.lax.scan(step, h0, x_tm)
    return ys, hT


def encoder_decoder_reference(params, batch_x, batch_y, batch_x_time, batch_y_time):
    enc_params, dec_params, dense_w, dense_b = params
    B, H = batch_x.shape[0], dense_w.shape[0]
    x_enc = jnp.concatenate([batch_x, batch_x_time], axis=2).transpose(1, 0, 2)
    inp, finals = x_enc, []
    for (wi, wh, bi, bh) in enc_params:
        inp, hT = _gru_layer_ref(inp, jnp.zeros((B, H), jnp.float32), wi, wh, bi, bh)
        finals.append(hT)
    ctx = finals[-1]
    x_dec = jnp.concatenate([batch_y[:, :-1, :], batch_y_time[:, :-1, :]],
                            axis=2).transpose(1, 0, 2)
    Ld = x_dec.shape[0]
    inp = jnp.concatenate([x_dec, jnp.broadcast_to(ctx[None], (Ld, B, H))], axis=2)
    for l, (wi, wh, bi, bh) in enumerate(dec_params):
        inp, _ = _gru_layer_ref(inp, finals[l], wi, wh, bi, bh)
    out = inp @ dense_w + dense_b                                   # (Ld, B, dec_out)
    return out.transpose(1, 0, 2)


if __name__ == "__main__":
    # Small config consistent with the module:
    B, Lx, Ly = 2, 8, 5
    d_x, d_t = 3, 4            # data features / time features
    enc_in = d_x + d_t         # 7
    dec_in = d_x + d_t         # 7
    num_hidden = 32
    num_layer = 2
    dec_out = d_x              # 3

    key = jax.random.PRNGKey(0)
    enc_params, key = init_gru_params(key, enc_in, num_hidden, num_layer)
    dec_params, key = init_gru_params(key, dec_in + num_hidden, num_hidden, num_layer)
    key, kw, kb = jax.random.split(key, 3)
    std = 1.0 / float(num_hidden) ** 0.5
    dense_w = jax.random.uniform(kw, (num_hidden, dec_out), jnp.float32, -std, std)
    dense_b = jax.random.uniform(kb, (1, dec_out), jnp.float32, -std, std)
    params = (enc_params, dec_params, dense_w, dense_b)

    key, k1, k2, k3, k4 = jax.random.split(key, 5)
    batch_x = jax.random.normal(k1, (B, Lx, d_x), jnp.float32)
    batch_y = jax.random.normal(k2, (B, Ly, d_x), jnp.float32)
    batch_x_time = jax.random.normal(k3, (B, Lx, d_t), jnp.float32)
    batch_y_time = jax.random.normal(k4, (B, Ly, d_t), jnp.float32)

    fwd = jax.jit(encoder_decoder_forward)
    out = jax.block_until_ready(fwd(params, batch_x, batch_y, batch_x_time, batch_y_time))
    assert out.shape == (B, Ly - 1, dec_out), out.shape

    ref = jax.block_until_ready(
        encoder_decoder_reference(params, batch_x, batch_y, batch_x_time, batch_y_time))
    assert jnp.allclose(out, ref, atol=2e-2, rtol=2e-2), float(jnp.max(jnp.abs(out - ref)))

    print("KERNEL_OK")
</pallas_src>

<mosaic_0001>
module attributes {stable_mosaic.version = 11 : i64} {
  func.func @kernel(%arg0: i32, %arg1: memref<16x7xf32, #tpu.memory_space<vmem>>, %arg2: memref<8x7xf32, #tpu.memory_space<vmem>>, %arg3: memref<7x96xf32, #tpu.memory_space<vmem>>, %arg4: memref<32x96xf32, #tpu.memory_space<vmem>>, %arg5: memref<1x96xf32, #tpu.memory_space<vmem>>, %arg6: memref<1x96xf32, #tpu.memory_space<vmem>>, %arg7: memref<32x96xf32, #tpu.memory_space<vmem>>, %arg8: memref<32x96xf32, #tpu.memory_space<vmem>>, %arg9: memref<1x96xf32, #tpu.memory_space<vmem>>, %arg10: memref<1x96xf32, #tpu.memory_space<vmem>>, %arg11: memref<7x96xf32, #tpu.memory_space<vmem>>, %arg12: memref<32x96xf32, #tpu.memory_space<vmem>>, %arg13: memref<32x96xf32, #tpu.memory_space<vmem>>, %arg14: memref<1x96xf32, #tpu.memory_space<vmem>>, %arg15: memref<1x96xf32, #tpu.memory_space<vmem>>, %arg16: memref<32x96xf32, #tpu.memory_space<vmem>>, %arg17: memref<32x96xf32, #tpu.memory_space<vmem>>, %arg18: memref<1x96xf32, #tpu.memory_space<vmem>>, %arg19: memref<1x96xf32, #tpu.memory_space<vmem>>, %arg20: memref<32x3xf32, #tpu.memory_space<vmem>>, %arg21: memref<1x3xf32, #tpu.memory_space<vmem>>, %arg22: memref<8x3xf32, #tpu.memory_space<vmem>>, %arg23: memref<16x32xf32, #tpu.memory_space<vmem>>) attributes {dimension_semantics = [#tpu.dimension_semantics<arbitrary>], iteration_bounds = array<i64: 1>, scalar_prefetch = 0 : i64, scratch_operands = 1 : i64, tpu.core_type = #tpu.core_type<tc>, window_params = [{pipeline_mode = #tpu.pipeline_mode<synchronous>, transform_indices = @transform_0, window_bounds = array<i64: 16, 7>}, {pipeline_mode = #tpu.pipeline_mode<synchronous>, transform_indices = @transform_1, window_bounds = array<i64: 8, 7>}, {pipeline_mode = #tpu.pipeline_mode<synchronous>, transform_indices = @transform_2, window_bounds = array<i64: 7, 96>}, {pipeline_mode = #tpu.pipeline_mode<synchronous>, transform_indices = @transform_3, window_bounds = array<i64: 32, 96>}, {pipeline_mode = #tpu.pipeline_mode<synchronous>, transform_indices = @transform_4, window_bounds = array<i64: 1, 96>}, {pipeline_mode = #tpu.pipeline_mode<synchronous>, transform_indices = @transform_5, window_bounds = array<i64: 1, 96>}, {pipeline_mode = #tpu.pipeline_mode<synchronous>, transform_indices = @transform_6, window_bounds = array<i64: 32, 96>}, {pipeline_mode = #tpu.pipeline_mode<synchronous>, transform_indices = @transform_7, window_bounds = array<i64: 32, 96>}, {pipeline_mode = #tpu.pipeline_mode<synchronous>, transform_indices = @transform_8, window_bounds = array<i64: 1, 96>}, {pipeline_mode = #tpu.pipeline_mode<synchronous>, transform_indices = @transform_9, window_bounds = array<i64: 1, 96>}, {pipeline_mode = #tpu.pipeline_mode<synchronous>, transform_indices = @transform_10, window_bounds = array<i64: 7, 96>}, {pipeline_mode = #tpu.pipeline_mode<synchronous>, transform_indices = @transform_11, window_bounds = array<i64: 32, 96>}, {pipeline_mode = #tpu.pipeline_mode<synchronous>, transform_indices = @transform_12, window_bounds = array<i64: 32, 96>}, {pipeline_mode = #tpu.pipeline_mode<synchronous>, transform_indices = @transform_13, window_bounds = array<i64: 1, 96>}, {pipeline_mode = #tpu.pipeline_mode<synchronous>, transform_indices = @transform_14, window_bounds = array<i64: 1, 96>}, {pipeline_mode = #tpu.pipeline_mode<synchronous>, transform_indices = @transform_15, window_bounds = array<i64: 32, 96>}, {pipeline_mode = #tpu.pipeline_mode<synchronous>, transform_indices = @transform_16, window_bounds = array<i64: 32, 96>}, {pipeline_mode = #tpu.pipeline_mode<synchronous>, transform_indices = @transform_17, window_bounds = array<i64: 1, 96>}, {pipeline_mode = #tpu.pipeline_mode<synchronous>, transform_indices = @transform_18, window_bounds = array<i64: 1, 96>}, {pipeline_mode = #tpu.pipeline_mode<synchronous>, transform_indices = @transform_19, window_bounds = array<i64: 32, 3>}, {pipeline_mode = #tpu.pipeline_mode<synchronous>, transform_indices = @transform_20, window_bounds = array<i64: 1, 3>}, {pipeline_mode = #tpu.pipeline_mode<synchronous>, transform_indices = @transform_21, window_bounds = array<i64: 8, 3>}]} {
    %cst = arith.constant 0.000000e+00 : f32
    %0 = vector.broadcast %cst : f32 to vector<2x32xf32>
    %c0 = arith.constant 0 : index
    %c0_0 = arith.constant 0 : index
    %1 = vector.load %arg1[%c0, %c0_0] : memref<16x7xf32, #tpu.memory_space<vmem>>, vector<16x7xf32>
    %c0_1 = arith.constant 0 : index
    %c0_2 = arith.constant 0 : index
    %2 = vector.load %arg3[%c0_1, %c0_2] : memref<7x96xf32, #tpu.memory_space<vmem>>, vector<7x96xf32>
    %cst_3 = arith.constant dense<0.000000e+00> : vector<16x96xf32>
    %3 = tpu.matmul %1, %2, %cst_3 {dimension_numbers = #tpu.dot_dimension_numbers<[1], [0], [0], [1], [0, 0, 1, 1], [], []>} : vector<16x7xf32>, vector<7x96xf32>, vector<16x96xf32> -> vector<16x96xf32>
    %c0_4 = arith.constant 0 : index
    %c0_5 = arith.constant 0 : index
    %4 = vector.load %arg5[%c0_4, %c0_5] : memref<1x96xf32, #tpu.memory_space<vmem>>, vector<1x96xf32>
    %5 = vector.broadcast %4 : vector<1x96xf32> to vector<16x96xf32>
    %6 = arith.addf %3, %5 : vector<16x96xf32>
    %c0_6 = arith.constant 0 : index
    %c0_7 = arith.constant 0 : index
    %7 = vector.load %arg4[%c0_6, %c0_7] : memref<32x96xf32, #tpu.memory_space<vmem>>, vector<32x96xf32>
    %c0_8 = arith.constant 0 : index
    %c0_9 = arith.constant 0 : index
    %8 = vector.load %arg6[%c0_8, %c0_9] : memref<1x96xf32, #tpu.memory_space<vmem>>, vector<1x96xf32>
    %9 = vector.extract_strided_slice %6 {offsets = [0, 0], sizes = [2, 96], strides = [1, 1]} : vector<16x96xf32> to vector<2x96xf32>
    %cst_10 = arith.constant dense<0.000000e+00> : vector<2x96xf32>
    %10 = tpu.matmul %0, %7, %cst_10 {dimension_numbers = #tpu.dot_dimension_numbers<[1], [0], [0], [1], [0, 0, 1, 1], [], []>} : vector<2x32xf32>, vector<32x96xf32>, vector<2x96xf32> -> vector<2x96xf32>
    %11 = vector.broadcast %8 : vector<1x96xf32> to vector<2x96xf32>
    %12 = arith.addf %10, %11 : vector<2x96xf32>
    %13 = vector.extract_strided_slice %9 {offsets = [0, 0], sizes = [2, 32], strides = [1, 1]} : vector<2x96xf32> to vector<2x32xf32>
    %14 = vector.extract_strided_slice %12 {offsets = [0, 0], sizes = [2, 32], strides = [1, 1]} : vector<2x96xf32> to vector<2x32xf32>
    %15 = arith.addf %13, %14 : vector<2x32xf32>
    %16 = arith.negf %15 : vector<2x32xf32>
    %17 = math.exp %16 : vector<2x32xf32>
    %cst_11 = arith.constant 1.000000e+00 : f32
    %18 = vector.broadcast %cst_11 : f32 to vector<2x32xf32>
    %19 = arith.addf %18, %17 : vector<2x32xf32>
    %20 = arith.divf %18, %19 : vector<2x32xf32>
    %21 = vector.extract_strided_slice %9 {offsets = [0, 32], sizes = [2, 32], strides = [1, 1]} : vector<2x96xf32> to vector<2x32xf32>
    %22 = vector.extract_strided_slice %12 {offsets = [0, 32], sizes = [2, 32], strides = [1, 1]} : vector<2x96xf32> to vector<2x32xf32>
    %23 = arith.addf %21, %22 : vector<2x32xf32>
    %24 = arith.negf %23 : vector<2x32xf32>
    %25 = math.exp %24 : vector<2x32xf32>
    %cst_12 = arith.constant 1.000000e+00 : f32
    %26 = vector.broadcast %cst_12 : f32 to vector<2x32xf32>
    %27 = arith.addf %26, %25 : vector<2x32xf32>
    %28 = arith.divf %26, %27 : vector<2x32xf32>
    %29 = vector.extract_strided_slice %9 {offsets = [0, 64], sizes = [2, 32], strides = [1, 1]} : vector<2x96xf32> to vector<2x32xf32>
    %30 = vector.extract_strided_slice %12 {offsets = [0, 64], sizes = [2, 32], strides = [1, 1]} : vector<2x96xf32> to vector<2x32xf32>
    %31 = arith.mulf %20, %30 : vector<2x32xf32>
    %32 = arith.addf %29, %31 : vector<2x32xf32>
    %33 = math.tanh %32 : vector<2x32xf32>
    %cst_13 = arith.constant 1.000000e+00 : f32
    %34 = vector.broadcast %cst_13 : f32 to vector<2x32xf32>
    %35 = arith.subf %34, %28 : vector<2x32xf32>
    %36 = arith.mulf %35, %33 : vector<2x32xf32>
    %37 = arith.mulf %28, %0 : vector<2x32xf32>
    %38 = arith.addf %36, %37 : vector<2x32xf32>
    %c0_14 = arith.constant 0 : index
    %c0_15 = arith.constant 0 : index
    %39 = vector.load %arg23[%c0_14, %c0_15] : memref<16x32xf32, #tpu.memory_space<vmem>>, vector<2x32xf32>
    tpu.vector_store %arg23[%c0_14, %c0_15], %38 {strides = array<i32>} : memref<16x32xf32, #tpu.memory_space<vmem>>, vector<2x32xf32>,
    %40 = vector.extract_strided_slice %6 {offsets = [2, 0], sizes = [2, 96], strides = [1, 1]} : vector<16x96xf32> to vector<2x96xf32>
    %cst_16 = arith.constant dense<0.000000e+00> : vector<2x96xf32>
    %41 = tpu.matmul %38, %7, %cst_16 {dimension_numbers = #tpu.dot_dimension_numbers<[1], [0], [0], [1], [0, 0, 1, 1], [], []>} : vector<2x32xf32>, vector<32x96xf32>, vector<2x96xf32> -> vector<2x96xf32>
    %42 = vector.broadcast %8 : vector<1x96xf32> to vector<2x96xf32>
    %43 = arith.addf %41, %42 : vector<2x96xf32>
    %44 = vector.extract_strided_slice %40 {offsets = [0, 0], sizes = [2, 32], strides = [1, 1]} : vector<2x96xf32> to vector<2x32xf32>
    %45 = vector.extract_strided_slice %43 {offsets = [0, 0], sizes = [2, 32], strides = [1, 1]} : vector<2x96xf32> to vector<2x32xf32>
    %46 = arith.addf %44, %45 : vector<2x32xf32>
    %47 = arith.negf %46 : vector<2x32xf32>
    %48 = math.exp %47 : vector<2x32xf32>
    %cst_17 = arith.constant 1.000000e+00 : f32
    %49 = vector.broadcast %cst_17 : f32 to vector<2x32xf32>
    %50 = arith.addf %49, %48 : vector<2x32xf32>
    %51 = arith.divf %49, %50 : vector<2x32xf32>
    %52 = vector.extract_strided_slice %40 {offsets = [0, 32], sizes = [2, 32], strides = [1, 1]} : vector<2x96xf32> to vector<2x32xf32>
    %53 = vector.extract_strided_slice %43 {offsets = [0, 32], sizes = [2, 32], strides = [1, 1]} : vector<2x96xf32> to vector<2x32xf32>
    %54 = arith.addf %52, %53 : vector<2x32xf32>
    %55 = arith.negf %54 : vector<2x32xf32>
    %56 = math.exp %55 : vector<2x32xf32>
    %cst_18 = arith.constant 1.000000e+00 : f32
    %57 = vector.broadcast %cst_18 : f32 to vector<2x32xf32>
    %58 = arith.addf %57, %56 : vector<2x32xf32>
    %59 = arith.divf %57, %58 : vector<2x32xf32>
    %60 = vector.extract_strided_slice %40 {offsets = [0, 64], sizes = [2, 32], strides = [1, 1]} : vector<2x96xf32> to vector<2x32xf32>
    %61 = vector.extract_strided_slice %43 {offsets = [0, 64], sizes = [2, 32], strides = [1, 1]} : vector<2x96xf32> to vector<2x32xf32>
    %62 = arith.mulf %51, %61 : vector<2x32xf32>
    %63 = arith.addf %60, %62 : vector<2x32xf32>
    %64 = math.tanh %63 : vector<2x32xf32>
    %cst_19 = arith.constant 1.000000e+00 : f32
    %65 = vector.broadcast %cst_19 : f32 to vector<2x32xf32>
    %66 = arith.subf %65, %59 : vector<2x32xf32>
    %67 = arith.mulf %66, %64 : vector<2x32xf32>
    %68 = arith.mulf %59, %38 : vector<2x32xf32>
    %69 = arith.addf %67, %68 : vector<2x32xf32>
    %c2 = arith.constant 2 : index
    %c0_20 = arith.constant 0 : index
    %70 = vector.load %arg23[%c2, %c0_20] : memref<16x32xf32, #tpu.memory_space<vmem>>, vector<2x32xf32>
    tpu.vector_store %arg23[%c2, %c0_20], %69 {strides = array<i32>} : memref<16x32xf32, #tpu.memory_space<vmem>>, vector<2x32xf32>,
    %71 = vector.extract_strided_slice %6 {offsets = [4, 0], sizes = [2, 96], strides = [1, 1]} : vector<16x96xf32> to vector<2x96xf32>
    %cst_21 = arith.constant dense<0.000000e+00> : vector<2x96xf32>
    %72 = tpu.matmul %69, %7, %cst_21 {dimension_numbers = #tpu.dot_dimension_numbers<[1], [0], [0], [1], [0, 0, 1, 1], [], []>} : vector<2x32xf32>, vector<32x96xf32>, vector<2x96xf32> -> vector<2x96xf32>
    %73 = vector.broadcast %8 : vector<1x96xf32> to vector<2x96xf32>
    %74 = arith.addf %72, %73 : vector<2x96xf32>
    %75 = vector.extract_strided_slice %71 {offsets = [0, 0], sizes = [2, 32], strides = [1, 1]} : vector<2x96xf32> to vector<2x32xf32>
    %76 = vector.extract_strided_slice %74 {offsets = [0, 0], sizes = [2, 32], strides = [1, 1]} : vector<2x96xf32> to vector<2x32xf32>
    %77 = arith.addf %75, %76 : vector<2x32xf32>
    %78 = arith.negf %77 : vector<2x32xf32>
    %79 = math.exp %78 : vector<2x32xf32>
    %cst_22 = arith.constant 1.000000e+00 : f32
    %80 = vector.broadcast %cst_22 : f32 to vector<2x32xf32>
    %81 = arith.addf %80, %79 : vector<2x32xf32>
    %82 = arith.divf %80, %81 : vector<2x32xf32>
    %83 = vector.extract_strided_slice %71 {offsets = [0, 32], sizes = [2, 32], strides = [1, 1]} : vector<2x96xf32> to vector<2x32xf32>
    %84 = vector.extract_strided_slice %74 {offsets = [0, 32], sizes = [2, 32], strides = [1, 1]} : vector<2x96xf32> to vector<2x32xf32>
    %85 = arith.addf %83, %84 : vector<2x32xf32>
    %86 = arith.negf %85 : vector<2x32xf32>
    %87 = math.exp %86 : vector<2x32xf32>
    %cst_23 = arith.constant 1.000000e+00 : f32
    %88 = vector.broadcast %cst_23 : f32 to vector<2x32xf32>
    %89 = arith.addf %88, %87 : vector<2x32xf32>
    %90 = arith.divf %88, %89 : vector<2x32xf32>
    %91 = vector.extract_strided_slice %71 {offsets = [0, 64], sizes = [2, 32], strides = [1, 1]} : vector<2x96xf32> to vector<2x32xf32>
    %92 = vector.extract_strided_slice %74 {offsets = [0, 64], sizes = [2, 32], strides = [1, 1]} : vector<2x96xf32> to vector<2x32xf32>
    %93 = arith.mulf %82, %92 : vector<2x32xf32>
    %94 = arith.addf %91, %93 : vector<2x32xf32>
    %95 = math.tanh %94 : vector<2x32xf32>
    %cst_24 = arith.constant 1.000000e+00 : f32
    %96 = vector.broadcast %cst_24 : f32 to vector<2x32xf32>
    %97 = arith.subf %96, %90 : vector<2x32xf32>
    %98 = arith.mulf %97, %95 : vector<2x32xf32>
    %99 = arith.mulf %90, %69 : vector<2x32xf32>
    %100 = arith.addf %98, %99 : vector<2x32xf32>
    %c4 = arith.constant 4 : index
    %c0_25 = arith.constant 0 : index
    %101 = vector.load %arg23[%c4, %c0_25] : memref<16x32xf32, #tpu.memory_space<vmem>>, vector<2x32xf32>
    tpu.vector_store %arg23[%c4, %c0_25], %100 {strides = array<i32>} : memref<16x32xf32, #tpu.memory_space<vmem>>, vector<2x32xf32>,
    %102 = vector.extract_strided_slice %6 {offsets = [6, 0], sizes = [2, 96], strides = [1, 1]} : vector<16x96xf32> to vector<2x96xf32>
    %cst_26 = arith.constant dense<0.000000e+00> : vector<2x96xf32>
    %103 = tpu.matmul %100, %7, %cst_26 {dimension_numbers = #tpu.dot_dimension_numbers<[1], [0], [0], [1], [0, 0, 1, 1], [], []>} : vector<2x32xf32>, vector<32x96xf32>, vector<2x96xf32> -> vector<2x96xf32>
    %104 = vector.broadcast %8 : vector<1x96xf32> to vector<2x96xf32>
    %105 = arith.addf %103, %104 : vector<2x96xf32>
    %106 = vector.extract_strided_slice %102 {offsets = [0, 0], sizes = [2, 32], strides = [1, 1]} : vector<2x96xf32> to vector<2x32xf32>
    %107 = vector.extract_strided_slice %105 {offsets = [0, 0], sizes = [2, 32], strides = [1, 1]} : vector<2x96xf32> to vector<2x32xf32>
    %108 = arith.addf %106, %107 : vector<2x32xf32>
    %109 = arith.negf %108 : vector<2x32xf32>
    %110 = math.exp %109 : vector<2x32xf32>
    %cst_27 = arith.constant 1.000000e+00 : f32
    %111 = vector.broadcast %cst_27 : f32 to vector<2x32xf32>
    %112 = arith.addf %111, %110 : vector<2x32xf32>
    %113 = arith.divf %111, %112 : vector<2x32xf32>
    %114 = vector.extract_strided_slice %102 {offsets = [0, 32], sizes = [2, 32], strides = [1, 1]} : vector<2x96xf32> to vector<2x32xf32>
    %115 = vector.extract_strided_slice %105 {offsets = [0, 32], sizes = [2, 32], strides = [1, 1]} : vector<2x96xf32> to vector<2x32xf32>
    %116 = arith.addf %114, %115 : vector<2x32xf32>
    %117 = arith.negf %116 : vector<2x32xf32>
    %118 = math.exp %117 : vector<2x32xf32>
    %cst_28 = arith.constant 1.000000e+00 : f32
    %119 = vector.broadcast %cst_28 : f32 to vector<2x32xf32>
    %120 = arith.addf %119, %118 : vector<2x32xf32>
    %121 = arith.divf %119, %120 : vector<2x32xf32>
    %122 = vector.extract_strided_slice %102 {offsets = [0, 64], sizes = [2, 32], strides = [1, 1]} : vector<2x96xf32> to vector<2x32xf32>
    %123 = vector.extract_strided_slice %105 {offsets = [0, 64], sizes = [2, 32], strides = [1, 1]} : vector<2x96xf32> to vector<2x32xf32>
    %124 = arith.mulf %113, %123 : vector<2x32xf32>
    %125 = arith.addf %122, %124 : vector<2x32xf32>
    %126 = math.tanh %125 : vector<2x32xf32>
    %cst_29 = arith.constant 1.000000e+00 : f32
    %127 = vector.broadcast %cst_29 : f32 to vector<2x32xf32>
    %128 = arith.subf %127, %121 : vector<2x32xf32>
    %129 = arith.mulf %128, %126 : vector<2x32xf32>
    %130 = arith.mulf %121, %100 : vector<2x32xf32>
    %131 = arith.addf %129, %130 : vector<2x32xf32>
    %c6 = arith.constant 6 : index
    %c0_30 = arith.constant 0 : index
    %132 = vector.load %arg23[%c6, %c0_30] : memref<16x32xf32, #tpu.memory_space<vmem>>, vector<2x32xf32>
    tpu.vector_store %arg23[%c6, %c0_30], %131 {strides = array<i32>} : memref<16x32xf32, #tpu.memory_space<vmem>>, vector<2x32xf32>,
    %133 = vector.extract_strided_slice %6 {offsets = [8, 0], sizes = [2, 96], strides = [1, 1]} : vector<16x96xf32> to vector<2x96xf32>
    %cst_31 = arith.constant dense<0.000000e+00> : vector<2x96xf32>
    %134 = tpu.matmul %131, %7, %cst_31 {dimension_numbers = #tpu.dot_dimension_numbers<[1], [0], [0], [1], [0, 0, 1, 1], [], []>} : vector<2x32xf32>, vector<32x96xf32>, vector<2x96xf32> -> vector<2x96xf32>
    %135 = vector.broadcast %8 : vector<1x96xf32> to vector<2x96xf32>
    %136 = arith.addf %134, %135 : vector<2x96xf32>
    %137 = vector.extract_strided_slice %133 {offsets = [0, 0], sizes = [2, 32], strides = [1, 1]} : vector<2x96xf32> to vector<2x32xf32>
    %138 = vector.extract_strided_slice %136 {offsets = [0, 0], sizes = [2, 32], strides = [1, 1]} : vector<2x96xf32> to vector<2x32xf32>
    %139 = arith.addf %137, %138 : vector<2x32xf32>
    %140 = arith.negf %139 : vector<2x32xf32>
    %141 = math.exp %140 : vector<2x32xf32>
    %cst_32 = arith.constant 1.000000e+00 : f32
    %142 = vector.broadcast %cst_32 : f32 to vector<2x32xf32>
    %143 = arith.addf %142, %141 : vector<2x32xf32>
    %144 = arith.divf %142, %143 : vector<2x32xf32>
    %145 = vector.extract_strided_slice %133 {offsets = [0, 32], sizes = [2, 32], strides = [1, 1]} : vector<2x96xf32> to vector<2x32xf32>
    %146 = vector.extract_strided_slice %136 {offsets = [0, 32], sizes = [2, 32], strides = [1, 1]} : vector<2x96xf32> to vector<2x32xf32>
    %147 = arith.addf %145, %146 : vector<2x32xf32>
    %148 = arith.negf %147 : vector<2x32xf32>
    %149 = math.exp %148 : vector<2x32xf32>
    %cst_33 = arith.constant 1.000000e+00 : f32
    %150 = vector.broadcast %cst_33 : f32 to vector<2x32xf32>
    %151 = arith.addf %150, %149 : vector<2x32xf32>
    %152 = arith.divf %150, %151 : vector<2x32xf32>
    %153 = vector.extract_strided_slice %133 {offsets = [0, 64], sizes = [2, 32], strides = [1, 1]} : vector<2x96xf32> to vector<2x32xf32>
    %154 = vector.extract_strided_slice %136 {offsets = [0, 64], sizes = [2, 32], strides = [1, 1]} : vector<2x96xf32> to vector<2x32xf32>
    %155 = arith.mulf %144, %154 : vector<2x32xf32>
    %156 = arith.addf %153, %155 : vector<2x32xf32>
    %157 = math.tanh %156 : vector<2x32xf32>
    %cst_34 = arith.constant 1.000000e+00 : f32
    %158 = vector.broadcast %cst_34 : f32 to vector<2x32xf32>
    %159 = arith.subf %158, %152 : vector<2x32xf32>
    %160 = arith.mulf %159, %157 : vector<2x32xf32>
    %161 = arith.mulf %152, %131 : vector<2x32xf32>
    %162 = arith.addf %160, %161 : vector<2x32xf32>
    %c8 = arith.constant 8 : index
    %c0_35 = arith.constant 0 : index
    %163 = vector.load %arg23[%c8, %c0_35] : memref<16x32xf32, #tpu.memory_space<vmem>>, vector<2x32xf32>
    tpu.vector_store %arg23[%c8, %c0_35], %162 {strides = array<i32>} : memref<16x32xf32, #tpu.memory_space<vmem>>, vector<2x32xf32>,
    %164 = vector.extract_strided_slice %6 {offsets = [10, 0], sizes = [2, 96], strides = [1, 1]} : vector<16x96xf32> to vector<2x96xf32>
    %cst_36 = arith.constant dense<0.000000e+00> : vector<2x96xf32>
    %165 = tpu.matmul %162, %7, %cst_36 {dimension_numbers = #tpu.dot_dimension_numbers<[1], [0], [0], [1], [0, 0, 1, 1], [], []>} : vector<2x32xf32>, vector<32x96xf32>, vector<2x96xf32> -> vector<2x96xf32>
    %166 = vector.broadcast %8 : vector<1x96xf32> to vector<2x96xf32>
    %167 = arith.addf %165, %166 : vector<2x96xf32>
    %168 = vector.extract_strided_slice %164 {offsets = [0, 0], sizes = [2, 32], strides = [1, 1]} : vector<2x96xf32> to vector<2x32xf32>
    %169 = vector.extract_strided_slice %167 {offsets = [0, 0], sizes = [2, 32], strides = [1, 1]} : vector<2x96xf32> to vector<2x32xf32>
    %170 = arith.addf %168, %169 : vector<2x32xf32>
    %171 = arith.negf %170 : vector<2x32xf32>
    %172 = math.exp %171 : vector<2x32xf32>
    %cst_37 = arith.constant 1.000000e+00 : f32
    %173 = vector.broadcast %cst_37 : f32 to vector<2x32xf32>
    %174 = arith.addf %173, %172 : vector<2x32xf32>
    %175 = arith.divf %173, %174 : vector<2x32xf32>
    %176 = vector.extract_strided_slice %164 {offsets = [0, 32], sizes = [2, 32], strides = [1, 1]} : vector<2x96xf32> to vector<2x32xf32>
    %177 = vector.extract_strided_slice %167 {offsets = [0, 32], sizes = [2, 32], strides = [1, 1]} : vector<2x96xf32> to vector<2x32xf32>
    %178 = arith.addf %176, %177 : vector<2x32xf32>
    %179 = arith.negf %178 : vector<2x32xf32>
    %180 = math.exp %179 : vector<2x32xf32>
    %cst_38 = arith.constant 1.000000e+00 : f32
    %181 = vector.broadcast %cst_38 : f32 to vector<2x32xf32>
    %182 = arith.addf %181, %180 : vector<2x32xf32>
    %183 = arith.divf %181, %182 : vector<2x32xf32>
    %184 = vector.extract_strided_slice %164 {offsets = [0, 64], sizes = [2, 32], strides = [1, 1]} : vector<2x96xf32> to vector<2x32xf32>
    %185 = vector.extract_strided_slice %167 {offsets = [0, 64], sizes = [2, 32], strides = [1, 1]} : vector<2x96xf32> to vector<2x32xf32>
    %186 = arith.mulf %175, %185 : vector<2x32xf32>
    %187 = arith.addf %184, %186 : vector<2x32xf32>
    %188 = math.tanh %187 : vector<2x32xf32>
    %cst_39 = arith.constant 1.000000e+00 : f32
    %189 = vector.broadcast %cst_39 : f32 to vector<2x32xf32>
    %190 = arith.subf %189, %183 : vector<2x32xf32>
    %191 = arith.mulf %190, %188 : vector<2x32xf32>
    %192 = arith.mulf %183, %162 : vector<2x32xf32>
    %193 = arith.addf %191, %192 : vector<2x32xf32>
    %c10 = arith.constant 10 : index
    %c0_40 = arith.constant 0 : index
    %194 = vector.load %arg23[%c10, %c0_40] : memref<16x32xf32, #tpu.memory_space<vmem>>, vector<2x32xf32>
    tpu.vector_store %arg23[%c10, %c0_40], %193 {strides = array<i32>} : memref<16x32xf32, #tpu.memory_space<vmem>>, vector<2x32xf32>,
    %195 = vector.extract_strided_slice %6 {offsets = [12, 0], sizes = [2, 96], strides = [1, 1]} : vector<16x96xf32> to vector<2x96xf32>
    %cst_41 = arith.constant dense<0.000000e+00> : vector<2x96xf32>
    %196 = tpu.matmul %193, %7, %cst_41 {dimension_numbers = #tpu.dot_dimension_numbers<[1], [0], [0], [1], [0, 0, 1, 1], [], []>} : vector<2x32xf32>, vector<32x96xf32>, vector<2x96xf32> -> vector<2x96xf32>
    %197 = vector.broadcast %8 : vector<1x96xf32> to vector<2x96xf32>
    %198 = arith.addf %196, %197 : vector<2x96xf32>
    %199 = vector.extract_strided_slice %195 {offsets = [0, 0], sizes = [2, 32], strides = [1, 1]} : vector<2x96xf32> to vector<2x32xf32>
    %200 = vector.extract_strided_slice %198 {offsets = [0, 0], sizes = [2, 32], strides = [1, 1]} : vector<2x96xf32> to vector<2x32xf32>
    %201 = arith.addf %199, %200 : vector<2x32xf32>
    %202 = arith.negf %201 : vector<2x32xf32>
    %203 = math.exp %202 : vector<2x32xf32>
    %cst_42 = arith.constant 1.000000e+00 : f32
    %204 = vector.broadcast %cst_42 : f32 to vector<2x32xf32>
    %205 = arith.addf %204, %203 : vector<2x32xf32>
    %206 = arith.divf %204, %205 : vector<2x32xf32>
    %207 = vector.extract_strided_slice %195 {offsets = [0, 32], sizes = [2, 32], strides = [1, 1]} : vector<2x96xf32> to vector<2x32xf32>
    %208 = vector.extract_strided_slice %198 {offsets = [0, 32], sizes = [2, 32], strides = [1, 1]} : vector<2x96xf32> to vector<2x32xf32>
    %209 = arith.addf %207, %208 : vector<2x32xf32>
    %210 = arith.negf %209 : vector<2x32xf32>
    %211 = math.exp %210 : vector<2x32xf32>
    %cst_43 = arith.constant 1.000000e+00 : f32
    %212 = vector.broadcast %cst_43 : f32 to vector<2x32xf32>
    %213 = arith.addf %212, %211 : vector<2x32xf32>
    %214 = arith.divf %212, %213 : vector<2x32xf32>
    %215 = vector.extract_strided_slice %195 {offsets = [0, 64], sizes = [2, 32], strides = [1, 1]} : vector<2x96xf32> to vector<2x32xf32>
    %216 = vector.extract_strided_slice %198 {offsets = [0, 64], sizes = [2, 32], strides = [1, 1]} : vector<2x96xf32> to vector<2x32xf32>
    %217 = arith.mulf %206, %216 : vector<2x32xf32>
    %218 = arith.addf %215, %217 : vector<2x32xf32>
    %219 = math.tanh %218 : vector<2x32xf32>
    %cst_44 = arith.constant 1.000000e+00 : f32
    %220 = vector.broadcast %cst_44 : f32 to vector<2x32xf32>
    %221 = arith.subf %220, %214 : vector<2x32xf32>
    %222 = arith.mulf %221, %219 : vector<2x32xf32>
    %223 = arith.mulf %214, %193 : vector<2x32xf32>
    %224 = arith.addf %222, %223 : vector<2x32xf32>
    %c12 = arith.constant 12 : index
    %c0_45 = arith.constant 0 : index
    %225 = vector.load %arg23[%c12, %c0_45] : memref<16x32xf32, #tpu.memory_space<vmem>>, vector<2x32xf32>
    tpu.vector_store %arg23[%c12, %c0_45], %224 {strides = array<i32>} : memref<16x32xf32, #tpu.memory_space<vmem>>, vector<2x32xf32>,
    %226 = vector.extract_strided_slice %6 {offsets = [14, 0], sizes = [2, 96], strides = [1, 1]} : vector<16x96xf32> to vector<2x96xf32>
    %cst_46 = arith.constant dense<0.000000e+00> : vector<2x96xf32>
    %227 = tpu.matmul %224, %7, %cst_46 {dimension_numbers = #tpu.dot_dimension_numbers<[1], [0], [0], [1], [0, 0, 1, 1], [], []>} : vector<2x32xf32>, vector<32x96xf32>, vector<2x96xf32> -> vector<2x96xf32>
    %228 = vector.broadcast %8 : vector<1x96xf32> to vector<2x96xf32>
    %229 = arith.addf %227, %228 : vector<2x96xf32>
    %230 = vector.extract_strided_slice %226 {offsets = [0, 0], sizes = [2, 32], strides = [1, 1]} : vector<2x96xf32> to vector<2x32xf32>
    %231 = vector.extract_strided_slice %229 {offsets = [0, 0], sizes = [2, 32], strides = [1, 1]} : vector<2x96xf32> to vector<2x32xf32>
    %232 = arith.addf %230, %231 : vector<2x32xf32>
    %233 = arith.negf %232 : vector<2x32xf32>
    %234 = math.exp %233 : vector<2x32xf32>
    %cst_47 = arith.constant 1.000000e+00 : f32
    %235 = vector.broadcast %cst_47 : f32 to vector<2x32xf32>
    %236 = arith.addf %235, %234 : vector<2x32xf32>
    %237 = arith.divf %235, %236 : vector<2x32xf32>
    %238 = vector.extract_strided_slice %226 {offsets = [0, 32], sizes = [2, 32], strides = [1, 1]} : vector<2x96xf32> to vector<2x32xf32>
    %239 = vector.extract_strided_slice %229 {offsets = [0, 32], sizes = [2, 32], strides = [1, 1]} : vector<2x96xf32> to vector<2x32xf32>
    %240 = arith.addf %238, %239 : vector<2x32xf32>
    %241 = arith.negf %240 : vector<2x32xf32>
    %242 = math.exp %241 : vector<2x32xf32>
    %cst_48 = arith.constant 1.000000e+00 : f32
    %243 = vector.broadcast %cst_48 : f32 to vector<2x32xf32>
    %244 = arith.addf %243, %242 : vector<2x32xf32>
    %245 = arith.divf %243, %244 : vector<2x32xf32>
    %246 = vector.extract_strided_slice %226 {offsets = [0, 64], sizes = [2, 32], strides = [1, 1]} : vector<2x96xf32> to vector<2x32xf32>
    %247 = vector.extract_strided_slice %229 {offsets = [0, 64], sizes = [2, 32], strides = [1, 1]} : vector<2x96xf32> to vector<2x32xf32>
    %248 = arith.mulf %237, %247 : vector<2x32xf32>
    %249 = arith.addf %246, %248 : vector<2x32xf32>
    %250 = math.tanh %249 : vector<2x32xf32>
    %cst_49 = arith.constant 1.000000e+00 : f32
    %251 = vector.broadcast %cst_49 : f32 to vector<2x32xf32>
    %252 = arith.subf %251, %245 : vector<2x32xf32>
    %253 = arith.mulf %252, %250 : vector<2x32xf32>
    %254 = arith.mulf %245, %224 : vector<2x32xf32>
    %255 = arith.addf %253, %254 : vector<2x32xf32>
    %c14 = arith.constant 14 : index
    %c0_50 = arith.constant 0 : index
    %256 = vector.load %arg23[%c14, %c0_50] : memref<16x32xf32, #tpu.memory_space<vmem>>, vector<2x32xf32>
    tpu.vector_store %arg23[%c14, %c0_50], %255 {strides = array<i32>} : memref<16x32xf32, #tpu.memory_space<vmem>>, vector<2x32xf32>,
    %c0_51 = arith.constant 0 : index
    %c0_52 = arith.constant 0 : index
    %257 = vector.load %arg23[%c0_51, %c0_52] : memref<16x32xf32, #tpu.memory_space<vmem>>, vector<16x32xf32>
    %c0_53 = arith.constant 0 : index
    %c0_54 = arith.constant 0 : index
    %258 = vector.load %arg7[%c0_53, %c0_54] : memref<32x96xf32, #tpu.memory_space<vmem>>, vector<32x96xf32>
    %cst_55 = arith.constant dense<0.000000e+00> : vector<16x96xf32>
    %259 = tpu.matmul %257, %258, %cst_55 {dimension_numbers = #tpu.dot_dimension_numbers<[1], [0], [0], [1], [0, 0, 1, 1], [], []>} : vector<16x32xf32>, vector<32x96xf32>, vector<16x96xf32> -> vector<16x96xf32>
    %c0_56 = arith.constant 0 : index
    %c0_57 = arith.constant 0 : index
    %260 = vector.load %arg9[%c0_56, %c0_57] : memref<1x96xf32, #tpu.memory_space<vmem>>, vector<1x96xf32>
    %261 = vector.broadcast %260 : vector<1x96xf32> to vector<16x96xf32>
    %262 = arith.addf %259, %261 : vector<16x96xf32>
    %c0_58 = arith.constant 0 : index
    %c0_59 = arith.constant 0 : index
    %263 = vector.load %arg8[%c0_58, %c0_59] : memref<32x96xf32, #tpu.memory_space<vmem>>, vector<32x96xf32>
    %c0_60 = arith.constant 0 : index
    %c0_61 = arith.constant 0 : index
    %264 = vector.load %arg10[%c0_60, %c0_61] : memref<1x96xf32, #tpu.memory_space<vmem>>, vector<1x96xf32>
    %265 = vector.extract_strided_slice %262 {offsets = [0, 0], sizes = [2, 96], strides = [1, 1]} : vector<16x96xf32> to vector<2x96xf32>
    %cst_62 = arith.constant dense<0.000000e+00> : vector<2x96xf32>
    %266 = tpu.matmul %0, %263, %cst_62 {dimension_numbers = #tpu.dot_dimension_numbers<[1], [0], [0], [1], [0, 0, 1, 1], [], []>} : vector<2x32xf32>, vector<32x96xf32>, vector<2x96xf32> -> vector<2x96xf32>
    %267 = vector.broadcast %264 : vector<1x96xf32> to vector<2x96xf32>
    %268 = arith.addf %266, %267 : vector<2x96xf32>
    %269 = vector.extract_strided_slice %265 {offsets = [0, 0], sizes = [2, 32], strides = [1, 1]} : vector<2x96xf32> to vector<2x32xf32>
    %270 = vector.extract_strided_slice %268 {offsets = [0, 0], sizes = [2, 32], strides = [1, 1]} : vector<2x96xf32> to vector<2x32xf32>
    %271 = arith.addf %269, %270 : vector<2x32xf32>
    %272 = arith.negf %271 : vector<2x32xf32>
    %273 = math.exp %272 : vector<2x32xf32>
    %cst_63 = arith.constant 1.000000e+00 : f32
    %274 = vector.broadcast %cst_63 : f32 to vector<2x32xf32>
    %275 = arith.addf %274, %273 : vector<2x32xf32>
    %276 = arith.divf %274, %275 : vector<2x32xf32>
    %277 = vector.extract_strided_slice %265 {offsets = [0, 32], sizes = [2, 32], strides = [1, 1]} : vector<2x96xf32> to vector<2x32xf32>
    %278 = vector.extract_strided_slice %268 {offsets = [0, 32], sizes = [2, 32], strides = [1, 1]} : vector<2x96xf32> to vector<2x32xf32>
    %279 = arith.addf %277, %278 : vector<2x32xf32>
    %280 = arith.negf %279 : vector<2x32xf32>
    %281 = math.exp %280 : vector<2x32xf32>
    %cst_64 = arith.constant 1.000000e+00 : f32
    %282 = vector.broadcast %cst_64 : f32 to vector<2x32xf32>
    %283 = arith.addf %282, %281 : vector<2x32xf32>
    %284 = arith.divf %282, %283 : vector<2x32xf32>
    %285 = vector.extract_strided_slice %265 {offsets = [0, 64], sizes = [2, 32], strides = [1, 1]} : vector<2x96xf32> to vector<2x32xf32>
    %286 = vector.extract_strided_slice %268 {offsets = [0, 64], sizes = [2, 32], strides = [1, 1]} : vector<2x96xf32> to vector<2x32xf32>
    %287 = arith.mulf %276, %286 : vector<2x32xf32>
    %288 = arith.addf %285, %287 : vector<2x32xf32>
    %289 = math.tanh %288 : vector<2x32xf32>
    %cst_65 = arith.constant 1.000000e+00 : f32
    %290 = vector.broadcast %cst_65 : f32 to vector<2x32xf32>
    %291 = arith.subf %290, %284 : vector<2x32xf32>
    %292 = arith.mulf %291, %289 : vector<2x32xf32>
    %293 = arith.mulf %284, %0 : vector<2x32xf32>
    %294 = arith.addf %292, %293 : vector<2x32xf32>
    %c0_66 = arith.constant 0 : index
    %c0_67 = arith.constant 0 : index
    %295 = vector.load %arg23[%c0_66, %c0_67] : memref<16x32xf32, #tpu.memory_space<vmem>>, vector<2x32xf32>
    tpu.vector_store %arg23[%c0_66, %c0_67], %294 {strides = array<i32>} : memref<16x32xf32, #tpu.memory_space<vmem>>, vector<2x32xf32>,
    %296 = vector.extract_strided_slice %262 {offsets = [2, 0], sizes = [2, 96], strides = [1, 1]} : vector<16x96xf32> to vector<2x96xf32>
    %cst_68 = arith.constant dense<0.000000e+00> : vector<2x96xf32>
    %297 = tpu.matmul %294, %263, %cst_68 {dimension_numbers = #tpu.dot_dimension_numbers<[1], [0], [0], [1], [0, 0, 1, 1], [], []>} : vector<2x32xf32>, vector<32x96xf32>, vector<2x96xf32> -> vector<2x96xf32>
    %298 = vector.broadcast %264 : vector<1x96xf32> to vector<2x96xf32>
    %299 = arith.addf %297, %298 : vector<2x96xf32>
    %300 = vector.extract_strided_slice %296 {offsets = [0, 0], sizes = [2, 32], strides = [1, 1]} : vector<2x96xf32> to vector<2x32xf32>
    %301 = vector.extract_strided_slice %299 {offsets = [0, 0], sizes = [2, 32], strides = [1, 1]} : vector<2x96xf32> to vector<2x32xf32>
    %302 = arith.addf %300, %301 : vector<2x32xf32>
    %303 = arith.negf %302 : vector<2x32xf32>
    %304 = math.exp %303 : vector<2x32xf32>
    %cst_69 = arith.constant 1.000000e+00 : f32
    %305 = vector.broadcast %cst_69 : f32 to vector<2x32xf32>
    %306 = arith.addf %305, %304 : vector<2x32xf32>
    %307 = arith.divf %305, %306 : vector<2x32xf32>
    %308 = vector.extract_strided_slice %296 {offsets = [0, 32], sizes = [2, 32], strides = [1, 1]} : vector<2x96xf32> to vector<2x32xf32>
    %309 = vector.extract_strided_slice %299 {offsets = [0, 32], sizes = [2, 32], strides = [1, 1]} : vector<2x96xf32> to vector<2x32xf32>
    %310 = arith.addf %308, %309 : vector<2x32xf32>
    %311 = arith.negf %310 : vector<2x32xf32>
    %312 = math.exp %311 : vector<2x32xf32>
    %cst_70 = arith.constant 1.000000e+00 : f32
    %313 = vector.broadcast %cst_70 : f32 to vector<2x32xf32>
    %314 = arith.addf %313, %312 : vector<2x32xf32>
    %315 = arith.divf %313, %314 : vector<2x32xf32>
    %316 = vector.extract_strided_slice %296 {offsets = [0, 64], sizes = [2, 32], strides = [1, 1]} : vector<2x96xf32> to vector<2x32xf32>
    %317 = vector.extract_strided_slice %299 {offsets = [0, 64], sizes = [2, 32], strides = [1, 1]} : vector<2x96xf32> to vector<2x32xf32>
    %318 = arith.mulf %307, %317 : vector<2x32xf32>
    %319 = arith.addf %316, %318 : vector<2x32xf32>
    %320 = math.tanh %319 : vector<2x32xf32>
    %cst_71 = arith.constant 1.000000e+00 : f32
    %321 = vector.broadcast %cst_71 : f32 to vector<2x32xf32>
    %322 = arith.subf %321, %315 : vector<2x32xf32>
    %323 = arith.mulf %322, %320 : vector<2x32xf32>
    %324 = arith.mulf %315, %294 : vector<2x32xf32>
    %325 = arith.addf %323, %324 : vector<2x32xf32>
    %c2_72 = arith.constant 2 : index
    %c0_73 = arith.constant 0 : index
    %326 = vector.load %arg23[%c2_72, %c0_73] : memref<16x32xf32, #tpu.memory_space<vmem>>, vector<2x32xf32>
    tpu.vector_store %arg23[%c2_72, %c0_73], %325 {strides = array<i32>} : memref<16x32xf32, #tpu.memory_space<vmem>>, vector<2x32xf32>,
    %327 = vector.extract_strided_slice %262 {offsets = [4, 0], sizes = [2, 96], strides = [1, 1]} : vector<16x96xf32> to vector<2x96xf32>
    %cst_74 = arith.constant dense<0.000000e+00> : vector<2x96xf32>
    %328 = tpu.matmul %325, %263, %cst_74 {dimension_numbers = #tpu.dot_dimension_numbers<[1], [0], [0], [1], [0, 0, 1, 1], [], []>} : vector<2x32xf32>, vector<32x96xf32>, vector<2x96xf32> -> vector<2x96xf32>
    %329 = vector.broadcast %264 : vector<1x96xf32> to vector<2x96xf32>
    %330 = arith.addf %328, %329 : vector<2x96xf32>
    %331 = vector.extract_strided_slice %327 {offsets = [0, 0], sizes = [2, 32], strides = [1, 1]} : vector<2x96xf32> to vector<2x32xf32>
    %332 = vector.extract_strided_slice %330 {offsets = [0, 0], sizes = [2, 32], strides = [1, 1]} : vector<2x96xf32> to vector<2x32xf32>
    %333 = arith.addf %331, %332 : vector<2x32xf32>
    %334 = arith.negf %333 : vector<2x32xf32>
    %335 = math.exp %334 : vector<2x32xf32>
    %cst_75 = arith.constant 1.000000e+00 : f32
    %336 = vector.broadcast %cst_75 : f32 to vector<2x32xf32>
    %337 = arith.addf %336, %335 : vector<2x32xf32>
    %338 = arith.divf %336, %337 : vector<2x32xf32>
    %339 = vector.extract_strided_slice %327 {offsets = [0, 32], sizes = [2, 32], strides = [1, 1]} : vector<2x96xf32> to vector<2x32xf32>
    %340 = vector.extract_strided_slice %330 {offsets = [0, 32], sizes = [2, 32], strides = [1, 1]} : vector<2x96xf32> to vector<2x32xf32>
    %341 = arith.addf %339, %340 : vector<2x32xf32>
    %342 = arith.negf %341 : vector<2x32xf32>
    %343 = math.exp %342 : vector<2x32xf32>
    %cst_76 = arith.constant 1.000000e+00 : f32
    %344 = vector.broadcast %cst_76 : f32 to vector<2x32xf32>
    %345 = arith.addf %344, %343 : vector<2x32xf32>
    %346 = arith.divf %344, %345 : vector<2x32xf32>
    %347 = vector.extract_strided_slice %327 {offsets = [0, 64], sizes = [2, 32], strides = [1, 1]} : vector<2x96xf32> to vector<2x32xf32>
    %348 = vector.extract_strided_slice %330 {offsets = [0, 64], sizes = [2, 32], strides = [1, 1]} : vector<2x96xf32> to vector<2x32xf32>
    %349 = arith.mulf %338, %348 : vector<2x32xf32>
    %350 = arith.addf %347, %349 : vector<2x32xf32>
    %351 = math.tanh %350 : vector<2x32xf32>
    %cst_77 = arith.constant 1.000000e+00 : f32
    %352 = vector.broadcast %cst_77 : f32 to vector<2x32xf32>
    %353 = arith.subf %352, %346 : vector<2x32xf32>
    %354 = arith.mulf %353, %351 : vector<2x32xf32>
    %355 = arith.mulf %346, %325 : vector<2x32xf32>
    %356 = arith.addf %354, %355 : vector<2x32xf32>
    %c4_78 = arith.constant 4 : index
    %c0_79 = arith.constant 0 : index
    %357 = vector.load %arg23[%c4_78, %c0_79] : memref<16x32xf32, #tpu.memory_space<vmem>>, vector<2x32xf32>
    tpu.vector_store %arg23[%c4_78, %c0_79], %356 {strides = array<i32>} : memref<16x32xf32, #tpu.memory_space<vmem>>, vector<2x32xf32>,
    %358 = vector.extract_strided_slice %262 {offsets = [6, 0], sizes = [2, 96], strides = [1, 1]} : vector<16x96xf32> to vector<2x96xf32>
    %cst_80 = arith.constant dense<0.000000e+00> : vector<2x96xf32>
    %359 = tpu.matmul %356, %263, %cst_80 {dimension_numbers = #tpu.dot_dimension_numbers<[1], [0], [0], [1], [0, 0, 1, 1], [], []>} : vector<2x32xf32>, vector<32x96xf32>, vector<2x96xf32> -> vector<2x96xf32>
    %360 = vector.broadcast %264 : vector<1x96xf32> to vector<2x96xf32>
    %361 = arith.addf %359, %360 : vector<2x96xf32>
    %362 = vector.extract_strided_slice %358 {offsets = [0, 0], sizes = [2, 32], strides = [1, 1]} : vector<2x96xf32> to vector<2x32xf32>
    %363 = vector.extract_strided_slice %361 {offsets = [0, 0], sizes = [2, 32], strides = [1, 1]} : vector<2x96xf32> to vector<2x32xf32>
    %364 = arith.addf %362, %363 : vector<2x32xf32>
    %365 = arith.negf %364 : vector<2x32xf32>
    %366 = math.exp %365 : vector<2x32xf32>
    %cst_81 = arith.constant 1.000000e+00 : f32
    %367 = vector.broadcast %cst_81 : f32 to vector<2x32xf32>
    %368 = arith.addf %367, %366 : vector<2x32xf32>
    %369 = arith.divf %367, %368 : vector<2x32xf32>
    %370 = vector.extract_strided_slice %358 {offsets = [0, 32], sizes = [2, 32], strides = [1, 1]} : vector<2x96xf32> to vector<2x32xf32>
    %371 = vector.extract_strided_slice %361 {offsets = [0, 32], sizes = [2, 32], strides = [1, 1]} : vector<2x96xf32> to vector<2x32xf32>
    %372 = arith.addf %370, %371 : vector<2x32xf32>
    %373 = arith.negf %372 : vector<2x32xf32>
    %374 = math.exp %373 : vector<2x32xf32>
    %cst_82 = arith.constant 1.000000e+00 : f32
    %375 = vector.broadcast %cst_82 : f32 to vector<2x32xf32>
    %376 = arith.addf %375, %374 : vector<2x32xf32>
    %377 = arith.divf %375, %376 : vector<2x32xf32>
    %378 = vector.extract_strided_slice %358 {offsets = [0, 64], sizes = [2, 32], strides = [1, 1]} : vector<2x96xf32> to vector<2x32xf32>
    %379 = vector.extract_strided_slice %361 {offsets = [0, 64], sizes = [2, 32], strides = [1, 1]} : vector<2x96xf32> to vector<2x32xf32>
    %380 = arith.mulf %369, %379 : vector<2x32xf32>
    %381 = arith.addf %378, %380 : vector<2x32xf32>
    %382 = math.tanh %381 : vector<2x32xf32>
    %cst_83 = arith.constant 1.000000e+00 : f32
    %383 = vector.broadcast %cst_83 : f32 to vector<2x32xf32>
    %384 = arith.subf %383, %377 : vector<2x32xf32>
    %385 = arith.mulf %384, %382 : vector<2x32xf32>
    %386 = arith.mulf %377, %356 : vector<2x32xf32>
    %387 = arith.addf %385, %386 : vector<2x32xf32>
    %c6_84 = arith.constant 6 : index
    %c0_85 = arith.constant 0 : index
    %388 = vector.load %arg23[%c6_84, %c0_85] : memref<16x32xf32, #tpu.memory_space<vmem>>, vector<2x32xf32>
    tpu.vector_store %arg23[%c6_84, %c0_85], %387 {strides = array<i32>} : memref<16x32xf32, #tpu.memory_space<vmem>>, vector<2x32xf32>,
    %389 = vector.extract_strided_slice %262 {offsets = [8, 0], sizes = [2, 96], strides = [1, 1]} : vector<16x96xf32> to vector<2x96xf32>
    %cst_86 = arith.constant dense<0.000000e+00> : vector<2x96xf32>
    %390 = tpu.matmul %387, %263, %cst_86 {dimension_numbers = #tpu.dot_dimension_numbers<[1], [0], [0], [1], [0, 0, 1, 1], [], []>} : vector<2x32xf32>, vector<32x96xf32>, vector<2x96xf32> -> vector<2x96xf32>
    %391 = vector.broadcast %264 : vector<1x96xf32> to vector<2x96xf32>
    %392 = arith.addf %390, %391 : vector<2x96xf32>
    %393 = vector.extract_strided_slice %389 {offsets = [0, 0], sizes = [2, 32], strides = [1, 1]} : vector<2x96xf32> to vector<2x32xf32>
    %394 = vector.extract_strided_slice %392 {offsets = [0, 0], sizes = [2, 32], strides = [1, 1]} : vector<2x96xf32> to vector<2x32xf32>
    %395 = arith.addf %393, %394 : vector<2x32xf32>
    %396 = arith.negf %395 : vector<2x32xf32>
    %397 = math.exp %396 : vector<2x32xf32>
    %cst_87 = arith.constant 1.000000e+00 : f32
    %398 = vector.broadcast %cst_87 : f32 to vector<2x32xf32>
    %399 = arith.addf %398, %397 : vector<2x32xf32>
    %400 = arith.divf %398, %399 : vector<2x32xf32>
    %401 = vector.extract_strided_slice %389 {offsets = [0, 32], sizes = [2, 32], strides = [1, 1]} : vector<2x96xf32> to vector<2x32xf32>
    %402 = vector.extract_strided_slice %392 {offsets = [0, 32], sizes = [2, 32], strides = [1, 1]} : vector<2x96xf32> to vector<2x32xf32>
    %403 = arith.addf %401, %402 : vector<2x32xf32>
    %404 = arith.negf %403 : vector<2x32xf32>
    %405 = math.exp %404 : vector<2x32xf32>
    %cst_88 = arith.constant 1.000000e+00 : f32
    %406 = vector.broadcast %cst_88 : f32 to vector<2x32xf32>
    %407 = arith.addf %406, %405 : vector<2x32xf32>
    %408 = arith.divf %406, %407 : vector<2x32xf32>
    %409 = vector.extract_strided_slice %389 {offsets = [0, 64], sizes = [2, 32], strides = [1, 1]} : vector<2x96xf32> to vector<2x32xf32>
    %410 = vector.extract_strided_slice %392 {offsets = [0, 64], sizes = [2, 32], strides = [1, 1]} : vector<2x96xf32> to vector<2x32xf32>
    %411 = arith.mulf %400, %410 : vector<2x32xf32>
    %412 = arith.addf %409, %411 : vector<2x32xf32>
    %413 = math.tanh %412 : vector<2x32xf32>
    %cst_89 = arith.constant 1.000000e+00 : f32
    %414 = vector.broadcast %cst_89 : f32 to vector<2x32xf32>
    %415 = arith.subf %414, %408 : vector<2x32xf32>
    %416 = arith.mulf %415, %413 : vector<2x32xf32>
    %417 = arith.mulf %408, %387 : vector<2x32xf32>
    %418 = arith.addf %416, %417 : vector<2x32xf32>
    %c8_90 = arith.constant 8 : index
    %c0_91 = arith.constant 0 : index
    %419 = vector.load %arg23[%c8_90, %c0_91] : memref<16x32xf32, #tpu.memory_space<vmem>>, vector<2x32xf32>
    tpu.vector_store %arg23[%c8_90, %c0_91], %418 {strides = array<i32>} : memref<16x32xf32, #tpu.memory_space<vmem>>, vector<2x32xf32>,
    %420 = vector.extract_strided_slice %262 {offsets = [10, 0], sizes = [2, 96], strides = [1, 1]} : vector<16x96xf32> to vector<2x96xf32>
    %cst_92 = arith.constant dense<0.000000e+00> : vector<2x96xf32>
    %421 = tpu.matmul %418, %263, %cst_92 {dimension_numbers = #tpu.dot_dimension_numbers<[1], [0], [0], [1], [0, 0, 1, 1], [], []>} : vector<2x32xf32>, vector<32x96xf32>, vector<2x96xf32> -> vector<2x96xf32>
    %422 = vector.broadcast %264 : vector<1x96xf32> to vector<2x96xf32>
    %423 = arith.addf %421, %422 : vector<2x96xf32>
    %424 = vector.extract_strided_slice %420 {offsets = [0, 0], sizes = [2, 32], strides = [1, 1]} : vector<2x96xf32> to vector<2x32xf32>
    %425 = vector.extract_strided_slice %423 {offsets = [0, 0], sizes = [2, 32], strides = [1, 1]} : vector<2x96xf32> to vector<2x32xf32>
    %426 = arith.addf %424, %425 : vector<2x32xf32>
    %427 = arith.negf %426 : vector<2x32xf32>
    %428 = math.exp %427 : vector<2x32xf32>
    %cst_93 = arith.constant 1.000000e+00 : f32
    %429 = vector.broadcast %cst_93 : f32 to vector<2x32xf32>
    %430 = arith.addf %429, %428 : vector<2x32xf32>
    %431 = arith.divf %429, %430 : vector<2x32xf32>
    %432 = vector.extract_strided_slice %420 {offsets = [0, 32], sizes = [2, 32], strides = [1, 1]} : vector<2x96xf32> to vector<2x32xf32>
    %433 = vector.extract_strided_slice %423 {offsets = [0, 32], sizes = [2, 32], strides = [1, 1]} : vector<2x96xf32> to vector<2x32xf32>
    %434 = arith.addf %432, %433 : vector<2x32xf32>
    %435 = arith.negf %434 : vector<2x32xf32>
    %436 = math.exp %435 : vector<2x32xf32>
    %cst_94 = arith.constant 1.000000e+00 : f32
    %437 = vector.broadcast %cst_94 : f32 to vector<2x32xf32>
    %438 = arith.addf %437, %436 : vector<2x32xf32>
    %439 = arith.divf %437, %438 : vector<2x32xf32>
    %440 = vector.extract_strided_slice %420 {offsets = [0, 64], sizes = [2, 32], strides = [1, 1]} : vector<2x96xf32> to vector<2x32xf32>
    %441 = vector.extract_strided_slice %423 {offsets = [0, 64], sizes = [2, 32], strides = [1, 1]} : vector<2x96xf32> to vector<2x32xf32>
    %442 = arith.mulf %431, %441 : vector<2x32xf32>
    %443 = arith.addf %440, %442 : vector<2x32xf32>
    %444 = math.tanh %443 : vector<2x32xf32>
    %cst_95 = arith.constant 1.000000e+00 : f32
    %445 = vector.broadcast %cst_95 : f32 to vector<2x32xf32>
    %446 = arith.subf %445, %439 : vector<2x32xf32>
    %447 = arith.mulf %446, %444 : vector<2x32xf32>
    %448 = arith.mulf %439, %418 : vector<2x32xf32>
    %449 = arith.addf %447, %448 : vector<2x32xf32>
    %c10_96 = arith.constant 10 : index
    %c0_97 = arith.constant 0 : index
    %450 = vector.load %arg23[%c10_96, %c0_97] : memref<16x32xf32, #tpu.memory_space<vmem>>, vector<2x32xf32>
    tpu.vector_store %arg23[%c10_96, %c0_97], %449 {strides = array<i32>} : memref<16x32xf32, #tpu.memory_space<vmem>>, vector<2x32xf32>,
    %451 = vector.extract_strided_slice %262 {offsets = [12, 0], sizes = [2, 96], strides = [1, 1]} : vector<16x96xf32> to vector<2x96xf32>
    %cst_98 = arith.constant dense<0.000000e+00> : vector<2x96xf32>
    %452 = tpu.matmul %449, %263, %cst_98 {dimension_numbers = #tpu.dot_dimension_numbers<[1], [0], [0], [1], [0, 0, 1, 1], [], []>} : vector<2x32xf32>, vector<32x96xf32>, vector<2x96xf32> -> vector<2x96xf32>
    %453 = vector.broadcast %264 : vector<1x96xf32> to vector<2x96xf32>
    %454 = arith.addf %452, %453 : vector<2x96xf32>
    %455 = vector.extract_strided_slice %451 {offsets = [0, 0], sizes = [2, 32], strides = [1, 1]} : vector<2x96xf32> to vector<2x32xf32>
    %456 = vector.extract_strided_slice %454 {offsets = [0, 0], sizes = [2, 32], strides = [1, 1]} : vector<2x96xf32> to vector<2x32xf32>
    %457 = arith.addf %455, %456 : vector<2x32xf32>
    %458 = arith.negf %457 : vector<2x32xf32>
    %459 = math.exp %458 : vector<2x32xf32>
    %cst_99 = arith.constant 1.000000e+00 : f32
    %460 = vector.broadcast %cst_99 : f32 to vector<2x32xf32>
    %461 = arith.addf %460, %459 : vector<2x32xf32>
    %462 = arith.divf %460, %461 : vector<2x32xf32>
    %463 = vector.extract_strided_slice %451 {offsets = [0, 32], sizes = [2, 32], strides = [1, 1]} : vector<2x96xf32> to vector<2x32xf32>
    %464 = vector.extract_strided_slice %454 {offsets = [0, 32], sizes = [2, 32], strides = [1, 1]} : vector<2x96xf32> to vector<2x32xf32>
    %465 = arith.addf %463, %464 : vector<2x32xf32>
    %466 = arith.negf %465 : vector<2x32xf32>
    %467 = math.exp %466 : vector<2x32xf32>
    %cst_100 = arith.constant 1.000000e+00 : f32
    %468 = vector.broadcast %cst_100 : f32 to vector<2x32xf32>
    %469 = arith.addf %468, %467 : vector<2x32xf32>
    %470 = arith.divf %468, %469 : vector<2x32xf32>
    %471 = vector.extract_strided_slice %451 {offsets = [0, 64], sizes = [2, 32], strides = [1, 1]} : vector<2x96xf32> to vector<2x32xf32>
    %472 = vector.extract_strided_slice %454 {offsets = [0, 64], sizes = [2, 32], strides = [1, 1]} : vector<2x96xf32> to vector<2x32xf32>
    %473 = arith.mulf %462, %472 : vector<2x32xf32>
    %474 = arith.addf %471, %473 : vector<2x32xf32>
    %475 = math.tanh %474 : vector<2x32xf32>
    %cst_101 = arith.constant 1.000000e+00 : f32
    %476 = vector.broadcast %cst_101 : f32 to vector<2x32xf32>
    %477 = arith.subf %476, %470 : vector<2x32xf32>
    %478 = arith.mulf %477, %475 : vector<2x32xf32>
    %479 = arith.mulf %470, %449 : vector<2x32xf32>
    %480 = arith.addf %478, %479 : vector<2x32xf32>
    %c12_102 = arith.constant 12 : index
    %c0_103 = arith.constant 0 : index
    %481 = vector.load %arg23[%c12_102, %c0_103] : memref<16x32xf32, #tpu.memory_space<vmem>>, vector<2x32xf32>
    tpu.vector_store %arg23[%c12_102, %c0_103], %480 {strides = array<i32>} : memref<16x32xf32, #tpu.memory_space<vmem>>, vector<2x32xf32>,
    %482 = vector.extract_strided_slice %262 {offsets = [14, 0], sizes = [2, 96], strides = [1, 1]} : vector<16x96xf32> to vector<2x96xf32>
    %cst_104 = arith.constant dense<0.000000e+00> : vector<2x96xf32>
    %483 = tpu.matmul %480, %263, %cst_104 {dimension_numbers = #tpu.dot_dimension_numbers<[1], [0], [0], [1], [0, 0, 1, 1], [], []>} : vector<2x32xf32>, vector<32x96xf32>, vector<2x96xf32> -> vector<2x96xf32>
    %484 = vector.broadcast %264 : vector<1x96xf32> to vector<2x96xf32>
    %485 = arith.addf %483, %484 : vector<2x96xf32>
    %486 = vector.extract_strided_slice %482 {offsets = [0, 0], sizes = [2, 32], strides = [1, 1]} : vector<2x96xf32> to vector<2x32xf32>
    %487 = vector.extract_strided_slice %485 {offsets = [0, 0], sizes = [2, 32], strides = [1, 1]} : vector<2x96xf32> to vector<2x32xf32>
    %488 = arith.addf %486, %487 : vector<2x32xf32>
    %489 = arith.negf %488 : vector<2x32xf32>
    %490 = math.exp %489 : vector<2x32xf32>
    %cst_105 = arith.constant 1.000000e+00 : f32
    %491 = vector.broadcast %cst_105 : f32 to vector<2x32xf32>
    %492 = arith.addf %491, %490 : vector<2x32xf32>
    %493 = arith.divf %491, %492 : vector<2x32xf32>
    %494 = vector.extract_strided_slice %482 {offsets = [0, 32], sizes = [2, 32], strides = [1, 1]} : vector<2x96xf32> to vector<2x32xf32>
    %495 = vector.extract_strided_slice %485 {offsets = [0, 32], sizes = [2, 32], strides = [1, 1]} : vector<2x96xf32> to vector<2x32xf32>
    %496 = arith.addf %494, %495 : vector<2x32xf32>
    %497 = arith.negf %496 : vector<2x32xf32>
    %498 = math.exp %497 : vector<2x32xf32>
    %cst_106 = arith.constant 1.000000e+00 : f32
    %499 = vector.broadcast %cst_106 : f32 to vector<2x32xf32>
    %500 = arith.addf %499, %498 : vector<2x32xf32>
    %501 = arith.divf %499, %500 : vector<2x32xf32>
    %502 = vector.extract_strided_slice %482 {offsets = [0, 64], sizes = [2, 32], strides = [1, 1]} : vector<2x96xf32> to vector<2x32xf32>
    %503 = vector.extract_strided_slice %485 {offsets = [0, 64], sizes = [2, 32], strides = [1, 1]} : vector<2x96xf32> to vector<2x32xf32>
    %504 = arith.mulf %493, %503 : vector<2x32xf32>
    %505 = arith.addf %502, %504 : vector<2x32xf32>
    %506 = math.tanh %505 : vector<2x32xf32>
    %cst_107 = arith.constant 1.000000e+00 : f32
    %507 = vector.broadcast %cst_107 : f32 to vector<2x32xf32>
    %508 = arith.subf %507, %501 : vector<2x32xf32>
    %509 = arith.mulf %508, %506 : vector<2x32xf32>
    %510 = arith.mulf %501, %480 : vector<2x32xf32>
    %511 = arith.addf %509, %510 : vector<2x32xf32>
    %c14_108 = arith.constant 14 : index
    %c0_109 = arith.constant 0 : index
    %512 = vector.load %arg23[%c14_108, %c0_109] : memref<16x32xf32, #tpu.memory_space<vmem>>, vector<2x32xf32>
    tpu.vector_store %arg23[%c14_108, %c0_109], %511 {strides = array<i32>} : memref<16x32xf32, #tpu.memory_space<vmem>>, vector<2x32xf32>,
    %c0_110 = arith.constant 0 : index
    %c0_111 = arith.constant 0 : index
    %513 = vector.load %arg12[%c0_110, %c0_111] : memref<32x96xf32, #tpu.memory_space<vmem>>, vector<32x96xf32>
    %cst_112 = arith.constant dense<0.000000e+00> : vector<2x96xf32>
    %514 = tpu.matmul %511, %513, %cst_112 {dimension_numbers = #tpu.dot_dimension_numbers<[1], [0], [0], [1], [0, 0, 1, 1], [], []>} : vector<2x32xf32>, vector<32x96xf32>, vector<2x96xf32> -> vector<2x96xf32>
    %c0_113 = arith.constant 0 : index
    %c0_114 = arith.constant 0 : index
    %515 = vector.load %arg2[%c0_113, %c0_114] : memref<8x7xf32, #tpu.memory_space<vmem>>, vector<8x7xf32>
    %c0_115 = arith.constant 0 : index
    %c0_116 = arith.constant 0 : index
    %516 = vector.load %arg11[%c0_115, %c0_116] : memref<7x96xf32, #tpu.memory_space<vmem>>, vector<7x96xf32>
    %cst_117 = arith.constant dense<0.000000e+00> : vector<8x96xf32>
    %517 = tpu.matmul %515, %516, %cst_117 {dimension_numbers = #tpu.dot_dimension_numbers<[1], [0], [0], [1], [0, 0, 1, 1], [], []>} : vector<8x7xf32>, vector<7x96xf32>, vector<8x96xf32> -> vector<8x96xf32>
    %c0_118 = arith.constant 0 : index
    %c0_119 = arith.constant 0 : index
    %518 = vector.load %arg14[%c0_118, %c0_119] : memref<1x96xf32, #tpu.memory_space<vmem>>, vector<1x96xf32>
    %519 = vector.broadcast %518 : vector<1x96xf32> to vector<8x96xf32>
    %520 = arith.addf %517, %519 : vector<8x96xf32>
    %c0_120 = arith.constant 0 : index
    %c0_121 = arith.constant 0 : index
    %521 = vector.load %arg13[%c0_120, %c0_121] : memref<32x96xf32, #tpu.memory_space<vmem>>, vector<32x96xf32>
    %c0_122 = arith.constant 0 : index
    %c0_123 = arith.constant 0 : index
    %522 = vector.load %arg15[%c0_122, %c0_123] : memref<1x96xf32, #tpu.memory_space<vmem>>, vector<1x96xf32>
    %523 = vector.extract_strided_slice %520 {offsets = [0, 0], sizes = [2, 96], strides = [1, 1]} : vector<8x96xf32> to vector<2x96xf32>
    %524 = arith.addf %523, %514 : vector<2x96xf32>
    %cst_124 = arith.constant dense<0.000000e+00> : vector<2x96xf32>
    %525 = tpu.matmul %255, %521, %cst_124 {dimension_numbers = #tpu.dot_dimension_numbers<[1], [0], [0], [1], [0, 0, 1, 1], [], []>} : vector<2x32xf32>, vector<32x96xf32>, vector<2x96xf32> -> vector<2x96xf32>
    %526 = vector.broadcast %522 : vector<1x96xf32> to vector<2x96xf32>
    %527 = arith.addf %525, %526 : vector<2x96xf32>
    %528 = vector.extract_strided_slice %524 {offsets = [0, 0], sizes = [2, 32], strides = [1, 1]} : vector<2x96xf32> to vector<2x32xf32>
    %529 = vector.extract_strided_slice %527 {offsets = [0, 0], sizes = [2, 32], strides = [1, 1]} : vector<2x96xf32> to vector<2x32xf32>
    %530 = arith.addf %528, %529 : vector<2x32xf32>
    %531 = arith.negf %530 : vector<2x32xf32>
    %532 = math.exp %531 : vector<2x32xf32>
    %cst_125 = arith.constant 1.000000e+00 : f32
    %533 = vector.broadcast %cst_125 : f32 to vector<2x32xf32>
    %534 = arith.addf %533, %532 : vector<2x32xf32>
    %535 = arith.divf %533, %534 : vector<2x32xf32>
    %536 = vector.extract_strided_slice %524 {offsets = [0, 32], sizes = [2, 32], strides = [1, 1]} : vector<2x96xf32> to vector<2x32xf32>
    %537 = vector.extract_strided_slice %527 {offsets = [0, 32], sizes = [2, 32], strides = [1, 1]} : vector<2x96xf32> to vector<2x32xf32>
    %538 = arith.addf %536, %537 : vector<2x32xf32>
    %539 = arith.negf %538 : vector<2x32xf32>
    %540 = math.exp %539 : vector<2x32xf32>
    %cst_126 = arith.constant 1.000000e+00 : f32
    %541 = vector.broadcast %cst_126 : f32 to vector<2x32xf32>
    %542 = arith.addf %541, %540 : vector<2x32xf32>
    %543 = arith.divf %541, %542 : vector<2x32xf32>
    %544 = vector.extract_strided_slice %524 {offsets = [0, 64], sizes = [2, 32], strides = [1, 1]} : vector<2x96xf32> to vector<2x32xf32>
    %545 = vector.extract_strided_slice %527 {offsets = [0, 64], sizes = [2, 32], strides = [1, 1]} : vector<2x96xf32> to vector<2x32xf32>
    %546 = arith.mulf %535, %545 : vector<2x32xf32>
    %547 = arith.addf %544, %546 : vector<2x32xf32>
    %548 = math.tanh %547 : vector<2x32xf32>
    %cst_127 = arith.constant 1.000000e+00 : f32
    %549 = vector.broadcast %cst_127 : f32 to vector<2x32xf32>
    %550 = arith.subf %549, %543 : vector<2x32xf32>
    %551 = arith.mulf %550, %548 : vector<2x32xf32>
    %552 = arith.mulf %543, %255 : vector<2x32xf32>
    %553 = arith.addf %551, %552 : vector<2x32xf32>
    %c0_128 = arith.constant 0 : index
    %c0_129 = arith.constant 0 : index
    %554 = vector.load %arg23[%c0_128, %c0_129] : memref<16x32xf32, #tpu.memory_space<vmem>>, vector<2x32xf32>
    tpu.vector_store %arg23[%c0_128, %c0_129], %553 {strides = array<i32>} : memref<16x32xf32, #tpu.memory_space<vmem>>, vector<2x32xf32>,
    %555 = vector.extract_strided_slice %520 {offsets = [2, 0], sizes = [2, 96], strides = [1, 1]} : vector<8x96xf32> to vector<2x96xf32>
    %556 = arith.addf %555, %514 : vector<2x96xf32>
    %cst_130 = arith.constant dense<0.000000e+00> : vector<2x96xf32>
    %557 = tpu.matmul %553, %521, %cst_130 {dimension_numbers = #tpu.dot_dimension_numbers<[1], [0], [0], [1], [0, 0, 1, 1], [], []>} : vector<2x32xf32>, vector<32x96xf32>, vector<2x96xf32> -> vector<2x96xf32>
    %558 = vector.broadcast %522 : vector<1x96xf32> to vector<2x96xf32>
    %559 = arith.addf %557, %558 : vector<2x96xf32>
    %560 = vector.extract_strided_slice %556 {offsets = [0, 0], sizes = [2, 32], strides = [1, 1]} : vector<2x96xf32> to vector<2x32xf32>
    %561 = vector.extract_strided_slice %559 {offsets = [0, 0], sizes = [2, 32], strides = [1, 1]} : vector<2x96xf32> to vector<2x32xf32>
    %562 = arith.addf %560, %561 : vector<2x32xf32>
    %563 = arith.negf %562 : vector<2x32xf32>
    %564 = math.exp %563 : vector<2x32xf32>
    %cst_131 = arith.constant 1.000000e+00 : f32
    %565 = vector.broadcast %cst_131 : f32 to vector<2x32xf32>
    %566 = arith.addf %565, %564 : vector<2x32xf32>
    %567 = arith.divf %565, %566 : vector<2x32xf32>
    %568 = vector.extract_strided_slice %556 {offsets = [0, 32], sizes = [2, 32], strides = [1, 1]} : vector<2x96xf32> to vector<2x32xf32>
    %569 = vector.extract_strided_slice %559 {offsets = [0, 32], sizes = [2, 32], strides = [1, 1]} : vector<2x96xf32> to vector<2x32xf32>
    %570 = arith.addf %568, %569 : vector<2x32xf32>
    %571 = arith.negf %570 : vector<2x32xf32>
    %572 = math.exp %571 : vector<2x32xf32>
    %cst_132 = arith.constant 1.000000e+00 : f32
    %573 = vector.broadcast %cst_132 : f32 to vector<2x32xf32>
    %574 = arith.addf %573, %572 : vector<2x32xf32>
    %575 = arith.divf %573, %574 : vector<2x32xf32>
    %576 = vector.extract_strided_slice %556 {offsets = [0, 64], sizes = [2, 32], strides = [1, 1]} : vector<2x96xf32> to vector<2x32xf32>
    %577 = vector.extract_strided_slice %559 {offsets = [0, 64], sizes = [2, 32], strides = [1, 1]} : vector<2x96xf32> to vector<2x32xf32>
    %578 = arith.mulf %567, %577 : vector<2x32xf32>
    %579 = arith.addf %576, %578 : vector<2x32xf32>
    %580 = math.tanh %579 : vector<2x32xf32>
    %cst_133 = arith.constant 1.000000e+00 : f32
    %581 = vector.broadcast %cst_133 : f32 to vector<2x32xf32>
    %582 = arith.subf %581, %575 : vector<2x32xf32>
    %583 = arith.mulf %582, %580 : vector<2x32xf32>
    %584 = arith.mulf %575, %553 : vector<2x32xf32>
    %585 = arith.addf %583, %584 : vector<2x32xf32>
    %c2_134 = arith.constant 2 : index
    %c0_135 = arith.constant 0 : index
    %586 = vector.load %arg23[%c2_134, %c0_135] : memref<16x32xf32, #tpu.memory_space<vmem>>, vector<2x32xf32>
    tpu.vector_store %arg23[%c2_134, %c0_135], %585 {strides = array<i32>} : memref<16x32xf32, #tpu.memory_space<vmem>>, vector<2x32xf32>,
    %587 = vector.extract_strided_slice %520 {offsets = [4, 0], sizes = [2, 96], strides = [1, 1]} : vector<8x96xf32> to vector<2x96xf32>
    %588 = arith.addf %587, %514 : vector<2x96xf32>
    %cst_136 = arith.constant dense<0.000000e+00> : vector<2x96xf32>
    %589 = tpu.matmul %585, %521, %cst_136 {dimension_numbers = #tpu.dot_dimension_numbers<[1], [0], [0], [1], [0, 0, 1, 1], [], []>} : vector<2x32xf32>, vector<32x96xf32>, vector<2x96xf32> -> vector<2x96xf32>
    %590 = vector.broadcast %522 : vector<1x96xf32> to vector<2x96xf32>
    %591 = arith.addf %589, %590 : vector<2x96xf32>
    %592 = vector.extract_strided_slice %588 {offsets = [0, 0], sizes = [2, 32], strides = [1, 1]} : vector<2x96xf32> to vector<2x32xf32>
    %593 = vector.extract_strided_slice %591 {offsets = [0, 0], sizes = [2, 32], strides = [1, 1]} : vector<2x96xf32> to vector<2x32xf32>
    %594 = arith.addf %592, %593 : vector<2x32xf32>
    %595 = arith.negf %594 : vector<2x32xf32>
    %596 = math.exp %595 : vector<2x32xf32>
    %cst_137 = arith.constant 1.000000e+00 : f32
    %597 = vector.broadcast %cst_137 : f32 to vector<2x32xf32>
    %598 = arith.addf %597, %596 : vector<2x32xf32>
    %599 = arith.divf %597, %598 : vector<2x32xf32>
    %600 = vector.extract_strided_slice %588 {offsets = [0, 32], sizes = [2, 32], strides = [1, 1]} : vector<2x96xf32> to vector<2x32xf32>
    %601 = vector.extract_strided_slice %591 {offsets = [0, 32], sizes = [2, 32], strides = [1, 1]} : vector<2x96xf32> to vector<2x32xf32>
    %602 = arith.addf %600, %601 : vector<2x32xf32>
    %603 = arith.negf %602 : vector<2x32xf32>
    %604 = math.exp %603 : vector<2x32xf32>
    %cst_138 = arith.constant 1.000000e+00 : f32
    %605 = vector.broadcast %cst_138 : f32 to vector<2x32xf32>
    %606 = arith.addf %605, %604 : vector<2x32xf32>
    %607 = arith.divf %605, %606 : vector<2x32xf32>
    %608 = vector.extract_strided_slice %588 {offsets = [0, 64], sizes = [2, 32], strides = [1, 1]} : vector<2x96xf32> to vector<2x32xf32>
    %609 = vector.extract_strided_slice %591 {offsets = [0, 64], sizes = [2, 32], strides = [1, 1]} : vector<2x96xf32> to vector<2x32xf32>
    %610 = arith.mulf %599, %609 : vector<2x32xf32>
    %611 = arith.addf %608, %610 : vector<2x32xf32>
    %612 = math.tanh %611 : vector<2x32xf32>
    %cst_139 = arith.constant 1.000000e+00 : f32
    %613 = vector.broadcast %cst_139 : f32 to vector<2x32xf32>
    %614 = arith.subf %613, %607 : vector<2x32xf32>
    %615 = arith.mulf %614, %612 : vector<2x32xf32>
    %616 = arith.mulf %607, %585 : vector<2x32xf32>
    %617 = arith.addf %615, %616 : vector<2x32xf32>
    %c4_140 = arith.constant 4 : index
    %c0_141 = arith.constant 0 : index
    %618 = vector.load %arg23[%c4_140, %c0_141] : memref<16x32xf32, #tpu.memory_space<vmem>>, vector<2x32xf32>
    tpu.vector_store %arg23[%c4_140, %c0_141], %617 {strides = array<i32>} : memref<16x32xf32, #tpu.memory_space<vmem>>, vector<2x32xf32>,
    %619 = vector.extract_strided_slice %520 {offsets = [6, 0], sizes = [2, 96], strides = [1, 1]} : vector<8x96xf32> to vector<2x96xf32>
    %620 = arith.addf %619, %514 : vector<2x96xf32>
    %cst_142 = arith.constant dense<0.000000e+00> : vector<2x96xf32>
    %621 = tpu.matmul %617, %521, %cst_142 {dimension_numbers = #tpu.dot_dimension_numbers<[1], [0], [0], [1], [0, 0, 1, 1], [], []>} : vector<2x32xf32>, vector<32x96xf32>, vector<2x96xf32> -> vector<2x96xf32>
    %622 = vector.broadcast %522 : vector<1x96xf32> to vector<2x96xf32>
    %623 = arith.addf %621, %622 : vector<2x96xf32>
    %624 = vector.extract_strided_slice %620 {offsets = [0, 0], sizes = [2, 32], strides = [1, 1]} : vector<2x96xf32> to vector<2x32xf32>
    %625 = vector.extract_strided_slice %623 {offsets = [0, 0], sizes = [2, 32], strides = [1, 1]} : vector<2x96xf32> to vector<2x32xf32>
    %626 = arith.addf %624, %625 : vector<2x32xf32>
    %627 = arith.negf %626 : vector<2x32xf32>
    %628 = math.exp %627 : vector<2x32xf32>
    %cst_143 = arith.constant 1.000000e+00 : f32
    %629 = vector.broadcast %cst_143 : f32 to vector<2x32xf32>
    %630 = arith.addf %629, %628 : vector<2x32xf32>
    %631 = arith.divf %629, %630 : vector<2x32xf32>
    %632 = vector.extract_strided_slice %620 {offsets = [0, 32], sizes = [2, 32], strides = [1, 1]} : vector<2x96xf32> to vector<2x32xf32>
    %633 = vector.extract_strided_slice %623 {offsets = [0, 32], sizes = [2, 32], strides = [1, 1]} : vector<2x96xf32> to vector<2x32xf32>
    %634 = arith.addf %632, %633 : vector<2x32xf32>
    %635 = arith.negf %634 : vector<2x32xf32>
    %636 = math.exp %635 : vector<2x32xf32>
    %cst_144 = arith.constant 1.000000e+00 : f32
    %637 = vector.broadcast %cst_144 : f32 to vector<2x32xf32>
    %638 = arith.addf %637, %636 : vector<2x32xf32>
    %639 = arith.divf %637, %638 : vector<2x32xf32>
    %640 = vector.extract_strided_slice %620 {offsets = [0, 64], sizes = [2, 32], strides = [1, 1]} : vector<2x96xf32> to vector<2x32xf32>
    %641 = vector.extract_strided_slice %623 {offsets = [0, 64], sizes = [2, 32], strides = [1, 1]} : vector<2x96xf32> to vector<2x32xf32>
    %642 = arith.mulf %631, %641 : vector<2x32xf32>
    %643 = arith.addf %640, %642 : vector<2x32xf32>
    %644 = math.tanh %643 : vector<2x32xf32>
    %cst_145 = arith.constant 1.000000e+00 : f32
    %645 = vector.broadcast %cst_145 : f32 to vector<2x32xf32>
    %646 = arith.subf %645, %639 : vector<2x32xf32>
    %647 = arith.mulf %646, %644 : vector<2x32xf32>
    %648 = arith.mulf %639, %617 : vector<2x32xf32>
    %649 = arith.addf %647, %648 : vector<2x32xf32>
    %c6_146 = arith.constant 6 : index
    %c0_147 = arith.constant 0 : index
    %650 = vector.load %arg23[%c6_146, %c0_147] : memref<16x32xf32, #tpu.memory_space<vmem>>, vector<2x32xf32>
    tpu.vector_store %arg23[%c6_146, %c0_147], %649 {strides = array<i32>} : memref<16x32xf32, #tpu.memory_space<vmem>>, vector<2x32xf32>,
    %c0_148 = arith.constant 0 : index
    %c0_149 = arith.constant 0 : index
    %651 = vector.load %arg23[%c0_148, %c0_149] : memref<16x32xf32, #tpu.memory_space<vmem>>, vector<8x32xf32>
    %c0_150 = arith.constant 0 : index
    %c0_151 = arith.constant 0 : index
    %652 = vector.load %arg16[%c0_150, %c0_151] : memref<32x96xf32, #tpu.memory_space<vmem>>, vector<32x96xf32>
    %cst_152 = arith.constant dense<0.000000e+00> : vector<8x96xf32>
    %653 = tpu.matmul %651, %652, %cst_152 {dimension_numbers = #tpu.dot_dimension_numbers<[1], [0], [0], [1], [0, 0, 1, 1], [], []>} : vector<8x32xf32>, vector<32x96xf32>, vector<8x96xf32> -> vector<8x96xf32>
    %c0_153 = arith.constant 0 : index
    %c0_154 = arith.constant 0 : index
    %654 = vector.load %arg18[%c0_153, %c0_154] : memref<1x96xf32, #tpu.memory_space<vmem>>, vector<1x96xf32>
    %655 = vector.broadcast %654 : vector<1x96xf32> to vector<8x96xf32>
    %656 = arith.addf %653, %655 : vector<8x96xf32>
    %c0_155 = arith.constant 0 : index
    %c0_156 = arith.constant 0 : index
    %657 = vector.load %arg17[%c0_155, %c0_156] : memref<32x96xf32, #tpu.memory_space<vmem>>, vector<32x96xf32>
    %c0_157 = arith.constant 0 : index
    %c0_158 = arith.constant 0 : index
    %658 = vector.load %arg19[%c0_157, %c0_158] : memref<1x96xf32, #tpu.memory_space<vmem>>, vector<1x96xf32>
    %659 = vector.extract_strided_slice %656 {offsets = [0, 0], sizes = [2, 96], strides = [1, 1]} : vector<8x96xf32> to vector<2x96xf32>
    %cst_159 = arith.constant dense<0.000000e+00> : vector<2x96xf32>
    %660 = tpu.matmul %511, %657, %cst_159 {dimension_numbers = #tpu.dot_dimension_numbers<[1], [0], [0], [1], [0, 0, 1, 1], [], []>} : vector<2x32xf32>, vector<32x96xf32>, vector<2x96xf32> -> vector<2x96xf32>
    %661 = vector.broadcast %658 : vector<1x96xf32> to vector<2x96xf32>
    %662 = arith.addf %660, %661 : vector<2x96xf32>
    %663 = vector.extract_strided_slice %659 {offsets = [0, 0], sizes = [2, 32], strides = [1, 1]} : vector<2x96xf32> to vector<2x32xf32>
    %664 = vector.extract_strided_slice %662 {offsets = [0, 0], sizes = [2, 32], strides = [1, 1]} : vector<2x96xf32> to vector<2x32xf32>
    %665 = arith.addf %663, %664 : vector<2x32xf32>
    %666 = arith.negf %665 : vector<2x32xf32>
    %667 = math.exp %666 : vector<2x32xf32>
    %cst_160 = arith.constant 1.000000e+00 : f32
    %668 = vector.broadcast %cst_160 : f32 to vector<2x32xf32>
    %669 = arith.addf %668, %667 : vector<2x32xf32>
    %670 = arith.divf %668, %669 : vector<2x32xf32>
    %671 = vector.extract_strided_slice %659 {offsets = [0, 32], sizes = [2, 32], strides = [1, 1]} : vector<2x96xf32> to vector<2x32xf32>
    %672 = vector.extract_strided_slice %662 {offsets = [0, 32], sizes = [2, 32], strides = [1, 1]} : vector<2x96xf32> to vector<2x32xf32>
    %673 = arith.addf %671, %672 : vector<2x32xf32>
    %674 = arith.negf %673 : vector<2x32xf32>
    %675 = math.exp %674 : vector<2x32xf32>
    %cst_161 = arith.constant 1.000000e+00 : f32
    %676 = vector.broadcast %cst_161 : f32 to vector<2x32xf32>
    %677 = arith.addf %676, %675 : vector<2x32xf32>
    %678 = arith.divf %676, %677 : vector<2x32xf32>
    %679 = vector.extract_strided_slice %659 {offsets = [0, 64], sizes = [2, 32], strides = [1, 1]} : vector<2x96xf32> to vector<2x32xf32>
    %680 = vector.extract_strided_slice %662 {offsets = [0, 64], sizes = [2, 32], strides = [1, 1]} : vector<2x96xf32> to vector<2x32xf32>
    %681 = arith.mulf %670, %680 : vector<2x32xf32>
    %682 = arith.addf %679, %681 : vector<2x32xf32>
    %683 = math.tanh %682 : vector<2x32xf32>
    %cst_162 = arith.constant 1.000000e+00 : f32
    %684 = vector.broadcast %cst_162 : f32 to vector<2x32xf32>
    %685 = arith.subf %684, %678 : vector<2x32xf32>
    %686 = arith.mulf %685, %683 : vector<2x32xf32>
    %687 = arith.mulf %678, %511 : vector<2x32xf32>
    %688 = arith.addf %686, %687 : vector<2x32xf32>
    %c0_163 = arith.constant 0 : index
    %c0_164 = arith.constant 0 : index
    %689 = vector.load %arg23[%c0_163, %c0_164] : memref<16x32xf32, #tpu.memory_space<vmem>>, vector<2x32xf32>
    tpu.vector_store %arg23[%c0_163, %c0_164], %688 {strides = array<i32>} : memref<16x32xf32, #tpu.memory_space<vmem>>, vector<2x32xf32>,
    %690 = vector.extract_strided_slice %656 {offsets = [2, 0], sizes = [2, 96], strides = [1, 1]} : vector<8x96xf32> to vector<2x96xf32>
    %cst_165 = arith.constant dense<0.000000e+00> : vector<2x96xf32>
    %691 = tpu.matmul %688, %657, %cst_165 {dimension_numbers = #tpu.dot_dimension_numbers<[1], [0], [0], [1], [0, 0, 1, 1], [], []>} : vector<2x32xf32>, vector<32x96xf32>, vector<2x96xf32> -> vector<2x96xf32>
    %692 = vector.broadcast %658 : vector<1x96xf32> to vector<2x96xf32>
    %693 = arith.addf %691, %692 : vector<2x96xf32>
    %694 = vector.extract_strided_slice %690 {offsets = [0, 0], sizes = [2, 32], strides = [1, 1]} : vector<2x96xf32> to vector<2x32xf32>
    %695 = vector.extract_strided_slice %693 {offsets = [0, 0], sizes = [2, 32], strides = [1, 1]} : vector<2x96xf32> to vector<2x32xf32>
    %696 = arith.addf %694, %695 : vector<2x32xf32>
    %697 = arith.negf %696 : vector<2x32xf32>
    %698 = math.exp %697 : vector<2x32xf32>
    %cst_166 = arith.constant 1.000000e+00 : f32
    %699 = vector.broadcast %cst_166 : f32 to vector<2x32xf32>
    %700 = arith.addf %699, %698 : vector<2x32xf32>
    %701 = arith.divf %699, %700 : vector<2x32xf32>
    %702 = vector.extract_strided_slice %690 {offsets = [0, 32], sizes = [2, 32], strides = [1, 1]} : vector<2x96xf32> to vector<2x32xf32>
    %703 = vector.extract_strided_slice %693 {offsets = [0, 32], sizes = [2, 32], strides = [1, 1]} : vector<2x96xf32> to vector<2x32xf32>
    %704 = arith.addf %702, %703 : vector<2x32xf32>
    %705 = arith.negf %704 : vector<2x32xf32>
    %706 = math.exp %705 : vector<2x32xf32>
    %cst_167 = arith.constant 1.000000e+00 : f32
    %707 = vector.broadcast %cst_167 : f32 to vector<2x32xf32>
    %708 = arith.addf %707, %706 : vector<2x32xf32>
    %709 = arith.divf %707, %708 : vector<2x32xf32>
    %710 = vector.extract_strided_slice %690 {offsets = [0, 64], sizes = [2, 32], strides = [1, 1]} : vector<2x96xf32> to vector<2x32xf32>
    %711 = vector.extract_strided_slice %693 {offsets = [0, 64], sizes = [2, 32], strides = [1, 1]} : vector<2x96xf32> to vector<2x32xf32>
    %712 = arith.mulf %701, %711 : vector<2x32xf32>
    %713 = arith.addf %710, %712 : vector<2x32xf32>
    %714 = math.tanh %713 : vector<2x32xf32>
    %cst_168 = arith.constant 1.000000e+00 : f32
    %715 = vector.broadcast %cst_168 : f32 to vector<2x32xf32>
    %716 = arith.subf %715, %709 : vector<2x32xf32>
    %717 = arith.mulf %716, %714 : vector<2x32xf32>
    %718 = arith.mulf %709, %688 : vector<2x32xf32>
    %719 = arith.addf %717, %718 : vector<2x32xf32>
    %c2_169 = arith.constant 2 : index
    %c0_170 = arith.constant 0 : index
    %720 = vector.load %arg23[%c2_169, %c0_170] : memref<16x32xf32, #tpu.memory_space<vmem>>, vector<2x32xf32>
    tpu.vector_store %arg23[%c2_169, %c0_170], %719 {strides = array<i32>} : memref<16x32xf32, #tpu.memory_space<vmem>>, vector<2x32xf32>,
    %721 = vector.extract_strided_slice %656 {offsets = [4, 0], sizes = [2, 96], strides = [1, 1]} : vector<8x96xf32> to vector<2x96xf32>
    %cst_171 = arith.constant dense<0.000000e+00> : vector<2x96xf32>
    %722 = tpu.matmul %719, %657, %cst_171 {dimension_numbers = #tpu.dot_dimension_numbers<[1], [0], [0], [1], [0, 0, 1, 1], [], []>} : vector<2x32xf32>, vector<32x96xf32>, vector<2x96xf32> -> vector<2x96xf32>
    %723 = vector.broadcast %658 : vector<1x96xf32> to vector<2x96xf32>
    %724 = arith.addf %722, %723 : vector<2x96xf32>
    %725 = vector.extract_strided_slice %721 {offsets = [0, 0], sizes = [2, 32], strides = [1, 1]} : vector<2x96xf32> to vector<2x32xf32>
    %726 = vector.extract_strided_slice %724 {offsets = [0, 0], sizes = [2, 32], strides = [1, 1]} : vector<2x96xf32> to vector<2x32xf32>
    %727 = arith.addf %725, %726 : vector<2x32xf32>
    %728 = arith.negf %727 : vector<2x32xf32>
    %729 = math.exp %728 : vector<2x32xf32>
    %cst_172 = arith.constant 1.000000e+00 : f32
    %730 = vector.broadcast %cst_172 : f32 to vector<2x32xf32>
    %731 = arith.addf %730, %729 : vector<2x32xf32>
    %732 = arith.divf %730, %731 : vector<2x32xf32>
    %733 = vector.extract_strided_slice %721 {offsets = [0, 32], sizes = [2, 32], strides = [1, 1]} : vector<2x96xf32> to vector<2x32xf32>
    %734 = vector.extract_strided_slice %724 {offsets = [0, 32], sizes = [2, 32], strides = [1, 1]} : vector<2x96xf32> to vector<2x32xf32>
    %735 = arith.addf %733, %734 : vector<2x32xf32>
    %736 = arith.negf %735 : vector<2x32xf32>
    %737 = math.exp %736 : vector<2x32xf32>
    %cst_173 = arith.constant 1.000000e+00 : f32
    %738 = vector.broadcast %cst_173 : f32 to vector<2x32xf32>
    %739 = arith.addf %738, %737 : vector<2x32xf32>
    %740 = arith.divf %738, %739 : vector<2x32xf32>
    %741 = vector.extract_strided_slice %721 {offsets = [0, 64], sizes = [2, 32], strides = [1, 1]} : vector<2x96xf32> to vector<2x32xf32>
    %742 = vector.extract_strided_slice %724 {offsets = [0, 64], sizes = [2, 32], strides = [1, 1]} : vector<2x96xf32> to vector<2x32xf32>
    %743 = arith.mulf %732, %742 : vector<2x32xf32>
    %744 = arith.addf %741, %743 : vector<2x32xf32>
    %745 = math.tanh %744 : vector<2x32xf32>
    %cst_174 = arith.constant 1.000000e+00 : f32
    %746 = vector.broadcast %cst_174 : f32 to vector<2x32xf32>
    %747 = arith.subf %746, %740 : vector<2x32xf32>
    %748 = arith.mulf %747, %745 : vector<2x32xf32>
    %749 = arith.mulf %740, %719 : vector<2x32xf32>
    %750 = arith.addf %748, %749 : vector<2x32xf32>
    %c4_175 = arith.constant 4 : index
    %c0_176 = arith.constant 0 : index
    %751 = vector.load %arg23[%c4_175, %c0_176] : memref<16x32xf32, #tpu.memory_space<vmem>>, vector<2x32xf32>
    tpu.vector_store %arg23[%c4_175, %c0_176], %750 {strides = array<i32>} : memref<16x32xf32, #tpu.memory_space<vmem>>, vector<2x32xf32>,
    %752 = vector.extract_strided_slice %656 {offsets = [6, 0], sizes = [2, 96], strides = [1, 1]} : vector<8x96xf32> to vector<2x96xf32>
    %cst_177 = arith.constant dense<0.000000e+00> : vector<2x96xf32>
    %753 = tpu.matmul %750, %657, %cst_177 {dimension_numbers = #tpu.dot_dimension_numbers<[1], [0], [0], [1], [0, 0, 1, 1], [], []>} : vector<2x32xf32>, vector<32x96xf32>, vector<2x96xf32> -> vector<2x96xf32>
    %754 = vector.broadcast %658 : vector<1x96xf32> to vector<2x96xf32>
    %755 = arith.addf %753, %754 : vector<2x96xf32>
    %756 = vector.extract_strided_slice %752 {offsets = [0, 0], sizes = [2, 32], strides = [1, 1]} : vector<2x96xf32> to vector<2x32xf32>
    %757 = vector.extract_strided_slice %755 {offsets = [0, 0], sizes = [2, 32], strides = [1, 1]} : vector<2x96xf32> to vector<2x32xf32>
    %758 = arith.addf %756, %757 : vector<2x32xf32>
    %759 = arith.negf %758 : vector<2x32xf32>
    %760 = math.exp %759 : vector<2x32xf32>
    %cst_178 = arith.constant 1.000000e+00 : f32
    %761 = vector.broadcast %cst_178 : f32 to vector<2x32xf32>
    %762 = arith.addf %761, %760 : vector<2x32xf32>
    %763 = arith.divf %761, %762 : vector<2x32xf32>
    %764 = vector.extract_strided_slice %752 {offsets = [0, 32], sizes = [2, 32], strides = [1, 1]} : vector<2x96xf32> to vector<2x32xf32>
    %765 = vector.extract_strided_slice %755 {offsets = [0, 32], sizes = [2, 32], strides = [1, 1]} : vector<2x96xf32> to vector<2x32xf32>
    %766 = arith.addf %764, %765 : vector<2x32xf32>
    %767 = arith.negf %766 : vector<2x32xf32>
    %768 = math.exp %767 : vector<2x32xf32>
    %cst_179 = arith.constant 1.000000e+00 : f32
    %769 = vector.broadcast %cst_179 : f32 to vector<2x32xf32>
    %770 = arith.addf %769, %768 : vector<2x32xf32>
    %771 = arith.divf %769, %770 : vector<2x32xf32>
    %772 = vector.extract_strided_slice %752 {offsets = [0, 64], sizes = [2, 32], strides = [1, 1]} : vector<2x96xf32> to vector<2x32xf32>
    %773 = vector.extract_strided_slice %755 {offsets = [0, 64], sizes = [2, 32], strides = [1, 1]} : vector<2x96xf32> to vector<2x32xf32>
    %774 = arith.mulf %763, %773 : vector<2x32xf32>
    %775 = arith.addf %772, %774 : vector<2x32xf32>
    %776 = math.tanh %775 : vector<2x32xf32>
    %cst_180 = arith.constant 1.000000e+00 : f32
    %777 = vector.broadcast %cst_180 : f32 to vector<2x32xf32>
    %778 = arith.subf %777, %771 : vector<2x32xf32>
    %779 = arith.mulf %778, %776 : vector<2x32xf32>
    %780 = arith.mulf %771, %750 : vector<2x32xf32>
    %781 = arith.addf %779, %780 : vector<2x32xf32>
    %c6_181 = arith.constant 6 : index
    %c0_182 = arith.constant 0 : index
    %782 = vector.load %arg23[%c6_181, %c0_182] : memref<16x32xf32, #tpu.memory_space<vmem>>, vector<2x32xf32>
    tpu.vector_store %arg23[%c6_181, %c0_182], %781 {strides = array<i32>} : memref<16x32xf32, #tpu.memory_space<vmem>>, vector<2x32xf32>,
    %c0_183 = arith.constant 0 : index
    %c0_184 = arith.constant 0 : index
    %783 = vector.load %arg23[%c0_183, %c0_184] : memref<16x32xf32, #tpu.memory_space<vmem>>, vector<8x32xf32>
    %c0_185 = arith.constant 0 : index
    %c0_186 = arith.constant 0 : index
    %784 = vector.load %arg20[%c0_185, %c0_186] : memref<32x3xf32, #tpu.memory_space<vmem>>, vector<32x3xf32>
    %cst_187 = arith.constant dense<0.000000e+00> : vector<8x3xf32>
    %785 = tpu.matmul %783, %784, %cst_187 {dimension_numbers = #tpu.dot_dimension_numbers<[1], [0], [0], [1], [0, 0, 1, 1], [], []>} : vector<8x32xf32>, vector<32x3xf32>, vector<8x3xf32> -> vector<8x3xf32>
    %c0_188 = arith.constant 0 : index
    %c0_189 = arith.constant 0 : index
    %786 = vector.load %arg21[%c0_188, %c0_189] : memref<1x3xf32, #tpu.memory_space<vmem>>, vector<1x3xf32>
    %787 = vector.broadcast %786 : vector<1x3xf32> to vector<8x3xf32>
    %788 = arith.addf %785, %787 : vector<8x3xf32>
    %c0_190 = arith.constant 0 : index
    %c0_191 = arith.constant 0 : index
    %789 = vector.load %arg22[%c0_190, %c0_191] : memref<8x3xf32, #tpu.memory_space<vmem>>, vector<8x3xf32>
    tpu.vector_store %arg22[%c0_190, %c0_191], %788 {strides = array<i32>} : memref<8x3xf32, #tpu.memory_space<vmem>>, vector<8x3xf32>,
    return
  }
  func.func @transform_0(%arg0: i32) -> (i32, i32) {
    %c0_i32 = arith.constant 0 : i32
    %c0_i32_0 = arith.constant 0 : i32
    %c0_i32_1 = arith.constant 0 : i32
    return %c0_i32, %c0_i32_0 : i32, i32
  }
  func.func @transform_1(%arg0: i32) -> (i32, i32) {
    %c0_i32 = arith.constant 0 : i32
    %c0_i32_0 = arith.constant 0 : i32
    %c0_i32_1 = arith.constant 0 : i32
    return %c0_i32, %c0_i32_0 : i32, i32
  }
  func.func @transform_2(%arg0: i32) -> (i32, i32) {
    %c0_i32 = arith.constant 0 : i32
    %c0_i32_0 = arith.constant 0 : i32
    %c0_i32_1 = arith.constant 0 : i32
    return %c0_i32, %c0_i32_0 : i32, i32
  }
  func.func @transform_3(%arg0: i32) -> (i32, i32) {
    %c0_i32 = arith.constant 0 : i32
    %c0_i32_0 = arith.constant 0 : i32
    %c0_i32_1 = arith.constant 0 : i32
    return %c0_i32, %c0_i32_0 : i32, i32
  }
  func.func @transform_4(%arg0: i32) -> (i32, i32) {
    %c0_i32 = arith.constant 0 : i32
    %c0_i32_0 = arith.constant 0 : i32
    %c0_i32_1 = arith.constant 0 : i32
    return %c0_i32, %c0_i32_0 : i32, i32
  }
  func.func @transform_5(%arg0: i32) -> (i32, i32) {
    %c0_i32 = arith.constant 0 : i32
    %c0_i32_0 = arith.constant 0 : i32
    %c0_i32_1 = arith.constant 0 : i32
    return %c0_i32, %c0_i32_0 : i32, i32
  }
  func.func @transform_6(%arg0: i32) -> (i32, i32) {
    %c0_i32 = arith.constant 0 : i32
    %c0_i32_0 = arith.constant 0 : i32
    %c0_i32_1 = arith.constant 0 : i32
    return %c0_i32, %c0_i32_0 : i32, i32
  }
  func.func @transform_7(%arg0: i32) -> (i32, i32) {
    %c0_i32 = arith.constant 0 : i32
    %c0_i32_0 = arith.constant 0 : i32
    %c0_i32_1 = arith.constant 0 : i32
    return %c0_i32, %c0_i32_0 : i32, i32
  }
  func.func @transform_8(%arg0: i32) -> (i32, i32) {
    %c0_i32 = arith.constant 0 : i32
    %c0_i32_0 = arith.constant 0 : i32
    %c0_i32_1 = arith.constant 0 : i32
    return %c0_i32, %c0_i32_0 : i32, i32
  }
  func.func @transform_9(%arg0: i32) -> (i32, i32) {
    %c0_i32 = arith.constant 0 : i32
    %c0_i32_0 = arith.constant 0 : i32
    %c0_i32_1 = arith.constant 0 : i32
    return %c0_i32, %c0_i32_0 : i32, i32
  }
  func.func @transform_10(%arg0: i32) -> (i32, i32) {
    %c0_i32 = arith.constant 0 : i32
    %c0_i32_0 = arith.constant 0 : i32
    %c0_i32_1 = arith.constant 0 : i32
    return %c0_i32, %c0_i32_0 : i32, i32
  }
  func.func @transform_11(%arg0: i32) -> (i32, i32) {
    %c0_i32 = arith.constant 0 : i32
    %c0_i32_0 = arith.constant 0 : i32
    %c0_i32_1 = arith.constant 0 : i32
    return %c0_i32, %c0_i32_0 : i32, i32
  }
  func.func @transform_12(%arg0: i32) -> (i32, i32) {
    %c0_i32 = arith.constant 0 : i32
    %c0_i32_0 = arith.constant 0 : i32
    %c0_i32_1 = arith.constant 0 : i32
    return %c0_i32, %c0_i32_0 : i32, i32
  }
  func.func @transform_13(%arg0: i32) -> (i32, i32) {
    %c0_i32 = arith.constant 0 : i32
    %c0_i32_0 = arith.constant 0 : i32
    %c0_i32_1 = arith.constant 0 : i32
    return %c0_i32, %c0_i32_0 : i32, i32
  }
  func.func @transform_14(%arg0: i32) -> (i32, i32) {
    %c0_i32 = arith.constant 0 : i32
    %c0_i32_0 = arith.constant 0 : i32
    %c0_i32_1 = arith.constant 0 : i32
    return %c0_i32, %c0_i32_0 : i32, i32
  }
  func.func @transform_15(%arg0: i32) -> (i32, i32) {
    %c0_i32 = arith.constant 0 : i32
    %c0_i32_0 = arith.constant 0 : i32
    %c0_i32_1 = arith.constant 0 : i32
    return %c0_i32, %c0_i32_0 : i32, i32
  }
  func.func @transform_16(%arg0: i32) -> (i32, i32) {
    %c0_i32 = arith.constant 0 : i32
    %c0_i32_0 = arith.constant 0 : i32
    %c0_i32_1 = arith.constant 0 : i32
    return %c0_i32, %c0_i32_0 : i32, i32
  }
  func.func @transform_17(%arg0: i32) -> (i32, i32) {
    %c0_i32 = arith.constant 0 : i32
    %c0_i32_0 = arith.constant 0 : i32
    %c0_i32_1 = arith.constant 0 : i32
    return %c0_i32, %c0_i32_0 : i32, i32
  }
  func.func @transform_18(%arg0: i32) -> (i32, i32) {
    %c0_i32 = arith.constant 0 : i32
    %c0_i32_0 = arith.constant 0 : i32
    %c0_i32_1 = arith.constant 0 : i32
    return %c0_i32, %c0_i32_0 : i32, i32
  }
  func.func @transform_19(%arg0: i32) -> (i32, i32) {
    %c0_i32 = arith.constant 0 : i32
    %c0_i32_0 = arith.constant 0 : i32
    %c0_i32_1 = arith.constant 0 : i32
    return %c0_i32, %c0_i32_0 : i32, i32
  }
  func.func @transform_20(%arg0: i32) -> (i32, i32) {
    %c0_i32 = arith.constant 0 : i32
    %c0_i32_0 = arith.constant 0 : i32
    %c0_i32_1 = arith.constant 0 : i32
    return %c0_i32, %c0_i32_0 : i32, i32
  }
  func.func @transform_21(%arg0: i32) -> (i32, i32) {
    %c0_i32 = arith.constant 0 : i32
    %c0_i32_0 = arith.constant 0 : i32
    %c0_i32_1 = arith.constant 0 : i32
    return %c0_i32, %c0_i32_0 : i32, i32
  }
}

</mosaic_0001>

<bundles_post_ra>
// kernel: encoder_decoder_forward.1
= control target key start
LH: loop header
LB: loop body
LE: loop exit
PB: predicated region body
PF: predicated region fallthrough
CT: control target
= control target key end

     0   :  { %vm85_vm0 = vcmask 1046528   ;;  %vm78_vm1 = vcmask 56320   ;;  %v4096_v0 = vmov 0.0|0.0   ;;  %vm4097_vm2 = vmmov 0   ;;  %s4100_s30 = smov 96   ;;  %s4866_s3 = inlined_call_operand.vmem [shape: f32[32,96], index: 3, kind: input, shape index: {}]   ;;  %s4867_s2 = inlined_call_operand.vmem [shape: f32[7,96], index: 2, kind: input, shape index: {}]   ;;  %s4868_s0 = inlined_call_operand.vmem [shape: f32[16,7], index: 0, kind: input, shape index: {}]   ;;  %s4869_s4 = inlined_call_operand.vmem [shape: f32[1,96], index: 4, kind: input, shape index: {}]   ;;  %s4870_s5 = inlined_call_operand.vmem [shape: f32[1,96], index: 5, kind: input, shape index: {}]   ;;  %s4871_s7 = inlined_call_operand.vmem [shape: f32[32,96], index: 7, kind: input, shape index: {}]   ;;  %s4872_s6 = inlined_call_operand.vmem [shape: f32[32,96], index: 6, kind: input, shape index: {}]   ;;  %s4873_s9 = inlined_call_operand.vmem [shape: f32[1,96], index: 9, kind: input, shape index: {}]   ;;  %s4874_s8 = inlined_call_operand.vmem [shape: f32[1,96], index: 8, kind: input, shape index: {}]   ;;  %s4875_s11 = inlined_call_operand.vmem [shape: f32[32,96], index: 11, kind: input, shape index: {}]   ;;  %s4876_s10 = inlined_call_operand.vmem [shape: f32[7,96], index: 10, kind: input, shape index: {}]   ;;  %s4877_s1 = inlined_call_operand.vmem [shape: f32[8,7], index: 1, kind: input, shape index: {}]   ;;  %s4878_s12 = inlined_call_operand.vmem [shape: f32[32,96], index: 12, kind: input, shape index: {}]   ;;  %s4879_s13 = inlined_call_operand.vmem [shape: f32[1,96], index: 13, kind: input, shape index: {}]   ;;  %s4880_s14 = inlined_call_operand.vmem [shape: f32[1,96], index: 14, kind: input, shape index: {}]   ;;  %s4881_s16 = inlined_call_operand.vmem [shape: f32[32,96], index: 16, kind: input, shape index: {}]   ;;  %s4882_s18 = inlined_call_operand.vmem [shape: f32[1,96], index: 18, kind: input, shape index: {}]   ;;  %s4883_s15 = inlined_call_operand.vmem [shape: f32[32,96], index: 15, kind: input, shape index: {}]   ;;  %s4884_s17 = inlined_call_operand.vmem [shape: f32[1,96], index: 17, kind: input, shape index: {}]   ;;  %s4885_s19 = inlined_call_operand.vmem [shape: f32[32,3], index: 19, kind: input, shape index: {}]   ;;  %s4886_s20 = inlined_call_operand.vmem [shape: f32[1,3], index: 20, kind: input, shape index: {}]   ;;  %s4887_s21 = inlined_call_operand.vmem [shape: f32[8,3], index: 21, kind: output, shape index: {}]  }
   0x1   :  { %4891 = sst [smem:[#allocation3_spill]] %s4866_s3  ;;  %3777 = vmatprep.subr.bf16.mxu1 %v4096_v0  ;;  %v4098_v8 = vmov 0.0   ;;  %vm279_vm3 = vcmask 254976   ;;  %vm175_vm4 = vcmask 261120   ;;  %vm387_vm5 = vcmask 257026  }
   0x2   :  { %4892 = sst [smem:[#allocation4_spill]] %s4867_s2  ;;  %s4897_s26 = sld [smem:[#allocation3_spill]]  ;;  %3472 = vmatprep.mubr.msk.f32.mxu1 %vm4097_vm2, %v4098_v8  ;;  %vm609_vm6 = vcmask 261126   ;;  %vm498_vm7 = vcmask 259076   ;;  %vm3242_vm8 = vcmask 23552  }
   0x3   :  { %4893 = sst [smem:[#allocation5_spill]] %s4868_s0  ;;  %s4898_s3 = sld [smem:[#allocation4_spill]] }
   0x4   :  { %4894 = sst [smem:[#allocation6_spill]] %s4869_s4  ;;  %s4899_s24 = sld [smem:[#allocation5_spill]] }
   0x5   :  { %4895 = sst [smem:[#allocation7_spill]] %s4870_s5  ;;  %s4900_s4 = sld [smem:[#allocation6_spill]] }
   0x6   :  { %4896 = sst [smem:[#allocation8_spill]] %s4871_s7  ;;  %s4099_s5 = smov 64  }
   0x7   :  { %s4902_s23 = sld [smem:[#allocation8_spill]] }
   0x8   :  { %v164_v1 = vld [vmem:[%s4897_s26] sm:$0xff]  ;;  %v165_v2 = vld [vmem:[%s4897_s26 + $0x8] sm:$0xff]  ;;  %v166_v5 = vld [vmem:[%s4897_s26 + $0x10] sm:$0xff] }
   0x9   :  { %v70_v3 = vld [vmem:[%s4898_s3] sm:$0x7f]  ;;  %v4221_v4 = vpack.c.bf16 %v165_v2, %v164_v1  ;;  %v167_v6 = vld [vmem:[%s4897_s26 + $0x18] sm:$0xff]  ;;  %s4901_s3 = sld [smem:[#allocation7_spill]] }
   0xa   :  { %3459 = vmatprep.subr.msk.mxu0 %vm85_vm0, %v70_v3  ;;  %v68_v7 = vld [vmem:[%s4899_s24] sm:$0xff]  ;;  %v69_v9 = vld [vmem:[%s4899_s24 + $0x8] sm:$0xff]  ;;  %v4241_v10 = vpack.c.bf16 %v167_v6, %v166_v5 }
   0xb   :  { %3460 = vmatpush3.msk.msra.mxu0 %vm85_vm0, %v70_v3  ;;  %3461 = vmatprep.mubr.msk.f32.mxu0 %vm78_vm1, %v68_v7  ;;  %v3248_v12 = vld [vmem:[%s4900_s4] ss:$0 sm:$0xff] }
   0xc   :  { %3779 = vmatpush3.bf16.msra.mxu1 %v4221_v4  ;;  %3462 = vmatmul.mubr.msk.f32.vlgmr.msra.gmra.mrb[0].mxu0 %vm78_vm1, %v69_v9 }
   0xd   :  { %3780 = vmatprep.subr.bf16.mxu1 %v4096_v0  ;;  %3783 = vmatprep.subr.bf16.mxu0 %v4096_v0 }
   0xe   :  { %3785 = vmatpush3.bf16.msra.mxu0 %v4221_v4  ;;  %3483 = vmatprep.mubr.msk.f32.mxu0 %vm4097_vm2, %v4098_v8 }
   0xf   :  { %3786 = vmatprep.subr.bf16.mxu0 %v4096_v0  ;;  %v4269_v15 = vld [vmem:[%s4901_s3] ss:$0 sm:$0xff] }
  0x10   :  { %3782 = vmatpush3.bf16.msra.mxu1 %v4241_v10 }
  0x11   :  { %3789 = vmatprep.subr.bf16.mxu1 %v4096_v0 }
  0x12   :  { %3788 = vmatpush3.bf16.msra.mxu0 %v4241_v10 }
  0x13   :  { %3473 = vmatmul.mubr.f32.vlgmr.msra.gmra.mrb[0].mxu1 %v4098_v8  ;;  %3795 = vmatprep.subr.bf16.mxu0 %v4096_v0 }
  0x14   :  { %3791 = vmatpush3.bf16.msra.mxu1 %v4221_v4  ;;  %3494 = vmatprep.mubr.msk.f32.mxu1 %vm4097_vm2, %v4098_v8 }
  0x15   :  { %3792 = vmatprep.subr.bf16.mxu1 %v4096_v0 }
  0x18   :  { %3794 = vmatpush3.bf16.msra.mxu1 %v4241_v10 }
  0x19   :  { %3801 = vmatprep.subr.bf16.mxu1 %v4096_v0 }
  0xdf   :  { %v3463_v11 = vpop.f32.mrb[0].mxu0 }
  0xe0   :  { %v4264_v13 = vadd.f32 %v3463_v11, %v3248_v12  ;;  %v155_v14 = vpop.f32.mrb[1].mxu0 }
  0xe1   :  { %v4273_v19 = vadd.f32 %v3248_v12, %v155_v14 }
  0xe6   :  { %v245_v16 = vpop.f32.mrb[0].mxu1 }
  0xe7   :  { %v246_v17 = vadd.f32 %v4269_v15, %v245_v16  ;;  %v3474_v18 = vpop.f32.mrb[1].mxu1 }
  0xe9   :  { %257 = vrot.lane.b32.xlu0 %v246_v17, %s4099_s5  ;;  %v249_v20 = vadd.f32 %v246_v17, %v4273_v19 }
  0xeb   :  { %v3253_v21 = vmul.f32 -1.442695, %v249_v20 }
  0xed   :  { %3952 = vpow2.f32 %v3253_v21 }
  0xf7   :  { %v3953_v22 = vpop.eup %3952 }
  0xf8   :  { %v253_v23 = vadd.f32 1.0, %v3953_v22 }
  0xfa   :  { %3954 = vrcp.f32 %v253_v23 }
 0x104   :  { %v3955_v24 = vpop.eup %3954 }
 0x105   :  { %v267_v30 = vsub.f32 1.0, %v3955_v24  ;;  %v273_v32 = vmul.f32 0.0, %v3955_v24 }
 0x15b   :  { %v258_v25 = vpop.permute.xlu0 %257 }
 0x15c   :  { %v260_v26 = vmul.f32 %v3955_v24, %v258_v25 }
 0x15e   :  { %262 = vrot.lane.b32.xlu0 %v260_v26, %s4099_s5 }
 0x1d0   :  { %v263_v27 = vpop.permute.xlu0 %262 }
 0x1d1   :  { %v265_v28 = vadd.f32 %v263_v27, %v4273_v19 }
 0x1d3   :  { %3956 = vtanh.f32 %v265_v28 }
 0x1dd   :  { %v3957_v29 = vpop.eup %3956 }
 0x1de   :  { %269 = vrot.lane.b32.xlu1 %v3957_v29, %s4100_s30 }
 0x250   :  { %v270_v31 = vpop.permute.xlu1 %269 }
 0x251   :  { %v272_v33 = vmul.f32 %v270_v31, %v267_v30 }
 0x253   :  { %v274_v34 = vadd.f32 %v273_v32, %v272_v33 }
 0x255   :  { %276 = vrot.lane.b32.xlu1 %v274_v34, %s4100_s30  ;;  %v379_v50 = vrot.slane %v274_v34, 6 }
 0x2c7   :  { %v277_v35 = vpop.permute.xlu1 %276 }
 0x2c8   :  { %280 = vst.msk [vmem:[#allocation2] sm:$0x3] %vm279_vm3, %v277_v35  ;;  %3484 = vmatmul.mubr.msk.f32.vlgmr.msra.gmra.mrb[2].mxu0 %vm175_vm4, %v277_v35 }
 0x2c9   :  { %3797 = vmatpush3.bf16.msra.mxu0 %v4221_v4  ;;  %3505 = vmatprep.mubr.msk.f32.mxu0 %vm4097_vm2, %v4098_v8 }
 0x2ca   :  { %3798 = vmatprep.subr.bf16.mxu0 %v4096_v0 }
 0x2cd   :  { %3800 = vmatpush3.bf16.msra.mxu0 %v4241_v10 }
 0x2ce   :  { %3807 = vmatprep.subr.bf16.mxu0 %v4096_v0 }
 0x39b   :  { %v349_v36 = vpop.f32.mrb[2].mxu0 }
 0x39c   :  { %v350_v37 = vadd.f32 %v4269_v15, %v349_v36  ;;  %v3485_v38 = vpop.f32.mrb[3].mxu0 }
 0x39e   :  { %v354_v39 = vrot.slane %v350_v37, 6 }
 0x3a0   :  { %363 = vrot.lane.b32.xlu0 %v354_v39, %s4099_s5  ;;  %v356_v40 = vadd.f32 %v354_v39, %v4273_v19 }
 0x3a2   :  { %v3255_v41 = vmul.f32 -1.442695, %v356_v40 }
 0x3a4   :  { %3958 = vpow2.f32 %v3255_v41 }
 0x3ae   :  { %v3959_v42 = vpop.eup %3958 }
 0x3af   :  { %v360_v43 = vadd.f32 1.0, %v3959_v42 }
 0x3b1   :  { %3960 = vrcp.f32 %v360_v43 }
 0x3bb   :  { %v3961_v44 = vpop.eup %3960 }
 0x3bc   :  { %v373_v51 = vsub.f32 1.0, %v3961_v44  ;;  %v381_v54 = vmul.f32 %v3961_v44, %v379_v50 }
 0x412   :  { %v364_v45 = vpop.permute.xlu0 %363 }
 0x413   :  { %v366_v46 = vmul.f32 %v3961_v44, %v364_v45 }
 0x415   :  { %368 = vrot.lane.b32.xlu1 %v366_v46, %s4099_s5 }
 0x487   :  { %v369_v47 = vpop.permute.xlu1 %368 }
 0x488   :  { %v371_v48 = vadd.f32 %v369_v47, %v4273_v19 }
 0x48a   :  { %3962 = vtanh.f32 %v371_v48 }
 0x494   :  { %v3963_v49 = vpop.eup %3962 }
 0x495   :  { %375 = vrot.lane.b32.xlu0 %v3963_v49, %s4100_s30 }
 0x507   :  { %v376_v52 = vpop.permute.xlu0 %375 }
 0x508   :  { %v378_v53 = vmul.f32 %v376_v52, %v373_v51 }
 0x50a   :  { %v4294_v55 = vadd.f32 %v381_v54, %v378_v53 }
 0x50c   :  { %v389_v56 = vrot.slane %v4294_v55, 2  ;;  %v490_v14 = vrot.slane %v4294_v55, 6 }
 0x50e   :  { %390 = vrot.lane.b32.xlu1 %v389_v56, %s4100_s30 }
 0x580   :  { %v391_v57 = vpop.permute.xlu1 %390 }
 0x581   :  { %3495 = vmatmul.mubr.msk.f32.vlgmr.msra.gmra.mrb[2].mxu1 %vm175_vm4, %v391_v57 }
 0x582   :  { %3803 = vmatpush3.bf16.msra.mxu1 %v4221_v4  ;;  %3516 = vmatprep.mubr.msk.f32.mxu1 %vm4097_vm2, %v4098_v8 }
 0x583   :  { %3804 = vmatprep.subr.bf16.mxu1 %v4096_v0 }
 0x586   :  { %3806 = vmatpush3.bf16.msra.mxu1 %v4241_v10 }
 0x587   :  { %3813 = vmatprep.subr.bf16.mxu1 %v4096_v0 }
 0x654   :  { %v460_v58 = vpop.f32.mrb[2].mxu1 }
 0x655   :  { %v461_v59 = vadd.f32 %v4269_v15, %v460_v58  ;;  %v3496_v60 = vpop.f32.mrb[3].mxu1 }
 0x657   :  { %v465_v61 = vrot.slane %v461_v59, 4 }
 0x659   :  { %474 = vrot.lane.b32.xlu0 %v465_v61, %s4099_s5  ;;  %v467_v62 = vadd.f32 %v465_v61, %v4273_v19 }
 0x65b   :  { %v3257_v63 = vmul.f32 -1.442695, %v467_v62 }
 0x65d   :  { %3964 = vpow2.f32 %v3257_v63 }
 0x667   :  { %v3965_v1 = vpop.eup %3964 }
 0x668   :  { %v471_v2 = vadd.f32 1.0, %v3965_v1 }
 0x66a   :  { %3966 = vrcp.f32 %v471_v2 }
 0x674   :  { %v3967_v3 = vpop.eup %3966 }
 0x675   :  { %v484_v12 = vsub.f32 1.0, %v3967_v3  ;;  %v492_v17 = vmul.f32 %v3967_v3, %v490_v14 }
 0x6cb   :  { %v475_v5 = vpop.permute.xlu0 %474 }
 0x6cc   :  { %v477_v6 = vmul.f32 %v3967_v3, %v475_v5 }
 0x6ce   :  { %479 = vrot.lane.b32.xlu1 %v477_v6, %s4099_s5 }
 0x740   :  { %v480_v7 = vpop.permute.xlu1 %479 }
 0x741   :  { %v482_v9 = vadd.f32 %v480_v7, %v4273_v19 }
 0x743   :  { %3968 = vtanh.f32 %v482_v9 }
 0x74d   :  { %v3969_v11 = vpop.eup %3968 }
 0x74e   :  { %486 = vrot.lane.b32.xlu0 %v3969_v11, %s4100_s30 }
 0x7c0   :  { %v487_v16 = vpop.permute.xlu0 %486 }
 0x7c1   :  { %v489_v18 = vmul.f32 %v487_v16, %v484_v12 }
 0x7c3   :  { %v4312_v20 = vadd.f32 %v492_v17, %v489_v18 }
 0x7c5   :  { %v500_v21 = vrot.slane %v4312_v20, 4  ;;  %v601_v38 = vrot.slane %v4312_v20, 6 }
 0x7c7   :  { %501 = vrot.lane.b32.xlu1 %v500_v21, %s4100_s30 }
 0x839   :  { %v502_v22 = vpop.permute.xlu1 %501 }
 0x83a   :  { %3506 = vmatmul.mubr.msk.f32.vlgmr.msra.gmra.mrb[4].mxu0 %vm175_vm4, %v502_v22 }
 0x83b   :  { %3809 = vmatpush3.bf16.msra.mxu0 %v4221_v4  ;;  %3527 = vmatprep.mubr.msk.f32.mxu0 %vm4097_vm2, %v4098_v8 }
 0x83c   :  { %3810 = vmatprep.subr.bf16.mxu0 %v4096_v0 }
 0x83f   :  { %3812 = vmatpush3.bf16.msra.mxu0 %v4241_v10 }
 0x840   :  { %3819 = vmatprep.subr.bf16.mxu0 %v4096_v0 }
 0x90d   :  { %v571_v23 = vpop.f32.mrb[4].mxu0 }
 0x90e   :  { %v572_v24 = vadd.f32 %v4269_v15, %v571_v23  ;;  %v3507_v25 = vpop.f32.mrb[5].mxu0 }
 0x910   :  { %v576_v26 = vrot.slane %v572_v24, 2 }
 0x912   :  { %585 = vrot.lane.b32.xlu0 %v576_v26, %s4099_s5  ;;  %v578_v27 = vadd.f32 %v576_v26, %v4273_v19 }
 0x914   :  { %v3259_v28 = vmul.f32 -1.442695, %v578_v27 }
 0x916   :  { %3970 = vpow2.f32 %v3259_v28 }
 0x920   :  { %v3971_v29 = vpop.eup %3970 }
 0x921   :  { %v582_v30 = vadd.f32 1.0, %v3971_v29 }
 0x923   :  { %3972 = vrcp.f32 %v582_v30 }
 0x92d   :  { %v3973_v31 = vpop.eup %3972 }
 0x92e   :  { %v595_v37 = vsub.f32 1.0, %v3973_v31  ;;  %v603_v40 = vmul.f32 %v3973_v31, %v601_v38 }
 0x984   :  { %v586_v32 = vpop.permute.xlu0 %585 }
 0x985   :  { %v588_v33 = vmul.f32 %v3973_v31, %v586_v32 }
 0x987   :  { %590 = vrot.lane.b32.xlu1 %v588_v33, %s4099_s5 }
 0x9f9   :  { %v591_v34 = vpop.permute.xlu1 %590 }
 0x9fa   :  { %v593_v35 = vadd.f32 %v591_v34, %v4273_v19 }
 0x9fc   :  { %3974 = vtanh.f32 %v593_v35 }
 0xa06   :  { %v3975_v36 = vpop.eup %3974 }
 0xa07   :  { %597 = vrot.lane.b32.xlu0 %v3975_v36, %s4100_s30 }
 0xa79   :  { %v598_v39 = vpop.permute.xlu0 %597 }
 0xa7a   :  { %v600_v41 = vmul.f32 %v598_v39, %v595_v37 }
 0xa7c   :  { %v4330_v42 = vadd.f32 %v603_v40, %v600_v41 }
 0xa7e   :  { %v611_v43 = vrot.slane %v4330_v42, 6 }
 0xa80   :  { %612 = vrot.lane.b32.xlu1 %v611_v43, %s4100_s30 }
 0xaf2   :  { %v613_v44 = vpop.permute.xlu1 %612 }
 0xaf3   :  { %3517 = vmatmul.mubr.msk.f32.vlgmr.msra.gmra.mrb[4].mxu1 %vm175_vm4, %v613_v44 }
 0xaf4   :  { %3815 = vmatpush3.bf16.msra.mxu1 %v4221_v4  ;;  %3538 = vmatprep.mubr.msk.f32.mxu1 %vm4097_vm2, %v4098_v8 }
 0xaf5   :  { %3816 = vmatprep.subr.bf16.mxu1 %v4096_v0 }
 0xaf8   :  { %3818 = vmatpush3.bf16.msra.mxu1 %v4241_v10 }
 0xbc6   :  { %v682_v19 = vpop.f32.mrb[4].mxu1 }
 0xbc7   :  { %v683_v45 = vadd.f32 %v4269_v15, %v682_v19  ;;  %v3518_v46 = vpop.f32.mrb[5].mxu1 }
 0xbc9   :  { %694 = vrot.lane.b32.xlu0 %v683_v45, %s4099_s5  ;;  %v686_v47 = vadd.f32 %v683_v45, %v4264_v13 }
 0xbcb   :  { %v3261_v48 = vmul.f32 -1.442695, %v686_v47 }
 0xbcd   :  { %3976 = vpow2.f32 %v3261_v48 }
 0xbd7   :  { %v3977_v49 = vpop.eup %3976 }
 0xbd8   :  { %v690_v50 = vadd.f32 1.0, %v3977_v49 }
 0xbda   :  { %3978 = vrcp.f32 %v690_v50 }
 0xbe4   :  { %v3979_v51 = vpop.eup %3978 }
 0xbe5   :  { %v704_v58 = vsub.f32 1.0, %v3979_v51  ;;  %v711_v60 = vmul.f32 %v3979_v51, %v611_v43 }
 0xc3b   :  { %v695_v52 = vpop.permute.xlu0 %694 }
 0xc3c   :  { %v697_v53 = vmul.f32 %v3979_v51, %v695_v52 }
 0xc3e   :  { %699 = vrot.lane.b32.xlu1 %v697_v53, %s4099_s5 }
 0xcb0   :  { %v700_v54 = vpop.permute.xlu1 %699 }
 0xcb1   :  { %v702_v56 = vadd.f32 %v700_v54, %v4264_v13 }
 0xcb3   :  { %3980 = vtanh.f32 %v702_v56 }
 0xcbd   :  { %v3981_v57 = vpop.eup %3980 }
 0xcbe   :  { %706 = vrot.lane.b32.xlu0 %v3981_v57, %s4100_s30 }
 0xd30   :  { %v707_v59 = vpop.permute.xlu0 %706 }
 0xd31   :  { %v709_v61 = vmul.f32 %v707_v59, %v704_v58 }
 0xd33   :  { %v712_v62 = vadd.f32 %v711_v60, %v709_v61 }
 0xd35   :  { %714 = vrot.lane.b32.xlu1 %v712_v62, %s4100_s30  ;;  %v816_v18 = vrot.slane %v712_v62, 6 }
 0xda7   :  { %v715_v63 = vpop.permute.xlu1 %714 }
 0xda8   :  { %717 = vst.msk [vmem:[#allocation2 + $0x8] sm:$0x3] %vm279_vm3, %v715_v63  ;;  %3528 = vmatmul.mubr.msk.f32.vlgmr.msra.gmra.mrb[6].mxu0 %vm175_vm4, %v715_v63 }
 0xda9   :  { %3821 = vmatpush3.bf16.msra.mxu0 %v4221_v4  ;;  %3549 = vmatprep.mubr.msk.f32.mxu0 %vm4097_vm2, %v4098_v8 }
 0xdaa   :  { %3822 = vmatprep.subr.bf16.mxu0 %v4096_v0 }
 0xdad   :  { %3824 = vmatpush3.bf16.msra.mxu0 %v4241_v10 }
 0xdae   :  { %3833 = vmatprep.subr.bf16.mxu0 %v4096_v0 }
 0xe7b   :  { %v786_v1 = vpop.f32.mrb[6].mxu0 }
 0xe7c   :  { %v787_v2 = vadd.f32 %v4269_v15, %v786_v1  ;;  %v3529_v3 = vpop.f32.mrb[7].mxu0 }
 0xe7d   :  { %v1141_v3 = vld [vmem:[%s4902_s23 + $0x10] sm:$0xff] }
 0xe7e   :  { %v791_v5 = vrot.slane %v787_v2, 6 }
 0xe80   :  { %800 = vrot.lane.b32.xlu0 %v791_v5, %s4099_s5  ;;  %v793_v6 = vadd.f32 %v791_v5, %v4264_v13 }
 0xe82   :  { %v3263_v7 = vmul.f32 -1.442695, %v793_v6  ;;  %v1142_v6 = vld [vmem:[%s4902_s23 + $0x18] sm:$0xff] }
 0xe84   :  { %3982 = vpow2.f32 %v3263_v7  ;;  %v4410_v7 = vpack.c.bf16 %v1142_v6, %v1141_v3 }
 0xe8e   :  { %v3983_v4 = vpop.eup %3982 }
 0xe8f   :  { %v797_v9 = vadd.f32 1.0, %v3983_v4  ;;  %v1048_v4 = vld [vmem:[%s4872_s6 + $0x8] sm:$0xff] }
 0xe91   :  { %3984 = vrcp.f32 %v797_v9 }
 0xe9b   :  { %v3985_v11 = vpop.eup %3984 }
 0xe9c   :  { %v810_v21 = vsub.f32 1.0, %v3985_v11  ;;  %v818_v24 = vmul.f32 %v3985_v11, %v816_v18 }
 0xef2   :  { %v801_v12 = vpop.permute.xlu0 %800 }
 0xef3   :  { %v803_v14 = vmul.f32 %v3985_v11, %v801_v12  ;;  %v1049_v11 = vld [vmem:[%s4872_s6 + $0x10] sm:$0xff]  ;;  %v1050_v12 = vld [vmem:[%s4872_s6 + $0x18] sm:$0xff] }
 0xef5   :  { %805 = vrot.lane.b32.xlu1 %v803_v14, %s4099_s5  ;;  %v3829_v14 = vpack.c.bf16 %v1050_v12, %v1049_v11 }
 0xf67   :  { %v806_v10 = vpop.permute.xlu1 %805 }
 0xf68   :  { %v808_v16 = vadd.f32 %v806_v10, %v4264_v13 }
 0xf6a   :  { %3986 = vtanh.f32 %v808_v16 }
 0xf74   :  { %v3987_v17 = vpop.eup %3986 }
 0xf75   :  { %812 = vrot.lane.b32.xlu0 %v3987_v17, %s4100_s30 }
 0xfe7   :  { %v813_v22 = vpop.permute.xlu0 %812 }
 0xfe8   :  { %v815_v23 = vmul.f32 %v813_v22, %v810_v21 }
 0xfea   :  { %v4361_v25 = vadd.f32 %v818_v24, %v815_v23 }
 0xfec   :  { %v825_v26 = vrot.slane %v4361_v25, 2  ;;  %v926_v44 = vrot.slane %v4361_v25, 6 }
 0xfee   :  { %826 = vrot.lane.b32.xlu1 %v825_v26, %s4100_s30  ;;  %v4450_v26 = vld [vmem:[%s4873_s9] ss:$0 sm:$0xff] }
0x1060   :  { %v827_v27 = vpop.permute.xlu1 %826 }
0x1061   :  { %3539 = vmatmul.mubr.msk.f32.vlgmr.msra.gmra.mrb[6].mxu1 %vm175_vm4, %v827_v27 }
0x1134   :  { %v896_v28 = vpop.f32.mrb[6].mxu1 }
0x1135   :  { %v897_v29 = vadd.f32 %v4269_v15, %v896_v28  ;;  %v3540_v30 = vpop.f32.mrb[7].mxu1 }
0x1137   :  { %v901_v31 = vrot.slane %v897_v29, 4 }
0x1139   :  { %910 = vrot.lane.b32.xlu0 %v901_v31, %s4099_s5  ;;  %v903_v32 = vadd.f32 %v901_v31, %v4264_v13 }
0x113b   :  { %v3265_v33 = vmul.f32 -1.442695, %v903_v32  ;;  %v3268_v32 = vld [vmem:[%s4874_s8] ss:$0 sm:$0xff] }
0x113d   :  { %3988 = vpow2.f32 %v3265_v33 }
0x1147   :  { %v3989_v34 = vpop.eup %3988 }
0x1148   :  { %v907_v35 = vadd.f32 1.0, %v3989_v34 }
0x114a   :  { %3990 = vrcp.f32 %v907_v35 }
0x1154   :  { %v3991_v36 = vpop.eup %3990 }
0x1155   :  { %v920_v43 = vsub.f32 1.0, %v3991_v36  ;;  %v928_v45 = vmul.f32 %v3991_v36, %v926_v44 }
0x11ab   :  { %v911_v37 = vpop.permute.xlu0 %910 }
0x11ac   :  { %v913_v38 = vmul.f32 %v3991_v36, %v911_v37 }
0x11ae   :  { %915 = vrot.lane.b32.xlu1 %v913_v38, %s4099_s5 }
0x1220   :  { %v916_v39 = vpop.permute.xlu1 %915 }
0x1221   :  { %v918_v40 = vadd.f32 %v916_v39, %v4264_v13 }
0x1223   :  { %3992 = vtanh.f32 %v918_v40 }
0x122d   :  { %v3993_v41 = vpop.eup %3992 }
0x122e   :  { %922 = vrot.lane.b32.xlu0 %v3993_v41, %s4100_s30 }
0x12a0   :  { %v923_v19 = vpop.permute.xlu0 %922 }
0x12a1   :  { %v925_v46 = vmul.f32 %v923_v19, %v920_v43 }
0x12a3   :  { %v4373_v47 = vadd.f32 %v928_v45, %v925_v46 }
0x12a5   :  { %v935_v48 = vrot.slane %v4373_v47, 4  ;;  %v1036_v16 = vrot.slane %v4373_v47, 6 }
0x12a7   :  { %936 = vrot.lane.b32.xlu1 %v935_v48, %s4100_s30 }
0x1319   :  { %v937_v49 = vpop.permute.xlu1 %936 }
0x131a   :  { %3550 = vmatmul.mubr.msk.f32.vlgmr.msra.gmra.mrb[8].mxu0 %vm175_vm4, %v937_v49 }
0x131b   :  { %3571 = vmatprep.mubr.msk.f32.mxu0 %vm4097_vm2, %v4098_v8 }
0x13ed   :  { %v1006_v50 = vpop.f32.mrb[8].mxu0 }
0x13ee   :  { %v1007_v51 = vadd.f32 %v4269_v15, %v1006_v50  ;;  %v3551_v52 = vpop.f32.mrb[9].mxu0 }
0x13f0   :  { %v1011_v53 = vrot.slane %v1007_v51, 2 }
0x13f2   :  { %1020 = vrot.lane.b32.xlu0 %v1011_v53, %s4099_s5  ;;  %v1013_v54 = vadd.f32 %v1011_v53, %v4264_v13 }
0x13f4   :  { %v3267_v56 = vmul.f32 -1.442695, %v1013_v54 }
0x13f6   :  { %3994 = vpow2.f32 %v3267_v56 }
0x1400   :  { %v3995_v57 = vpop.eup %3994 }
0x1401   :  { %v1017_v58 = vadd.f32 1.0, %v3995_v57 }
0x1403   :  { %3996 = vrcp.f32 %v1017_v58 }
0x140d   :  { %v3997_v59 = vpop.eup %3996 }
0x140e   :  { %v1030_v10 = vsub.f32 1.0, %v3997_v59  ;;  %v1038_v18 = vmul.f32 %v3997_v59, %v1036_v16 }
0x1464   :  { %v1021_v60 = vpop.permute.xlu0 %1020 }
0x1465   :  { %v1023_v61 = vmul.f32 %v3997_v59, %v1021_v60 }
0x1467   :  { %1025 = vrot.lane.b32.xlu1 %v1023_v61, %s4099_s5 }
0x146b   :  { %384 = vrot.lane.b32.xlu1 %v4294_v55, %s4100_s30 }
0x146f   :  { %606 = vrot.lane.b32.xlu1 %v4330_v42, %s4100_s30  ;;  %v1140_v42 = vld [vmem:[%s4902_s23 + $0x8] sm:$0xff] }
0x1473   :  { %931 = vrot.lane.b32.xlu1 %v4373_v47, %s4100_s30 }
0x14d9   :  { %v1026_v15 = vpop.permute.xlu1 %1025 }
0x14da   :  { %v1028_v62 = vadd.f32 %v1026_v15, %v4264_v13  ;;  %v1139_v13 = vld [vmem:[%s4902_s23] sm:$0xff] }
0x14db   :  { %v4404_v5 = vpack.c.bf16 %v1140_v42, %v1139_v13 }
0x14dc   :  { %3998 = vtanh.f32 %v1028_v62 }
0x14dd   :  { %v385_v63 = vpop.permute.xlu1 %384  ;;  %3835 = vmatpush3.bf16.msra.mxu0 %v4404_v5 }
0x14de   :  { %388 = vst.msk [vmem:[#allocation2] sm:$0xc] %vm387_vm5, %v385_v63  ;;  %3836 = vmatprep.subr.bf16.mxu0 %v4096_v0 }
0x14e1   :  { %v607_v1 = vpop.permute.xlu1 %606  ;;  %3838 = vmatpush3.bf16.msra.mxu0 %v4410_v7 }
0x14e2   :  { %610 = vst.msk [vmem:[#allocation2] sm:$0xc0] %vm609_vm6, %v607_v1  ;;  %3845 = vmatprep.subr.bf16.mxu0 %v4096_v0 }
0x14e4   :  { %3572 = vmatmul.mubr.f32.vlgmr.msra.gmra.mrb[10].mxu0 %v4098_v8 }
0x14e5   :  { %v932_v55 = vpop.permute.xlu1 %931  ;;  %3847 = vmatpush3.bf16.msra.mxu0 %v4404_v5  ;;  %3593 = vmatprep.mubr.msk.f32.mxu0 %vm4097_vm2, %v4098_v8 }
0x14e6   :  { %v3999_v2 = vpop.eup %3998  ;;  %934 = vst.msk [vmem:[#allocation2 + $0x8] sm:$0x30] %vm498_vm7, %v932_v55  ;;  %3848 = vmatprep.subr.bf16.mxu0 %v4096_v0 }
0x14e7   :  { %1032 = vrot.lane.b32.xlu0 %v3999_v2, %s4100_s30 }
0x14e9   :  { %3850 = vmatpush3.bf16.msra.mxu0 %v4410_v7 }
0x14ea   :  { %3857 = vmatprep.subr.bf16.mxu0 %v4096_v0 }
0x14eb   :  { %495 = vrot.lane.b32.xlu0 %v4312_v20, %s4100_s30  ;;  %v1047_v20 = vld [vmem:[%s4872_s6] sm:$0xff] }
0x14ec   :  { %v3825_v9 = vpack.c.bf16 %v1048_v4, %v1047_v20 }
0x14ee   :  { %3826 = vmatprep.subr.bf16.mxu1 %v3825_v9 }
0x14ef   :  { %821 = vrot.lane.b32.xlu0 %v4361_v25, %s4100_s30  ;;  %3828 = vmatpush3.bf16.msra.mxu1 %v3825_v9 }
0x14f0   :  { %3830 = vmatprep.subr.bf16.mxu1 %v3829_v14 }
0x14f3   :  { %3832 = vmatpush3.bf16.msra.mxu1 %v3829_v14 }
0x14f4   :  { %3839 = vmatprep.subr.bf16.mxu1 %v4096_v0 }
0x1559   :  { %v1033_v17 = vpop.permute.xlu0 %1032 }
0x155a   :  { %v1035_v21 = vmul.f32 %v1033_v17, %v1030_v10 }
0x155c   :  { %v4440_v22 = vadd.f32 %v1038_v18, %v1035_v21 }
0x155d   :  { %v496_v23 = vpop.permute.xlu0 %495 }
0x155e   :  { %499 = vst.msk [vmem:[#allocation2] sm:$0x30] %vm498_vm7, %v496_v23  ;;  %1041 = vrot.lane.b32.xlu0 %v4440_v22, %s4100_s30 }
0x1561   :  { %v822_v24 = vpop.permute.xlu0 %821 }
0x1562   :  { %824 = vst.msk [vmem:[#allocation2 + $0x8] sm:$0xc] %vm387_vm5, %v822_v24 }
0x1565   :  { %v1045_v25 = vld [vmem:[#allocation2] sm:$0xff] }
0x1566   :  { %3560 = vmatprep.mubr.msk.f32.mxu1 %vm175_vm4, %v1045_v25 }
0x15b7   :  { %v1216_v27 = vpop.f32.mrb[10].mxu0 }
0x15b8   :  { %v1217_v28 = vadd.f32 %v4450_v26, %v1216_v27  ;;  %v3573_v29 = vpop.f32.mrb[11].mxu0 }
0x15ba   :  { %1228 = vrot.lane.b32.xlu1 %v1217_v28, %s4099_s5 }
0x15d0   :  { %v1042_v30 = vpop.permute.xlu0 %1041 }
0x15d1   :  { %1044 = vst.msk [vmem:[#allocation2 + $0x8] sm:$0xc0] %vm609_vm6, %v1042_v30 }
0x15d8   :  { %v1046_v31 = vld [vmem:[#allocation2 + $0x8] sm:$0xff] }
0x15d9   :  { %3561 = vmatmul.mubr.msk.f32.vlgmr.msra.gmra.mrb[8].mxu1 %vm175_vm4, %v1046_v31 }
0x15da   :  { %3841 = vmatpush3.bf16.msra.mxu1 %v4404_v5  ;;  %3582 = vmatprep.mubr.msk.f32.mxu1 %vm4097_vm2, %v4098_v8 }
0x15db   :  { %3842 = vmatprep.subr.bf16.mxu1 %v4096_v0 }
0x15de   :  { %3844 = vmatpush3.bf16.msra.mxu1 %v4410_v7 }
0x15df   :  { %3851 = vmatprep.subr.bf16.mxu1 %v4096_v0 }
0x162c   :  { %v1229_v41 = vpop.permute.xlu1 %1228 }
0x16ac   :  { %v3562_v33 = vpop.f32.mrb[8].mxu1 }
0x16ad   :  { %v4465_v34 = vadd.f32 %v3562_v33, %v3268_v32  ;;  %v1130_v35 = vpop.f32.mrb[9].mxu1 }
0x16ae   :  { %v4467_v36 = vadd.f32 %v3268_v32, %v1130_v35 }
0x16b0   :  { %v1220_v37 = vadd.f32 %v1217_v28, %v4467_v36 }
0x16b2   :  { %v3272_v38 = vmul.f32 -1.442695, %v1220_v37 }
0x16b4   :  { %4000 = vpow2.f32 %v3272_v38 }
0x16be   :  { %v4001_v39 = vpop.eup %4000 }
0x16bf   :  { %v1224_v40 = vadd.f32 1.0, %v4001_v39 }
0x16c1   :  { %4002 = vrcp.f32 %v1224_v40 }
0x16cb   :  { %v4003_v43 = vpop.eup %4002 }
0x16cc   :  { %v1231_v44 = vmul.f32 %v4003_v43, %v1229_v41  ;;  %v1238_v47 = vsub.f32 1.0, %v4003_v43  ;;  %v1244_v49 = vmul.f32 0.0, %v4003_v43 }
0x16ce   :  { %1233 = vrot.lane.b32.xlu0 %v1231_v44, %s4099_s5 }
0x1740   :  { %v1234_v19 = vpop.permute.xlu0 %1233 }
0x1741   :  { %v1236_v45 = vadd.f32 %v1234_v19, %v4467_v36 }
0x1743   :  { %4004 = vtanh.f32 %v1236_v45 }
0x174d   :  { %v4005_v46 = vpop.eup %4004 }
0x174e   :  { %1240 = vrot.lane.b32.xlu1 %v4005_v46, %s4100_s30 }
0x17c0   :  { %v1241_v48 = vpop.permute.xlu1 %1240 }
0x17c1   :  { %v1243_v50 = vmul.f32 %v1241_v48, %v1238_v47 }
0x17c3   :  { %v1245_v51 = vadd.f32 %v1244_v49, %v1243_v50 }
0x17c5   :  { %1247 = vrot.lane.b32.xlu0 %v1245_v51, %s4100_s30  ;;  %v1349_v13 = vrot.slane %v1245_v51, 6 }
0x1837   :  { %v1248_v52 = vpop.permute.xlu0 %1247 }
0x1838   :  { %1250 = vst.msk [vmem:[#allocation2] sm:$0x3] %vm279_vm3, %v1248_v52  ;;  %3583 = vmatmul.mubr.msk.f32.vlgmr.msra.gmra.mrb[10].mxu1 %vm175_vm4, %v1248_v52 }
0x1839   :  { %3853 = vmatpush3.bf16.msra.mxu1 %v4404_v5  ;;  %3604 = vmatprep.mubr.msk.f32.mxu1 %vm4097_vm2, %v4098_v8 }
0x183a   :  { %3854 = vmatprep.subr.bf16.mxu1 %v4096_v0 }
0x183d   :  { %3856 = vmatpush3.bf16.msra.mxu1 %v4410_v7 }
0x183e   :  { %3863 = vmatprep.subr.bf16.mxu1 %v4096_v0 }
0x190b   :  { %v1319_v53 = vpop.f32.mrb[10].mxu1 }
0x190c   :  { %v1320_v54 = vadd.f32 %v4450_v26, %v1319_v53  ;;  %v3584_v56 = vpop.f32.mrb[11].mxu1 }
0x190e   :  { %v1324_v57 = vrot.slane %v1320_v54, 6 }
0x1910   :  { %1333 = vrot.lane.b32.xlu1 %v1324_v57, %s4099_s5  ;;  %v1326_v58 = vadd.f32 %v1324_v57, %v4467_v36 }
0x1912   :  { %v3274_v59 = vmul.f32 -1.442695, %v1326_v58 }
0x1914   :  { %4006 = vpow2.f32 %v3274_v59 }
0x191e   :  { %v4007_v60 = vpop.eup %4006 }
0x191f   :  { %v1330_v61 = vadd.f32 1.0, %v4007_v60 }
0x1921   :  { %4008 = vrcp.f32 %v1330_v61 }
0x192b   :  { %v4009_v15 = vpop.eup %4008 }
0x192c   :  { %v1343_v42 = vsub.f32 1.0, %v4009_v15  ;;  %v1351_v20 = vmul.f32 %v4009_v15, %v1349_v13 }
0x1982   :  { %v1334_v62 = vpop.permute.xlu1 %1333 }
0x1983   :  { %v1336_v63 = vmul.f32 %v4009_v15, %v1334_v62 }
0x1985   :  { %1338 = vrot.lane.b32.xlu0 %v1336_v63, %s4099_s5 }
0x19f7   :  { %v1339_v1 = vpop.permute.xlu0 %1338 }
0x19f8   :  { %v1341_v55 = vadd.f32 %v1339_v1, %v4467_v36 }
0x19fa   :  { %4010 = vtanh.f32 %v1341_v55 }
0x1a04   :  { %v4011_v2 = vpop.eup %4010 }
0x1a05   :  { %1345 = vrot.lane.b32.xlu1 %v4011_v2, %s4100_s30 }
0x1a77   :  { %v1346_v3 = vpop.permute.xlu1 %1345 }
0x1a78   :  { %v1348_v6 = vmul.f32 %v1346_v3, %v1343_v42 }
0x1a7a   :  { %v4488_v4 = vadd.f32 %v1351_v20, %v1348_v6 }
0x1a7c   :  { %v1358_v9 = vrot.slane %v4488_v4, 2  ;;  %v1459_v32 = vrot.slane %v4488_v4, 6 }
0x1a7e   :  { %1359 = vrot.lane.b32.xlu0 %v1358_v9, %s4100_s30 }
0x1af0   :  { %v1360_v11 = vpop.permute.xlu0 %1359 }
0x1af1   :  { %3594 = vmatmul.mubr.msk.f32.vlgmr.msra.gmra.mrb[12].mxu0 %vm175_vm4, %v1360_v11 }
0x1af2   :  { %3859 = vmatpush3.bf16.msra.mxu0 %v4404_v5  ;;  %3615 = vmatprep.mubr.msk.f32.mxu0 %vm4097_vm2, %v4098_v8 }
0x1af3   :  { %3860 = vmatprep.subr.bf16.mxu0 %v4096_v0 }
0x1af6   :  { %3862 = vmatpush3.bf16.msra.mxu0 %v4410_v7 }
0x1af7   :  { %3869 = vmatprep.subr.bf16.mxu0 %v4096_v0 }
0x1bc4   :  { %v1429_v12 = vpop.f32.mrb[12].mxu0 }
0x1bc5   :  { %v1430_v14 = vadd.f32 %v4450_v26, %v1429_v12  ;;  %v3595_v10 = vpop.f32.mrb[13].mxu0 }
0x1bc7   :  { %v1434_v16 = vrot.slane %v1430_v14, 4 }
0x1bc9   :  { %1443 = vrot.lane.b32.xlu1 %v1434_v16, %s4099_s5  ;;  %v1436_v17 = vadd.f32 %v1434_v16, %v4467_v36 }
0x1bcb   :  { %v3276_v18 = vmul.f32 -1.442695, %v1436_v17 }
0x1bcd   :  { %4012 = vpow2.f32 %v3276_v18 }
0x1bd7   :  { %v4013_v21 = vpop.eup %4012 }
0x1bd8   :  { %v1440_v23 = vadd.f32 1.0, %v4013_v21 }
0x1bda   :  { %4014 = vrcp.f32 %v1440_v23 }
0x1be4   :  { %v4015_v24 = vpop.eup %4014 }
0x1be5   :  { %v1453_v31 = vsub.f32 1.0, %v4015_v24  ;;  %v1461_v35 = vmul.f32 %v4015_v24, %v1459_v32 }
0x1c3b   :  { %v1444_v25 = vpop.permute.xlu1 %1443 }
0x1c3c   :  { %v1446_v27 = vmul.f32 %v4015_v24, %v1444_v25 }
0x1c3e   :  { %1448 = vrot.lane.b32.xlu0 %v1446_v27, %s4099_s5 }
0x1cb0   :  { %v1449_v28 = vpop.permute.xlu0 %1448 }
0x1cb1   :  { %v1451_v29 = vadd.f32 %v1449_v28, %v4467_v36 }
0x1cb3   :  { %4016 = vtanh.f32 %v1451_v29 }
0x1cbd   :  { %v4017_v30 = vpop.eup %4016 }
0x1cbe   :  { %1455 = vrot.lane.b32.xlu1 %v4017_v30, %s4100_s30 }
0x1d30   :  { %v1456_v33 = vpop.permute.xlu1 %1455 }
0x1d31   :  { %v1458_v37 = vmul.f32 %v1456_v33, %v1453_v31 }
0x1d33   :  { %v4506_v38 = vadd.f32 %v1461_v35, %v1458_v37 }
0x1d35   :  { %v1468_v39 = vrot.slane %v4506_v38, 4  ;;  %v1569_v57 = vrot.slane %v4506_v38, 6 }
0x1d37   :  { %1469 = vrot.lane.b32.xlu0 %v1468_v39, %s4100_s30 }
0x1da9   :  { %v1470_v40 = vpop.permute.xlu0 %1469 }
0x1daa   :  { %3605 = vmatmul.mubr.msk.f32.vlgmr.msra.gmra.mrb[12].mxu1 %vm175_vm4, %v1470_v40 }
0x1dab   :  { %3865 = vmatpush3.bf16.msra.mxu1 %v4404_v5  ;;  %3626 = vmatprep.mubr.msk.f32.mxu1 %vm4097_vm2, %v4098_v8 }
0x1dac   :  { %3866 = vmatprep.subr.bf16.mxu1 %v4096_v0 }
0x1daf   :  { %3868 = vmatpush3.bf16.msra.mxu1 %v4410_v7 }
0x1db0   :  { %3875 = vmatprep.subr.bf16.mxu1 %v4096_v0 }
0x1e7d   :  { %v1539_v41 = vpop.f32.mrb[12].mxu1 }
0x1e7e   :  { %v1540_v43 = vadd.f32 %v4450_v26, %v1539_v41  ;;  %v3606_v44 = vpop.f32.mrb[13].mxu1 }
0x1e80   :  { %v1544_v19 = vrot.slane %v1540_v43, 2 }
0x1e82   :  { %1553 = vrot.lane.b32.xlu1 %v1544_v19, %s4099_s5  ;;  %v1546_v45 = vadd.f32 %v1544_v19, %v4467_v36 }
0x1e84   :  { %v3278_v46 = vmul.f32 -1.442695, %v1546_v45 }
0x1e86   :  { %4018 = vpow2.f32 %v3278_v46 }
0x1e90   :  { %v4019_v47 = vpop.eup %4018 }
0x1e91   :  { %v1550_v48 = vadd.f32 1.0, %v4019_v47 }
0x1e93   :  { %4020 = vrcp.f32 %v1550_v48 }
0x1e9d   :  { %v4021_v49 = vpop.eup %4020 }
0x1e9e   :  { %v1563_v56 = vsub.f32 1.0, %v4021_v49  ;;  %v1571_v59 = vmul.f32 %v4021_v49, %v1569_v57 }
0x1ef4   :  { %v1554_v50 = vpop.permute.xlu1 %1553 }
0x1ef5   :  { %v1556_v51 = vmul.f32 %v4021_v49, %v1554_v50 }
0x1ef7   :  { %1558 = vrot.lane.b32.xlu0 %v1556_v51, %s4099_s5 }
0x1f69   :  { %v1559_v52 = vpop.permute.xlu0 %1558 }
0x1f6a   :  { %v1561_v53 = vadd.f32 %v1559_v52, %v4467_v36 }
0x1f6c   :  { %4022 = vtanh.f32 %v1561_v53 }
0x1f76   :  { %v4023_v54 = vpop.eup %4022 }
0x1f77   :  { %1565 = vrot.lane.b32.xlu1 %v4023_v54, %s4100_s30 }
0x1fe9   :  { %v1566_v58 = vpop.permute.xlu1 %1565 }
0x1fea   :  { %v1568_v60 = vmul.f32 %v1566_v58, %v1563_v56 }
0x1fec   :  { %v4524_v61 = vadd.f32 %v1571_v59, %v1568_v60 }
0x1fee   :  { %v1578_v15 = vrot.slane %v4524_v61, 6 }
0x1ff0   :  { %1579 = vrot.lane.b32.xlu0 %v1578_v15, %s4100_s30 }
0x2062   :  { %v1580_v62 = vpop.permute.xlu0 %1579 }
0x2063   :  { %3616 = vmatmul.mubr.msk.f32.vlgmr.msra.gmra.mrb[14].mxu0 %vm175_vm4, %v1580_v62 }
0x2064   :  { %3871 = vmatpush3.bf16.msra.mxu0 %v4404_v5  ;;  %3637 = vmatprep.mubr.msk.f32.mxu0 %vm4097_vm2, %v4098_v8 }
0x2065   :  { %3872 = vmatprep.subr.bf16.mxu0 %v4096_v0 }
0x2068   :  { %3874 = vmatpush3.bf16.msra.mxu0 %v4410_v7 }
0x2069   :  { %3881 = vmatprep.subr.bf16.mxu0 %v4096_v0 }
0x2136   :  { %v1649_v36 = vpop.f32.mrb[14].mxu0 }
0x2137   :  { %v1650_v63 = vadd.f32 %v4450_v26, %v1649_v36  ;;  %v3617_v1 = vpop.f32.mrb[15].mxu0 }
0x2139   :  { %1661 = vrot.lane.b32.xlu1 %v1650_v63, %s4099_s5  ;;  %v1653_v55 = vadd.f32 %v1650_v63, %v4465_v34 }
0x213b   :  { %v3280_v2 = vmul.f32 -1.442695, %v1653_v55 }
0x213d   :  { %4024 = vpow2.f32 %v3280_v2 }
0x2147   :  { %v4025_v13 = vpop.eup %4024 }
0x2148   :  { %v1657_v42 = vadd.f32 1.0, %v4025_v13 }
0x214a   :  { %4026 = vrcp.f32 %v1657_v42 }
0x2154   :  { %v4027_v3 = vpop.eup %4026 }
0x2155   :  { %v1671_v14 = vsub.f32 1.0, %v4027_v3  ;;  %v1678_v16 = vmul.f32 %v4027_v3, %v1578_v15 }
0x21ab   :  { %v1662_v6 = vpop.permute.xlu1 %1661 }
0x21ac   :  { %v1664_v20 = vmul.f32 %v4027_v3, %v1662_v6 }
0x21ae   :  { %1666 = vrot.lane.b32.xlu0 %v1664_v20, %s4099_s5 }
0x2220   :  { %v1667_v9 = vpop.permute.xlu0 %1666 }
0x2221   :  { %v1669_v11 = vadd.f32 %v1667_v9, %v4465_v34 }
0x2223   :  { %4028 = vtanh.f32 %v1669_v11 }
0x222d   :  { %v4029_v12 = vpop.eup %4028 }
0x222e   :  { %1673 = vrot.lane.b32.xlu1 %v4029_v12, %s4100_s30 }
0x22a0   :  { %v1674_v10 = vpop.permute.xlu1 %1673 }
0x22a1   :  { %v1676_v17 = vmul.f32 %v1674_v10, %v1671_v14 }
0x22a3   :  { %v1679_v18 = vadd.f32 %v1678_v16, %v1676_v17 }
0x22a5   :  { %1681 = vrot.lane.b32.xlu0 %v1679_v18, %s4100_s30  ;;  %v1783_v39 = vrot.slane %v1679_v18, 6 }
0x2317   :  { %v1682_v21 = vpop.permute.xlu0 %1681 }
0x2318   :  { %1684 = vst.msk [vmem:[#allocation2 + $0x8] sm:$0x3] %vm279_vm3, %v1682_v21  ;;  %3627 = vmatmul.mubr.msk.f32.vlgmr.msra.gmra.mrb[14].mxu1 %vm175_vm4, %v1682_v21 }
0x2319   :  { %3877 = vmatpush3.bf16.msra.mxu1 %v4404_v5  ;;  %3648 = vmatprep.mubr.msk.f32.mxu1 %vm4097_vm2, %v4098_v8 }
0x231a   :  { %3878 = vmatprep.subr.bf16.mxu1 %v4096_v0 }
0x231d   :  { %3880 = vmatpush3.bf16.msra.mxu1 %v4410_v7 }
0x231e   :  { %3662 = vmatprep.subr.mxu1 %v4098_v8 }
0x23eb   :  { %v1753_v23 = vpop.f32.mrb[14].mxu1 }
0x23ec   :  { %v1754_v24 = vadd.f32 %v4450_v26, %v1753_v23  ;;  %v3628_v25 = vpop.f32.mrb[15].mxu1 }
0x23ed   :  { %v2014_v25 = vld [vmem:[%s4875_s11 + $0x10] sm:$0xff] }
0x23ee   :  { %v1758_v27 = vrot.slane %v1754_v24, 6  ;;  %v2013_v24 = vld [vmem:[%s4875_s11 + $0x8] sm:$0xff] }
0x23f0   :  { %1767 = vrot.lane.b32.xlu1 %v1758_v27, %s4099_s5  ;;  %v1760_v28 = vadd.f32 %v1758_v27, %v4465_v34 }
0x23f2   :  { %v3282_v29 = vmul.f32 -1.442695, %v1760_v28  ;;  %v2015_v28 = vld [vmem:[%s4875_s11 + $0x18] sm:$0xff] }
0x23f4   :  { %4030 = vpow2.f32 %v3282_v29  ;;  %v2091_v29 = vld [vmem:[%s4877_s1] sm:$0xff] }
0x23fe   :  { %v4031_v5 = vpop.eup %4030 }
0x23ff   :  { %v1764_v30 = vadd.f32 1.0, %v4031_v5  ;;  %v3885_v5 = vpack.c.bf16 %v2015_v28, %v2014_v25 }
0x2401   :  { %4032 = vrcp.f32 %v1764_v30 }
0x240b   :  { %v4033_v31 = vpop.eup %4032 }
0x240c   :  { %v1777_v40 = vsub.f32 1.0, %v4033_v31  ;;  %v1785_v44 = vmul.f32 %v4033_v31, %v1783_v39 }
0x2462   :  { %v1768_v32 = vpop.permute.xlu1 %1767 }
0x2463   :  { %v1770_v33 = vmul.f32 %v4033_v31, %v1768_v32  ;;  %v2188_v31 = vrot.slane %v4440_v22, 6  ;;  %v2176_v32 = vld [vmem:[%s4878_s12] sm:$0xff] }
0x2465   :  { %1772 = vrot.lane.b32.xlu0 %v1770_v33, %s4099_s5  ;;  %v2177_v33 = vld [vmem:[%s4878_s12 + $0x8] sm:$0xff] }
0x24d7   :  { %v1773_v7 = vpop.permute.xlu0 %1772 }
0x24d8   :  { %v1775_v35 = vadd.f32 %v1773_v7, %v4465_v34  ;;  %v4618_v7 = vpack.c.bf16 %v2177_v33, %v2176_v32 }
0x24da   :  { %4034 = vtanh.f32 %v1775_v35  ;;  %v2178_v35 = vld [vmem:[%s4878_s12 + $0x10] sm:$0xff] }
0x24e4   :  { %v4035_v37 = vpop.eup %4034 }
0x24e5   :  { %1779 = vrot.lane.b32.xlu1 %v4035_v37, %s4100_s30  ;;  %v2179_v37 = vld [vmem:[%s4878_s12 + $0x18] sm:$0xff] }
0x24e6   :  { %v4628_v39 = vpack.c.bf16 %v2179_v37, %v2178_v35 }
0x2557   :  { %v1780_v41 = vpop.permute.xlu1 %1779 }
0x2558   :  { %v1782_v43 = vmul.f32 %v1780_v41, %v1777_v40 }
0x255a   :  { %v4556_v19 = vadd.f32 %v1785_v44, %v1782_v43 }
0x255c   :  { %v1792_v45 = vrot.slane %v4556_v19, 2  ;;  %v1893_v36 = vrot.slane %v4556_v19, 6 }
0x255e   :  { %1793 = vrot.lane.b32.xlu0 %v1792_v45, %s4100_s30 }
0x25d0   :  { %v1794_v46 = vpop.permute.xlu0 %1793 }
0x25d1   :  { %3638 = vmatmul.mubr.msk.f32.vlgmr.msra.gmra.mrb[16].mxu0 %vm175_vm4, %v1794_v46 }
0x25d2   :  { %3659 = vmatprep.mubr.msk.f32.mxu0 %vm4097_vm2, %v4098_v8 }
0x26a4   :  { %v1863_v47 = vpop.f32.mrb[16].mxu0 }
0x26a5   :  { %v1864_v48 = vadd.f32 %v4450_v26, %v1863_v47  ;;  %v3639_v49 = vpop.f32.mrb[17].mxu0 }
0x26a7   :  { %v1868_v50 = vrot.slane %v1864_v48, 4 }
0x26a9   :  { %1877 = vrot.lane.b32.xlu1 %v1868_v50, %s4099_s5  ;;  %v1870_v51 = vadd.f32 %v1868_v50, %v4465_v34 }
0x26ab   :  { %v3284_v52 = vmul.f32 -1.442695, %v1870_v51 }
0x26ad   :  { %4036 = vpow2.f32 %v3284_v52  ;;  %v3288_v52 = vld [vmem:[%s4879_s13] ss:$0 sm:$0xff] }
0x26b7   :  { %v4037_v53 = vpop.eup %4036 }
0x26b8   :  { %v1874_v54 = vadd.f32 1.0, %v4037_v53 }
0x26ba   :  { %4038 = vrcp.f32 %v1874_v54 }
0x26c4   :  { %v4039_v56 = vpop.eup %4038 }
0x26c5   :  { %v1887_v62 = vsub.f32 1.0, %v4039_v56  ;;  %v1895_v1 = vmul.f32 %v4039_v56, %v1893_v36 }
0x271b   :  { %v1878_v57 = vpop.permute.xlu1 %1877 }
0x271c   :  { %v1880_v58 = vmul.f32 %v4039_v56, %v1878_v57 }
0x271e   :  { %1882 = vrot.lane.b32.xlu0 %v1880_v58, %s4099_s5 }
0x2790   :  { %v1883_v59 = vpop.permute.xlu0 %1882 }
0x2791   :  { %v1885_v60 = vadd.f32 %v1883_v59, %v4465_v34 }
0x2793   :  { %4040 = vtanh.f32 %v1885_v60 }
0x279d   :  { %v4041_v15 = vpop.eup %4040 }
0x279e   :  { %1889 = vrot.lane.b32.xlu1 %v4041_v15, %s4100_s30 }
0x2810   :  { %v1890_v63 = vpop.permute.xlu1 %1889 }
0x2811   :  { %v1892_v55 = vmul.f32 %v1890_v63, %v1887_v62  ;;  %v4666_v63 = vld [vmem:[%s4880_s14] ss:$0 sm:$0xff] }
0x2813   :  { %v4570_v2 = vadd.f32 %v1895_v1, %v1892_v55 }
0x2815   :  { %v1902_v13 = vrot.slane %v4570_v2, 4  ;;  %v2003_v41 = vrot.slane %v4570_v2, 6 }
0x2817   :  { %1903 = vrot.lane.b32.xlu0 %v1902_v13, %s4100_s30 }
0x2889   :  { %v1904_v42 = vpop.permute.xlu0 %1903 }
0x288a   :  { %3649 = vmatmul.mubr.msk.f32.vlgmr.msra.gmra.mrb[16].mxu1 %vm175_vm4, %v1904_v42 }
0x288b   :  { %3664 = vmatprep.mubr.msk.f32.mxu1 %vm4097_vm2, %v4098_v8 }
0x295d   :  { %v1973_v3 = vpop.f32.mrb[16].mxu1 }
0x295e   :  { %v1974_v6 = vadd.f32 %v4450_v26, %v1973_v3  ;;  %v3650_v20 = vpop.f32.mrb[17].mxu1  ;;  %v2012_v26 = vld [vmem:[%s4875_s11] sm:$0xff] }
0x295f   :  { %v3882_v27 = vpack.c.bf16 %v2013_v24, %v2012_v26 }
0x2960   :  { %v1978_v9 = vrot.slane %v1974_v6, 2 }
0x2961   :  { %3883 = vmatpush3.bf16.msra.mxu0 %v3882_v27 }
0x2962   :  { %1987 = vrot.lane.b32.xlu1 %v1978_v9, %s4099_s5  ;;  %v1980_v11 = vadd.f32 %v1978_v9, %v4465_v34  ;;  %3884 = vmatprep.subr.bf16.mxu0 %v4096_v0 }
0x2964   :  { %v3286_v12 = vmul.f32 -1.442695, %v1980_v11 }
0x2965   :  { %3886 = vmatpush3.bf16.msra.mxu0 %v3885_v5 }
0x2966   :  { %4042 = vpow2.f32 %v3286_v12  ;;  %3887 = vmatprep.subr.bf16.mxu0 %v4096_v0 }
0x2970   :  { %v4043_v14 = vpop.eup %4042 }
0x2971   :  { %v1984_v10 = vadd.f32 1.0, %v4043_v14 }
0x2973   :  { %4044 = vrcp.f32 %v1984_v10 }
0x297d   :  { %v4045_v16 = vpop.eup %4044 }
0x297e   :  { %v1997_v40 = vsub.f32 1.0, %v4045_v16  ;;  %v2005_v44 = vmul.f32 %v4045_v16, %v2003_v41 }
0x29d4   :  { %v1988_v17 = vpop.permute.xlu1 %1987 }
0x29d5   :  { %v1990_v18 = vmul.f32 %v4045_v16, %v1988_v17 }
0x29d7   :  { %1992 = vrot.lane.b32.xlu0 %v1990_v18, %s4099_s5 }
0x2a49   :  { %v1993_v21 = vpop.permute.xlu0 %1992 }
0x2a4a   :  { %v1995_v23 = vadd.f32 %v1993_v21, %v4465_v34  ;;  %v2092_v34 = vld [vmem:[%s4876_s10] sm:$0x7f] }
0x2a4b   :  { %3663 = vmatpush3.msk.msra.mxu1 %vm85_vm0, %v2092_v34 }
0x2a4c   :  { %4046 = vtanh.f32 %v1995_v23  ;;  %3665 = vmatmul.mubr.msk.f32.vlgmr.msra.gmra.mrb[18].mxu1 %vm78_vm1, %v2091_v29  ;;  %3893 = vmatprep.subr.bf16.mxu1 %v4096_v0 }
0x2a4d   :  { %3686 = vmatprep.mubr.msk.f32.mxu1 %vm4097_vm2, %v4098_v8  ;;  %3895 = vmatpush3.bf16.msra.mxu1 %v4618_v7 }
0x2a4e   :  { %3896 = vmatprep.subr.bf16.mxu1 %v4096_v0 }
0x2a51   :  { %3898 = vmatpush3.bf16.msra.mxu1 %v4628_v39 }
0x2a52   :  { %3905 = vmatprep.subr.bf16.mxu1 %v4096_v0 }
0x2a56   :  { %v4047_v30 = vpop.eup %4046 }
0x2a57   :  { %1999 = vrot.lane.b32.xlu1 %v4047_v30, %s4100_s30 }
0x2a5b   :  { %2189 = vrot.lane.b32.xlu1 %v2188_v31, %s4100_s30 }
0x2ac9   :  { %v2000_v43 = vpop.permute.xlu1 %1999 }
0x2aca   :  { %v2002_v45 = vmul.f32 %v2000_v43, %v1997_v40 }
0x2acc   :  { %v4633_v46 = vadd.f32 %v2005_v44, %v2002_v45 }
0x2acd   :  { %v2190_v51 = vpop.permute.xlu1 %2189 }
0x2ace   :  { %v2016_v47 = vrot.slane %v4633_v46, 6 }
0x2ad0   :  { %2017 = vrot.lane.b32.xlu0 %v2016_v47, %s4100_s30 }
0x2b1f   :  { %v2172_v48 = vpop.f32.mrb[18].mxu1 }
0x2b20   :  { %v3666_v49 = vpop.f32.mrb[19].mxu1  ;;  %v2173_v53 = vadd.f32 %v3288_v52, %v2172_v48 }
0x2b42   :  { %v4639_v50 = vpop.permute.xlu0 %2017 }
0x2b43   :  { %3660 = vmatmul.mubr.msk.f32.vlgmr.msra.gmra.mrb[18].mxu0 %vm175_vm4, %v4639_v50 }
0x2b44   :  { %3889 = vmatpush3.bf16.msra.mxu0 %v4618_v7  ;;  %3675 = vmatprep.mubr.msk.f32.mxu0 %vm4097_vm2, %v4098_v8 }
0x2b45   :  { %3890 = vmatprep.subr.bf16.mxu0 %v4096_v0 }
0x2b48   :  { %3892 = vmatpush3.bf16.msra.mxu0 %v4628_v39 }
0x2b49   :  { %3899 = vmatprep.subr.bf16.mxu0 %v4096_v0 }
0x2b4b   :  { %3676 = vmatmul.mubr.msk.f32.vlgmr.msra.gmra.mrb[20].mxu0 %vm175_vm4, %v2190_v51 }
0x2b4c   :  { %3901 = vmatpush3.bf16.msra.mxu0 %v4618_v7  ;;  %3697 = vmatprep.mubr.msk.f32.mxu0 %vm4097_vm2, %v4098_v8 }
0x2b4d   :  { %3902 = vmatprep.subr.bf16.mxu0 %v4096_v0 }
0x2b50   :  { %3904 = vmatpush3.bf16.msra.mxu0 %v4628_v39 }
0x2b51   :  { %3911 = vmatprep.subr.bf16.mxu0 %v4096_v0 }
0x2c16   :  { %v2087_v54 = vpop.f32.mrb[18].mxu0 }
0x2c17   :  { %v2296_v56 = vrot.slane %v2087_v54, 6  ;;  %v2406_v57 = vrot.slane %v2087_v54, 4  ;;  %v2519_v58 = vrot.slane %v2087_v54, 2  ;;  %v3661_v59 = vpop.f32.mrb[19].mxu0  ;;  %v2181_v60 = vadd.f32 %v2173_v53, %v2087_v54 }
0x2c19   :  { %v2298_v15 = vadd.f32 %v2296_v56, %v2173_v53  ;;  %v4659_v62 = vadd.f32 %v2406_v57, %v2173_v53  ;;  %v4661_v36 = vadd.f32 %v2519_v58, %v2173_v53 }
0x2c1e   :  { %v2259_v1 = vpop.f32.mrb[20].mxu0 }
0x2c1f   :  { %v2260_v55 = vadd.f32 %v4666_v63, %v2259_v1  ;;  %v3677_v13 = vpop.f32.mrb[21].mxu0 }
0x2c21   :  { %2271 = vrot.lane.b32.xlu0 %v2260_v55, %s4099_s5  ;;  %v2263_v42 = vadd.f32 %v2260_v55, %v2181_v60 }
0x2c23   :  { %v3293_v3 = vmul.f32 -1.442695, %v2263_v42 }
0x2c25   :  { %4048 = vpow2.f32 %v3293_v3 }
0x2c2f   :  { %v4049_v6 = vpop.eup %4048 }
0x2c30   :  { %v2267_v20 = vadd.f32 1.0, %v4049_v6 }
0x2c32   :  { %4050 = vrcp.f32 %v2267_v20 }
0x2c3c   :  { %v4051_v9 = vpop.eup %4050 }
0x2c3d   :  { %v2281_v17 = vsub.f32 1.0, %v4051_v9  ;;  %v2288_v21 = vmul.f32 %v4051_v9, %v2188_v31 }
0x2c93   :  { %v2272_v11 = vpop.permute.xlu0 %2271 }
0x2c94   :  { %v2274_v12 = vmul.f32 %v4051_v9, %v2272_v11 }
0x2c96   :  { %2276 = vrot.lane.b32.xlu1 %v2274_v12, %s4099_s5 }
0x2d08   :  { %v2277_v14 = vpop.permute.xlu1 %2276 }
0x2d09   :  { %v2279_v10 = vadd.f32 %v2277_v14, %v2181_v60 }
0x2d0b   :  { %4052 = vtanh.f32 %v2279_v10  ;;  %v2718_v10 = vld [vmem:[%s4881_s16 + $0x8] sm:$0xff] }
0x2d15   :  { %v4053_v16 = vpop.eup %4052 }
0x2d16   :  { %2283 = vrot.lane.b32.xlu0 %v4053_v16, %s4100_s30 }
0x2d88   :  { %v2284_v18 = vpop.permute.xlu0 %2283 }
0x2d89   :  { %v2286_v23 = vmul.f32 %v2284_v18, %v2281_v17  ;;  %v2719_v17 = vld [vmem:[%s4881_s16 + $0x10] sm:$0xff]  ;;  %v2720_v18 = vld [vmem:[%s4881_s16 + $0x18] sm:$0xff] }
0x2d8b   :  { %v2289_v26 = vadd.f32 %v2288_v21, %v2286_v23  ;;  %v4721_v23 = vpack.c.bf16 %v2720_v18, %v2719_v17 }
0x2d8d   :  { %2291 = vrot.lane.b32.xlu1 %v2289_v26, %s4100_s30 }
0x2dff   :  { %v2292_v24 = vpop.permute.xlu1 %2291 }
0x2e00   :  { %2294 = vst.msk [vmem:[#allocation2] sm:$0x3] %vm279_vm3, %v2292_v24  ;;  %3687 = vmatmul.mubr.msk.f32.vlgmr.msra.gmra.mrb[20].mxu1 %vm175_vm4, %v2292_v24 }
0x2e01   :  { %3907 = vmatpush3.bf16.msra.mxu1 %v4618_v7  ;;  %3708 = vmatprep.mubr.msk.f32.mxu1 %vm4097_vm2, %v4098_v8 }
0x2e02   :  { %3908 = vmatprep.subr.bf16.mxu1 %v4096_v0 }
0x2e05   :  { %3910 = vmatpush3.bf16.msra.mxu1 %v4628_v39  ;;  %v2397_v39 = vrot.slane %v2289_v26, 6 }
0x2e06   :  { %3917 = vmatprep.subr.bf16.mxu1 %v4096_v0 }
0x2ed3   :  { %v2367_v22 = vpop.f32.mrb[20].mxu1 }
0x2ed4   :  { %v2368_v25 = vadd.f32 %v4666_v63, %v2367_v22  ;;  %v3688_v27 = vpop.f32.mrb[21].mxu1 }
0x2ed6   :  { %v2372_v28 = vrot.slane %v2368_v25, 6 }
0x2ed8   :  { %2381 = vrot.lane.b32.xlu0 %v2372_v28, %s4099_s5  ;;  %v2374_v34 = vadd.f32 %v2372_v28, %v2298_v15 }
0x2eda   :  { %v3295_v29 = vmul.f32 -1.442695, %v2374_v34 }
0x2edc   :  { %4054 = vpow2.f32 %v3295_v29 }
0x2ee6   :  { %v4055_v5 = vpop.eup %4054 }
0x2ee7   :  { %v2378_v30 = vadd.f32 1.0, %v4055_v5 }
0x2ee9   :  { %4056 = vrcp.f32 %v2378_v30 }
0x2ef3   :  { %v4057_v31 = vpop.eup %4056 }
0x2ef4   :  { %v2391_v40 = vsub.f32 1.0, %v4057_v31  ;;  %v2399_v44 = vmul.f32 %v4057_v31, %v2397_v39  ;;  %v2634_v39 = vld [vmem:[%s4883_s15 + $0x8] sm:$0xff] }
0x2f4a   :  { %v2382_v32 = vpop.permute.xlu0 %2381 }
0x2f4b   :  { %v2384_v33 = vmul.f32 %v4057_v31, %v2382_v32 }
0x2f4d   :  { %2386 = vrot.lane.b32.xlu1 %v2384_v33, %s4099_s5 }
0x2fbf   :  { %v2387_v7 = vpop.permute.xlu1 %2386 }
0x2fc0   :  { %v2389_v35 = vadd.f32 %v2387_v7, %v2298_v15 }
0x2fc2   :  { %4058 = vtanh.f32 %v2389_v35 }
0x2fcc   :  { %v4059_v37 = vpop.eup %4058 }
0x2fcd   :  { %2393 = vrot.lane.b32.xlu0 %v4059_v37, %s4100_s30 }
0x303f   :  { %v2394_v41 = vpop.permute.xlu0 %2393 }
0x3040   :  { %v2396_v43 = vmul.f32 %v2394_v41, %v2391_v40  ;;  %v2635_v41 = vld [vmem:[%s4883_s15 + $0x10] sm:$0xff] }
0x3042   :  { %v4687_v45 = vadd.f32 %v2399_v44, %v2396_v43 }
0x3044   :  { %v2409_v48 = vrot.slane %v4687_v45, 2  ;;  %v2510_v6 = vrot.slane %v4687_v45, 6 }
0x3046   :  { %2410 = vrot.lane.b32.xlu1 %v2409_v48, %s4100_s30 }
0x30b8   :  { %v2411_v49 = vpop.permute.xlu1 %2410 }
0x30b9   :  { %3698 = vmatmul.mubr.msk.f32.vlgmr.msra.gmra.mrb[22].mxu0 %vm175_vm4, %v2411_v49 }
0x30ba   :  { %3719 = vmatprep.mubr.msk.f32.mxu0 %vm4097_vm2, %v4098_v8 }
0x318c   :  { %v2480_v51 = vpop.f32.mrb[22].mxu0 }
0x318d   :  { %v2481_v52 = vadd.f32 %v4666_v63, %v2480_v51  ;;  %v3699_v53 = vpop.f32.mrb[23].mxu0 }
0x318f   :  { %v2485_v54 = vrot.slane %v2481_v52, 4 }
0x3191   :  { %2494 = vrot.lane.b32.xlu0 %v2485_v54, %s4099_s5  ;;  %v2487_v56 = vadd.f32 %v2485_v54, %v4659_v62 }
0x3193   :  { %v3297_v57 = vmul.f32 -1.442695, %v2487_v56 }
0x3195   :  { %4060 = vpow2.f32 %v3297_v57 }
0x319f   :  { %v4061_v58 = vpop.eup %4060 }
0x31a0   :  { %v2491_v59 = vadd.f32 1.0, %v4061_v58 }
0x31a2   :  { %4062 = vrcp.f32 %v2491_v59  ;;  %v3300_v59 = vld [vmem:[%s4884_s17] ss:$0 sm:$0xff] }
0x31ac   :  { %v4063_v60 = vpop.eup %4062 }
0x31ad   :  { %v2504_v3 = vsub.f32 1.0, %v4063_v60  ;;  %v2512_v9 = vmul.f32 %v4063_v60, %v2510_v6 }
0x3203   :  { %v2495_v15 = vpop.permute.xlu0 %2494 }
0x3204   :  { %v2497_v1 = vmul.f32 %v4063_v60, %v2495_v15 }
0x3206   :  { %2499 = vrot.lane.b32.xlu1 %v2497_v1, %s4099_s5 }
0x3278   :  { %v2500_v55 = vpop.permute.xlu1 %2499 }
0x3279   :  { %v2502_v13 = vadd.f32 %v2500_v55, %v4659_v62  ;;  %v2717_v62 = vld [vmem:[%s4881_s16] sm:$0xff] }
0x327a   :  { %v4711_v16 = vpack.c.bf16 %v2718_v10, %v2717_v62 }
0x327b   :  { %4064 = vtanh.f32 %v2502_v13 }
0x3285   :  { %v4065_v42 = vpop.eup %4064 }
0x3286   :  { %2506 = vrot.lane.b32.xlu0 %v4065_v42, %s4100_s30 }
0x32f8   :  { %v2507_v20 = vpop.permute.xlu0 %2506 }
0x32f9   :  { %v2509_v11 = vmul.f32 %v2507_v20, %v2504_v3 }
0x32fb   :  { %v4701_v12 = vadd.f32 %v2512_v9, %v2509_v11 }
0x32fd   :  { %v2522_v14 = vrot.slane %v4701_v12, 4 }
0x32ff   :  { %2523 = vrot.lane.b32.xlu1 %v2522_v14, %s4100_s30 }
0x3371   :  { %v2524_v21 = vpop.permute.xlu1 %2523 }
0x3372   :  { %3709 = vmatmul.mubr.msk.f32.vlgmr.msra.gmra.mrb[22].mxu1 %vm175_vm4, %v2524_v21 }
0x3373   :  { %3919 = vmatpush3.bf16.msra.mxu1 %v4711_v16  ;;  %3730 = vmatprep.mubr.msk.f32.mxu1 %vm4097_vm2, %v4098_v8 }
0x3374   :  { %3920 = vmatprep.subr.bf16.mxu1 %v4096_v0 }
0x3377   :  { %3922 = vmatpush3.bf16.msra.mxu1 %v4721_v23 }
0x3378   :  { %3929 = vmatprep.subr.bf16.mxu1 %v4096_v0 }
0x337a   :  { %3731 = vmatmul.mubr.msk.f32.vlgmr.msra.gmra.mrb[24].mxu1 %vm175_vm4, %v4639_v50 }
0x337b   :  { %3931 = vmatpush3.bf16.msra.mxu1 %v4711_v16  ;;  %3752 = vmatprep.mubr.msk.f32.mxu1 %vm4097_vm2, %v4098_v8 }
0x337c   :  { %3932 = vmatprep.subr.bf16.mxu1 %v4096_v0 }
0x337f   :  { %3934 = vmatpush3.bf16.msra.mxu1 %v4721_v23 }
0x3380   :  { %3941 = vmatprep.subr.bf16.mxu1 %v4096_v0 }
0x3445   :  { %v2593_v26 = vpop.f32.mrb[22].mxu1 }
0x3446   :  { %v2594_v24 = vadd.f32 %v4666_v63, %v2593_v26  ;;  %v3710_v22 = vpop.f32.mrb[23].mxu1  ;;  %v4747_v63 = vld [vmem:[%s4882_s18] ss:$0 sm:$0xff] }
0x3448   :  { %v2598_v25 = vrot.slane %v2594_v24, 2 }
0x344a   :  { %2607 = vrot.lane.b32.xlu0 %v2598_v25, %s4099_s5  ;;  %v2600_v28 = vadd.f32 %v2598_v25, %v4661_v36 }
0x344c   :  { %v3299_v34 = vmul.f32 -1.442695, %v2600_v28 }
0x344d   :  { %v2794_v27 = vpop.f32.mrb[24].mxu1 }
0x344e   :  { %v3732_v50 = vpop.f32.mrb[25].mxu1  ;;  %4066 = vpow2.f32 %v3299_v34  ;;  %v2795_v33 = vadd.f32 %v4747_v63, %v2794_v27 }
0x3458   :  { %v4067_v29 = vpop.eup %4066 }
0x3459   :  { %v2604_v5 = vadd.f32 1.0, %v4067_v29 }
0x345b   :  { %4068 = vrcp.f32 %v2604_v5 }
0x3465   :  { %v4069_v30 = vpop.eup %4068 }
0x3466   :  { %v2617_v44 = vsub.f32 1.0, %v4069_v30 }
0x34bc   :  { %v2608_v31 = vpop.permute.xlu0 %2607 }
0x34bd   :  { %v2610_v32 = vmul.f32 %v4069_v30, %v2608_v31 }
0x34bf   :  { %2612 = vrot.lane.b32.xlu1 %v2610_v32, %s4099_s5 }
0x34c3   :  { %1354 = vrot.lane.b32.xlu1 %v4488_v4, %s4100_s30 }
0x34c7   :  { %1574 = vrot.lane.b32.xlu1 %v4524_v61, %s4100_s30 }
0x34cb   :  { %2515 = vrot.lane.b32.xlu1 %v4701_v12, %s4100_s30 }
0x34cf   :  { %2806 = vrot.lane.b32.xlu1 %v2795_v33, %s4099_s5 }
0x3531   :  { %v2613_v7 = vpop.permute.xlu1 %2612 }
0x3532   :  { %v2615_v35 = vadd.f32 %v2613_v7, %v4661_v36  ;;  %v2633_v36 = vld [vmem:[%s4883_s15] sm:$0xff] }
0x3533   :  { %v3912_v40 = vpack.c.bf16 %v2634_v39, %v2633_v36 }
0x3534   :  { %4070 = vtanh.f32 %v2615_v35 }
0x3535   :  { %v1355_v4 = vpop.permute.xlu1 %1354  ;;  %3913 = vmatpush3.bf16.msra.mxu0 %v3912_v40 }
0x3536   :  { %1357 = vst.msk [vmem:[#allocation2] sm:$0xc] %vm387_vm5, %v1355_v4  ;;  %3914 = vmatprep.subr.bf16.mxu0 %v4096_v0 }
0x3539   :  { %v1575_v61 = vpop.permute.xlu1 %1574 }
0x353a   :  { %1577 = vst.msk [vmem:[#allocation2] sm:$0xc0] %vm609_vm6, %v1575_v61 }
0x353d   :  { %v2516_v54 = vpop.permute.xlu1 %2515 }
0x353e   :  { %v4071_v37 = vpop.eup %4070 }
0x353f   :  { %2619 = vrot.lane.b32.xlu0 %v4071_v37, %s4100_s30 }
0x3541   :  { %v2807_v20 = vpop.permute.xlu1 %2806 }
0x3543   :  { %1464 = vrot.lane.b32.xlu0 %v4506_v38, %s4100_s30  ;;  %v2636_v38 = vld [vmem:[%s4883_s15 + $0x18] sm:$0xff] }
0x3544   :  { %v3915_v43 = vpack.c.bf16 %v2636_v38, %v2635_v41 }
0x3546   :  { %3916 = vmatpush3.bf16.msra.mxu0 %v3915_v43 }
0x3547   :  { %2402 = vrot.lane.b32.xlu0 %v4687_v45, %s4100_s30  ;;  %v2623_v45 = vrot.slane %v4701_v12, 6  ;;  %3923 = vmatprep.subr.bf16.mxu0 %v4096_v0 }
0x3549   :  { %v2625_v49 = vmul.f32 %v4069_v30, %v2623_v45 }
0x35b1   :  { %v2620_v48 = vpop.permute.xlu0 %2619 }
0x35b2   :  { %v2622_v51 = vmul.f32 %v2620_v48, %v2617_v44 }
0x35b4   :  { %v2626_v52 = vadd.f32 %v2625_v49, %v2622_v51 }
0x35b5   :  { %v1465_v53 = vpop.permute.xlu0 %1464 }
0x35b6   :  { %1467 = vst.msk [vmem:[#allocation2] sm:$0x30] %vm498_vm7, %v1465_v53  ;;  %2628 = vrot.lane.b32.xlu0 %v2626_v52, %s4100_s30 }
0x35b7   :  { %2518 = vst.msk [vmem:[#allocation2] sm:$0x30] %vm498_vm7, %v2516_v54 }
0x35b9   :  { %v2403_v56 = vpop.permute.xlu0 %2402 }
0x35ba   :  { %2405 = vst.msk [vmem:[#allocation2] sm:$0xc] %vm387_vm5, %v2403_v56 }
0x3628   :  { %v2629_v57 = vpop.permute.xlu0 %2628 }
0x3629   :  { %2631 = vst.msk [vmem:[#allocation2] sm:$0xc0] %vm609_vm6, %v2629_v57 }
0x3630   :  { %v2632_v58 = vld [vmem:[#allocation2] sm:$0xff] }
0x3631   :  { %3720 = vmatmul.mubr.msk.f32.vlgmr.msra.gmra.mrb[24].mxu0 %vm175_vm4, %v2632_v58 }
0x3632   :  { %3925 = vmatpush3.bf16.msra.mxu0 %v4711_v16  ;;  %3741 = vmatprep.mubr.msk.f32.mxu0 %vm4097_vm2, %v4098_v8 }
0x3633   :  { %3926 = vmatprep.subr.bf16.mxu0 %v4096_v0 }
0x3636   :  { %3928 = vmatpush3.bf16.msra.mxu0 %v4721_v23 }
0x3637   :  { %3935 = vmatprep.subr.bf16.mxu0 %v4096_v0 }
0x3704   :  { %v2713_v60 = vpop.f32.mrb[24].mxu0 }
0x3705   :  { %v4791_v15 = vadd.f32 %v3300_v59, %v2713_v60  ;;  %v3721_v1 = vpop.f32.mrb[25].mxu0 }
0x3707   :  { %v2798_v55 = vadd.f32 %v2795_v33, %v4791_v15 }
0x3709   :  { %v3304_v13 = vmul.f32 -1.442695, %v2798_v55 }
0x370b   :  { %4072 = vpow2.f32 %v3304_v13 }
0x3715   :  { %v4073_v42 = vpop.eup %4072 }
0x3716   :  { %v2802_v3 = vadd.f32 1.0, %v4073_v42 }
0x3718   :  { %4074 = vrcp.f32 %v2802_v3 }
0x3722   :  { %v4075_v6 = vpop.eup %4074 }
0x3723   :  { %v2809_v9 = vmul.f32 %v4075_v6, %v2807_v20  ;;  %v2816_v62 = vsub.f32 1.0, %v4075_v6  ;;  %v2823_v17 = vmul.f32 %v4075_v6, %v2016_v47 }
0x3725   :  { %2811 = vrot.lane.b32.xlu0 %v2809_v9, %s4099_s5 }
0x3797   :  { %v2812_v11 = vpop.permute.xlu0 %2811 }
0x3798   :  { %v2814_v12 = vadd.f32 %v2812_v11, %v4791_v15 }
0x379a   :  { %4076 = vtanh.f32 %v2814_v12 }
0x37a4   :  { %v4077_v14 = vpop.eup %4076 }
0x37a5   :  { %2818 = vrot.lane.b32.xlu1 %v4077_v14, %s4100_s30 }
0x3817   :  { %v2819_v10 = vpop.permute.xlu1 %2818 }
0x3818   :  { %v2821_v18 = vmul.f32 %v2819_v10, %v2816_v62 }
0x381a   :  { %v2824_v21 = vadd.f32 %v2823_v17, %v2821_v18 }
0x381c   :  { %2826 = vrot.lane.b32.xlu0 %v2824_v21, %s4100_s30  ;;  %v2928_v32 = vrot.slane %v2824_v21, 6 }
0x388e   :  { %v2827_v26 = vpop.permute.xlu0 %2826 }
0x388f   :  { %2829 = vst.msk [vmem:[#allocation2] sm:$0x3] %vm279_vm3, %v2827_v26  ;;  %3742 = vmatmul.mubr.msk.f32.vlgmr.msra.gmra.mrb[26].mxu0 %vm175_vm4, %v2827_v26 }
0x3890   :  { %3937 = vmatpush3.bf16.msra.mxu0 %v4711_v16  ;;  %3763 = vmatprep.mubr.msk.f32.mxu0 %vm4097_vm2, %v4098_v8 }
0x3891   :  { %3938 = vmatprep.subr.bf16.mxu0 %v4096_v0 }
0x3894   :  { %3940 = vmatpush3.bf16.msra.mxu0 %v4721_v23 }
0x3962   :  { %v2898_v24 = vpop.f32.mrb[26].mxu0 }
0x3963   :  { %v2899_v47 = vadd.f32 %v4747_v63, %v2898_v24  ;;  %v3743_v22 = vpop.f32.mrb[27].mxu0  ;;  %v3158_v24 = vld [vmem:[%s4885_s19] sm:$0xff] }
0x3964   :  { %v3160_v22 = vld [vmem:[%s4885_s19 + $0x10] sm:$0xff] }
0x3965   :  { %v2903_v25 = vrot.slane %v2899_v47, 6 }
0x3967   :  { %2912 = vrot.lane.b32.xlu1 %v2903_v25, %s4099_s5  ;;  %v2905_v27 = vadd.f32 %v2903_v25, %v4791_v15 }
0x3969   :  { %v3306_v50 = vmul.f32 -1.442695, %v2905_v27 }
0x396b   :  { %4078 = vpow2.f32 %v3306_v50 }
0x3975   :  { %v4079_v28 = vpop.eup %4078 }
0x3976   :  { %v2909_v16 = vadd.f32 1.0, %v4079_v28 }
0x3978   :  { %4080 = vrcp.f32 %v2909_v16 }
0x3982   :  { %v4081_v34 = vpop.eup %4080 }
0x3983   :  { %v2922_v33 = vsub.f32 1.0, %v4081_v34  ;;  %v2930_v35 = vmul.f32 %v4081_v34, %v2928_v32  ;;  %v3311_v32 = vld [vmem:[%s4886_s20] ss:$0 sm:$0xff] }
0x39d9   :  { %v2913_v29 = vpop.permute.xlu1 %2912 }
0x39da   :  { %v2915_v5 = vmul.f32 %v4081_v34, %v2913_v29 }
0x39dc   :  { %2917 = vrot.lane.b32.xlu0 %v2915_v5, %s4099_s5 }
0x3a4e   :  { %v2918_v23 = vpop.permute.xlu0 %2917 }
0x3a4f   :  { %v2920_v30 = vadd.f32 %v2918_v23, %v4791_v15 }
0x3a51   :  { %4082 = vtanh.f32 %v2920_v30 }
0x3a5b   :  { %v4083_v31 = vpop.eup %4082 }
0x3a5c   :  { %2924 = vrot.lane.b32.xlu1 %v4083_v31, %s4100_s30 }
0x3ace   :  { %v2925_v7 = vpop.permute.xlu1 %2924 }
0x3acf   :  { %v2927_v4 = vmul.f32 %v2925_v7, %v2922_v33 }
0x3ad1   :  { %v2931_v61 = vadd.f32 %v2930_v35, %v2927_v4 }
0x3ad3   :  { %v2937_v37 = vrot.slane %v2931_v61, 2  ;;  %v3038_v57 = vrot.slane %v2931_v61, 6 }
0x3ad5   :  { %2938 = vrot.lane.b32.xlu0 %v2937_v37, %s4100_s30 }
0x3b47   :  { %v2939_v36 = vpop.permute.xlu0 %2938 }
0x3b48   :  { %3753 = vmatmul.mubr.msk.f32.vlgmr.msra.gmra.mrb[26].mxu1 %vm175_vm4, %v2939_v36 }
0x3b49   :  { %3774 = vmatprep.mubr.msk.f32.mxu1 %vm4097_vm2, %v4098_v8 }
0x3c1b   :  { %v3008_v39 = vpop.f32.mrb[26].mxu1 }
0x3c1c   :  { %v3009_v40 = vadd.f32 %v4747_v63, %v3008_v39  ;;  %v3754_v41 = vpop.f32.mrb[27].mxu1 }
0x3c1e   :  { %v3013_v38 = vrot.slane %v3009_v40, 4 }
0x3c20   :  { %3022 = vrot.lane.b32.xlu1 %v3013_v38, %s4099_s5  ;;  %v3015_v43 = vadd.f32 %v3013_v38, %v4791_v15 }
0x3c22   :  { %v3308_v44 = vmul.f32 -1.442695, %v3015_v43 }
0x3c24   :  { %4084 = vpow2.f32 %v3308_v44 }
0x3c2e   :  { %v4085_v45 = vpop.eup %4084 }
0x3c2f   :  { %v3019_v48 = vadd.f32 1.0, %v4085_v45 }
0x3c31   :  { %4086 = vrcp.f32 %v3019_v48 }
0x3c3b   :  { %v4087_v49 = vpop.eup %4086 }
0x3c3c   :  { %v3032_v56 = vsub.f32 1.0, %v4087_v49  ;;  %v3040_v59 = vmul.f32 %v4087_v49, %v3038_v57 }
0x3c92   :  { %v3023_v51 = vpop.permute.xlu1 %3022 }
0x3c93   :  { %v3025_v52 = vmul.f32 %v4087_v49, %v3023_v51 }
0x3c95   :  { %3027 = vrot.lane.b32.xlu0 %v3025_v52, %s4099_s5 }
0x3d07   :  { %v3028_v8 = vpop.permute.xlu0 %3027 }
0x3d08   :  { %v3030_v53 = vadd.f32 %v3028_v8, %v4791_v15 }
0x3d0a   :  { %4088 = vtanh.f32 %v3030_v53 }
0x3d14   :  { %v4089_v54 = vpop.eup %4088 }
0x3d15   :  { %3034 = vrot.lane.b32.xlu1 %v4089_v54, %s4100_s30 }
0x3d87   :  { %v3035_v58 = vpop.permute.xlu1 %3034 }
0x3d88   :  { %v3037_v60 = vmul.f32 %v3035_v58, %v3032_v56 }
0x3d8a   :  { %v3041_v1 = vadd.f32 %v3040_v59, %v3037_v60 }
0x3d8c   :  { %v3047_v55 = vrot.slane %v3041_v1, 4  ;;  %v3148_v27 = vrot.slane %v3041_v1, 6 }
0x3d8e   :  { %3048 = vrot.lane.b32.xlu0 %v3047_v55, %s4100_s30 }
0x3e00   :  { %v3049_v13 = vpop.permute.xlu0 %3048 }
0x3e01   :  { %3764 = vmatmul.mubr.msk.f32.vlgmr.msra.gmra.mrb[28].mxu0 %vm175_vm4, %v3049_v13 }
0x3ed4   :  { %v3118_v42 = vpop.f32.mrb[28].mxu0 }
0x3ed5   :  { %v3119_v3 = vadd.f32 %v4747_v63, %v3118_v42  ;;  %v3765_v6 = vpop.f32.mrb[29].mxu0 }
0x3ed7   :  { %v3123_v20 = vrot.slane %v3119_v3, 2 }
0x3ed9   :  { %3132 = vrot.lane.b32.xlu1 %v3123_v20, %s4099_s5  ;;  %v3125_v9 = vadd.f32 %v3123_v20, %v4791_v15 }
0x3edb   :  { %v3310_v11 = vmul.f32 -1.442695, %v3125_v9 }
0x3edd   :  { %4090 = vpow2.f32 %v3310_v11 }
0x3ee7   :  { %v4091_v12 = vpop.eup %4090 }
0x3ee8   :  { %v3129_v14 = vadd.f32 1.0, %v4091_v12 }
0x3eea   :  { %4092 = vrcp.f32 %v3129_v14 }
0x3ef4   :  { %v4093_v62 = vpop.eup %4092 }
0x3ef5   :  { %v3142_v25 = vsub.f32 1.0, %v4093_v62  ;;  %v3150_v28 = vmul.f32 %v4093_v62, %v3148_v27 }
0x3f4b   :  { %v3133_v10 = vpop.permute.xlu1 %3132 }
0x3f4c   :  { %v3135_v17 = vmul.f32 %v4093_v62, %v3133_v10 }
0x3f4e   :  { %3137 = vrot.lane.b32.xlu0 %v3135_v17, %s4099_s5 }
0x3f52   :  { %2933 = vrot.lane.b32.xlu0 %v2931_v61, %s4100_s30 }
0x3fc0   :  { %v3138_v18 = vpop.permute.xlu0 %3137 }
0x3fc1   :  { %v3140_v63 = vadd.f32 %v3138_v18, %v4791_v15  ;;  %v3159_v15 = vld [vmem:[%s4885_s19 + $0x8] sm:$0xff] }
0x3fc2   :  { %v3942_v47 = vpack.c.bf16 %v3159_v15, %v3158_v24 }
0x3fc3   :  { %4094 = vtanh.f32 %v3140_v63 }
0x3fc4   :  { %v2934_v21 = vpop.permute.xlu0 %2933  ;;  %3943 = vmatpush3.bf16.msra.mxu1 %v3942_v47 }
0x3fc5   :  { %2936 = vst.msk [vmem:[#allocation2] sm:$0xc] %vm387_vm5, %v2934_v21  ;;  %3944 = vmatprep.subr.bf16.mxu1 %v4096_v0 }
0x3fcd   :  { %v4095_v26 = vpop.eup %4094 }
0x3fce   :  { %3144 = vrot.lane.b32.xlu1 %v4095_v26, %s4100_s30 }
0x3fd2   :  { %3043 = vrot.lane.b32.xlu1 %v3041_v1, %s4100_s30 }
0x3fd6   :  { %1788 = vrot.lane.b32.xlu1 %v4556_v19, %s4100_s30  ;;  %v3161_v19 = vld [vmem:[%s4885_s19 + $0x18] sm:$0xff] }
0x3fda   :  { %2008 = vrot.lane.b32.xlu1 %v4633_v46, %s4100_s30  ;;  %v3945_v46 = vpack.c.bf16 %v3161_v19, %v3160_v22 }
0x3fdc   :  { %3946 = vmatpush3.bf16.msra.mxu1 %v3945_v46 }
0x4040   :  { %v3145_v50 = vpop.permute.xlu1 %3144 }
0x4041   :  { %v3147_v16 = vmul.f32 %v3145_v50, %v3142_v25 }
0x4043   :  { %v3151_v34 = vadd.f32 %v3150_v28, %v3147_v16 }
0x4044   :  { %v3044_v29 = vpop.permute.xlu1 %3043 }
0x4045   :  { %3046 = vst.msk [vmem:[#allocation2] sm:$0x30] %vm498_vm7, %v3044_v29  ;;  %3153 = vrot.lane.b32.xlu0 %v3151_v34, %s4100_s30 }
0x4048   :  { %v1789_v0 = vpop.permute.xlu1 %1788 }
0x4049   :  { %1791 = vst.msk [vmem:[#allocation2 + $0x8] sm:$0xc] %vm387_vm5, %v1789_v0  ;;  %1898 = vrot.lane.b32.xlu0 %v4570_v2, %s4100_s30 }
0x404c   :  { %v2009_v5 = vpop.permute.xlu1 %2008 }
0x404d   :  { %2011 = vst.msk [vmem:[#allocation2 + $0x8] sm:$0xc0] %vm609_vm6, %v2009_v5 }
0x40b7   :  { %v3154_v23 = vpop.permute.xlu0 %3153 }
0x40b8   :  { %3156 = vst.msk [vmem:[#allocation2] sm:$0xc0] %vm609_vm6, %v3154_v23 }
0x40bb   :  { %v1899_v30 = vpop.permute.xlu0 %1898 }
0x40bc   :  { %1901 = vst.msk [vmem:[#allocation2 + $0x8] sm:$0x30] %vm498_vm7, %v1899_v30 }
0x40bf   :  { %v3157_v31 = vld [vmem:[#allocation2] sm:$0xff] }
0x40c0   :  { %3775 = vmatmul.mubr.msk.f32.vlgmr.msra.gmra.mrb[28].mxu1 %vm175_vm4, %v3157_v31 }
0x4193   :  { %v3238_v33 = vpop.f32.mrb[28].mxu1 }
0x4194   :  { %v3239_v7 = vadd.f32 %v3311_v32, %v3238_v33  ;;  %v3776_v2 = vpop.f32.mrb[29].mxu1 }
0x4196   :  { %3243 = vst.msk [vmem:[%s4887_s21] sm:$0xff] %vm3242_vm8, %v3239_v7 }

</bundles_post_ra>
